<compile_context>
chip_gen: v7x
topology: tpu7x:2x2x1
jax: 0.10.0
libtpu: 0.0.40
codegen_flags: <defaults>
</compile_context>

<pallas_src>
import functools
import math

import jax
import jax.numpy as jnp
from jax.experimental import pallas as pl
from jax.experimental.pallas import tpu as pltpu


# ----------------------------- Pallas kernels ------------------------------

def _layernorm_f32(x, g, b, eps):
    mean = jnp.mean(x, axis=-1, keepdims=True)
    var = jnp.mean((x - mean) ** 2, axis=-1, keepdims=True)
    return (x - mean) * jax.lax.rsqrt(var + eps) * g + b


def _attn_block_kernel(*refs, heads, eps, self_attn):
    # Fused: y = LN(x); o = MHA(y, kv); out = x + o
    if self_attn:
        (x_ref, ln_g, ln_b, wq, bq, wk, bk, wv, bv, wo, bo, o_ref) = refs
        kv_ref = None
    else:
        (x_ref, kv_ref, ln_g, ln_b, wq, bq, wk, bk, wv, bv, wo, bo, o_ref) = refs

    x = x_ref[0].astype(jnp.float32)                          # (Tq, D)
    y = _layernorm_f32(x, ln_g[...], ln_b[...], eps)          # pre-norm
    kv_in = y if self_attn else kv_ref[0].astype(jnp.float32)  # (Tk, D)

    dk = wq.shape[2]
    scale = 1.0 / math.sqrt(dk)

    acc = jnp.zeros_like(x)                                   # (Tq, D)
    for h in range(heads):                                    # static unroll
        q_h = jnp.dot(y, wq[h], preferred_element_type=jnp.float32) + bq[h]
        k_h = jnp.dot(kv_in, wk[h], preferred_element_type=jnp.float32) + bk[h]
        v_h = jnp.dot(kv_in, wv[h], preferred_element_type=jnp.float32) + bv[h]
        # scores: contract on dk of both operands (no explicit k.T transpose)
        s = jax.lax.dot_general(q_h, k_h, (((1,), (1,)), ((), ())),
                                preferred_element_type=jnp.float32) * scale
        m = jnp.max(s, axis=-1, keepdims=True)
        p = jnp.exp(s - m)
        denom = jnp.sum(p, axis=-1, keepdims=True)
        p = p * pl.reciprocal(denom, approx=True)             # EUP, not VALU
        o_h = jnp.dot(p, v_h, preferred_element_type=jnp.float32)      # (Tq, dk)
        acc = acc + jnp.dot(o_h, wo[h], preferred_element_type=jnp.float32)

    o_ref[0] = (x + acc + bo[...]).astype(o_ref.dtype)


def _ffn_block_kernel(*refs, eps, final_norm):
    # Fused: y = LN(x); out = x + W2(relu(W1 y)); optional final LayerNorm
    if final_norm:
        (x_ref, ln_g, ln_b, w1, b1, w2, b2, fg, fb, o_ref) = refs
    else:
        (x_ref, ln_g, ln_b, w1, b1, w2, b2, o_ref) = refs

    x = x_ref[0].astype(jnp.float32)                          # (T, D)
    y = _layernorm_f32(x, ln_g[...], ln_b[...], eps)
    h = jnp.dot(y, w1[...], preferred_element_type=jnp.float32) + b1[...]
    h = jnp.maximum(h, 0.0)                                   # (T, DFF) stays in VMEM
    out = x + jnp.dot(h, w2[...], preferred_element_type=jnp.float32) + b2[...]
    if final_norm:
        out = _layernorm_f32(out, fg[...], fb[...], eps)
    o_ref[0] = out.astype(o_ref.dtype)


# ----------------------------- Pallas wrappers ------------------------------

_COMPILER_PARAMS = pltpu.CompilerParams(
    dimension_semantics=("parallel",),
    vmem_limit_bytes=32 * 1024 * 1024,
)


def _const_spec(shape):
    n = len(shape)
    return pl.BlockSpec(shape, lambda i: (0,) * n)


def attn_block(x, kv, ln_g, ln_b, ap, heads, *, self_attn, eps=1e-5):
    # x: (G, Tq, D); kv: (G, Tk, D) or None for self-attention
    G, Tq, D = x.shape
    args = [x]
    in_specs = [pl.BlockSpec((1, Tq, D), lambda i: (i, 0, 0))]
    if not self_attn:
        Tk = kv.shape[1]
        args.append(kv)
        in_specs.append(pl.BlockSpec((1, Tk, D), lambda i: (i, 0, 0)))
    weights = [ln_g, ln_b, ap["wq"], ap["bq"], ap["wk"], ap["bk"],
               ap["wv"], ap["bv"], ap["wo"], ap["bo"]]
    args += weights
    in_specs += [_const_spec(w.shape) for w in weights]
    return pl.pallas_call(
        functools.partial(_attn_block_kernel, heads=heads, eps=eps,
                          self_attn=self_attn),
        out_shape=jax.ShapeDtypeStruct((G, Tq, D), x.dtype),
        grid=(G,),
        in_specs=in_specs,
        out_specs=pl.BlockSpec((1, Tq, D), lambda i: (i, 0, 0)),
        compiler_params=_COMPILER_PARAMS,
    )(*args)


def ffn_block(x, ln_g, ln_b, w1, b1, w2, b2, *, final=None, eps=1e-5):
    G, T, D = x.shape
    args = [x, ln_g, ln_b, w1, b1, w2, b2]
    if final is not None:
        args += [final[0], final[1]]
    in_specs = [pl.BlockSpec((1, T, D), lambda i: (i, 0, 0))]
    in_specs += [_const_spec(a.shape) for a in args[1:]]
    return pl.pallas_call(
        functools.partial(_ffn_block_kernel, eps=eps,
                          final_norm=final is not None),
        out_shape=jax.ShapeDtypeStruct((G, T, D), x.dtype),
        grid=(G,),
        in_specs=in_specs,
        out_specs=pl.BlockSpec((1, T, D), lambda i: (i, 0, 0)),
        compiler_params=_COMPILER_PARAMS,
    )(*args)


# ----------------------------- model pieces ---------------------------------

def decoder_layer(x, memory, p, heads, *, final=None):
    x = attn_block(x, None, p["ln1_g"], p["ln1_b"], p["self_attn"], heads,
                   self_attn=True)
    x = attn_block(x, memory, p["ln2_g"], p["ln2_b"], p["src_attn"], heads,
                   self_attn=False)
    x = ffn_block(x, p["ln3_g"], p["ln3_b"], p["w1"], p["b1"], p["w2"], p["b2"],
                  final=final)
    return x


def decoder_forward(x, memory, layer_params, final_g, final_b, heads):
    B, Nn, Tq, D = x.shape
    Tk = memory.shape[2]
    xg = x.reshape(B * Nn, Tq, D)        # free reshape; (T, D) per grid step
    mg = memory.reshape(B * Nn, Tk, D)
    n = len(layer_params)
    for li, p in enumerate(layer_params):
        fin = (final_g, final_b) if li == n - 1 else None
        xg = decoder_layer(xg, mg, p, heads, final=fin)
    return xg.reshape(B, Nn, Tq, D)


# ----------------------------- param prep ------------------------------------

def prep_attn_params(p, heads):
    """Pre-split (D, D) projection weights per head so the kernel only indexes
    the leading dim (no in-kernel reshapes / transposes)."""
    D = p["wq"].shape[0]
    dk = D // heads

    def split_w(w):   # head h -> w[:, h*dk:(h+1)*dk]
        return w.reshape(D, heads, dk).transpose(1, 0, 2)     # (H, D, dk)

    def split_b(b):
        return b.reshape(heads, 1, dk)                        # (H, 1, dk)

    return dict(
        wq=split_w(p["wq"]), bq=split_b(p["bq"]),
        wk=split_w(p["wk"]), bk=split_b(p["bk"]),
        wv=split_w(p["wv"]), bv=split_b(p["bv"]),
        wo=p["wo"].reshape(heads, dk, D),                     # (H, dk, D)
        bo=p["bo"].reshape(1, D),
    )


def prep_layer_params(p, heads):
    D = p["ln1_g"].shape[0]
    return dict(
        self_attn=prep_attn_params(p["self_attn"], heads),
        src_attn=prep_attn_params(p["src_attn"], heads),
        w1=p["w1"], b1=p["b1"].reshape(1, -1),
        w2=p["w2"], b2=p["b2"].reshape(1, -1),
        ln1_g=p["ln1_g"].reshape(1, D), ln1_b=p["ln1_b"].reshape(1, D),
        ln2_g=p["ln2_g"].reshape(1, D), ln2_b=p["ln2_b"].reshape(1, D),
        ln3_g=p["ln3_g"].reshape(1, D), ln3_b=p["ln3_b"].reshape(1, D),
    )


# ----------------------------- plain-JAX reference --------------------------

def _ref_ln(x, g, b, eps=1e-5):
    m = jnp.mean(x, axis=-1, keepdims=True)
    v = jnp.mean((x - m) ** 2, axis=-1, keepdims=True)
    return (x - m) * jax.lax.rsqrt(v + eps) * g + b


def _ref_mha(xq, xkv, p, heads):
    B, Nn, Tq, D = xq.shape
    Tk = xkv.shape[2]
    dk = D // heads
    q = xq.reshape(-1, D) @ p["wq"] + p["bq"]
    k = xkv.reshape(-1, D) @ p["wk"] + p["bk"]
    v = xkv.reshape(-1, D) @ p["wv"] + p["bv"]
    q = q.reshape(B * Nn, Tq, heads, dk).transpose(0, 2, 1, 3)
    k = k.reshape(B * Nn, Tk, heads, dk).transpose(0, 2, 1, 3)
    v = v.reshape(B * Nn, Tk, heads, dk).transpose(0, 2, 1, 3)
    s = jnp.einsum("bhqd,bhkd->bhqk", q, k) / math.sqrt(dk)
    a = jax.nn.softmax(s, axis=-1)
    o = jnp.einsum("bhqk,bhkd->bhqd", a, v).transpose(0, 2, 1, 3).reshape(-1, D)
    return (o @ p["wo"] + p["bo"]).reshape(B, Nn, Tq, D)


def _ref_decoder(x, memory, layer_params, fg, fb, heads):
    for p in layer_params:
        y = _ref_ln(x, p["ln1_g"], p["ln1_b"])
        x = x + _ref_mha(y, y, p["self_attn"], heads)
        y = _ref_ln(x, p["ln2_g"], p["ln2_b"])
        x = x + _ref_mha(y, memory, p["src_attn"], heads)
        y = _ref_ln(x, p["ln3_g"], p["ln3_b"])
        D = x.shape[-1]
        ff = jnp.maximum(y.reshape(-1, D) @ p["w1"] + p["b1"], 0.0)
        ff = ff @ p["w2"] + p["b2"]
        x = x + ff.reshape(x.shape)
    return _ref_ln(x, fg, fb)


# ----------------------------- param init -----------------------------------

def init_params(key, d_model, d_ff, n_layers):
    def lin(k, din, dout):
        return (jax.random.normal(k, (din, dout), jnp.float32) / math.sqrt(din),
                jnp.zeros((dout,), jnp.float32))

    ks = jax.random.split(key, 10)

    def attn_p(k0, k1, k2, k3):
        wq, bq = lin(k0, d_model, d_model)
        wk, bk = lin(k1, d_model, d_model)
        wv, bv = lin(k2, d_model, d_model)
        wo, bo = lin(k3, d_model, d_model)
        return dict(wq=wq, bq=bq, wk=wk, bk=bk, wv=wv, bv=bv, wo=wo, bo=bo)

    w1, b1 = lin(ks[8], d_model, d_ff)
    w2, b2 = lin(ks[9], d_ff, d_model)
    layer = dict(
        self_attn=attn_p(ks[0], ks[1], ks[2], ks[3]),
        src_attn=attn_p(ks[4], ks[5], ks[6], ks[7]),
        w1=w1, b1=b1, w2=w2, b2=b2,
        ln1_g=jnp.ones((d_model,)), ln1_b=jnp.zeros((d_model,)),
        ln2_g=jnp.ones((d_model,)), ln2_b=jnp.zeros((d_model,)),
        ln3_g=jnp.ones((d_model,)), ln3_b=jnp.zeros((d_model,)),
    )
    # clones() deep-copies the SAME layer -> identical params in every layer.
    layer_params = [layer] * n_layers
    final_g = jnp.ones((d_model,), jnp.float32)
    final_b = jnp.zeros((d_model,), jnp.float32)
    return layer_params, final_g, final_b


# ----------------------------- main ------------------------------------------

if __name__ == "__main__":
    B, Nn, Tq, Tk, D, H, DFF, NLAYERS = 2, 3, 8, 8, 32, 4, 64, 2

    key = jax.random.PRNGKey(0)
    kx, km, kp = jax.random.split(key, 3)
    x = jax.random.normal(kx, (B, Nn, Tq, D), jnp.float32)
    memory = jax.random.normal(km, (B, Nn, Tk, D), jnp.float32)

    layer_params, fg, fb = init_params(kp, D, DFF, NLAYERS)
    kernel_params = [prep_layer_params(p, H) for p in layer_params]
    fg2, fb2 = fg.reshape(1, D), fb.reshape(1, D)

    fwd = jax.jit(functools.partial(decoder_forward, heads=H))
    out = fwd(x, memory, kernel_params, fg2, fb2)
    out = jax.block_until_ready(out)

    ref = _ref_decoder(x, memory, layer_params, fg, fb, H)
    assert out.shape == (B, Nn, Tq, D)
    assert bool(jnp.all(jnp.isfinite(out)))
    err = float(jnp.max(jnp.abs(out - ref)))
    # small slack vs the exact-divide reference: softmax uses the approximate
    # (EUP) reciprocal inside the kernel.
    assert err < 1e-2, err

    print("KERNEL_OK")
</pallas_src>

<mosaic_0001>
module attributes {stable_mosaic.version = 11 : i64} {
  func.func @_attn_block_kernel(%arg0: i32, %arg1: memref<1x8x32xf32, #tpu.memory_space<vmem>>, %arg2: memref<1x32xf32, #tpu.memory_space<vmem>>, %arg3: memref<1x32xf32, #tpu.memory_space<vmem>>, %arg4: memref<4x32x8xf32, #tpu.memory_space<vmem>>, %arg5: memref<4x1x8xf32, #tpu.memory_space<vmem>>, %arg6: memref<4x32x8xf32, #tpu.memory_space<vmem>>, %arg7: memref<4x1x8xf32, #tpu.memory_space<vmem>>, %arg8: memref<4x32x8xf32, #tpu.memory_space<vmem>>, %arg9: memref<4x1x8xf32, #tpu.memory_space<vmem>>, %arg10: memref<4x8x32xf32, #tpu.memory_space<vmem>>, %arg11: memref<1x32xf32, #tpu.memory_space<vmem>>, %arg12: memref<1x8x32xf32, #tpu.memory_space<vmem>>) attributes {dimension_semantics = [#tpu.dimension_semantics<parallel>], iteration_bounds = array<i64: 6>, scalar_prefetch = 0 : i64, scratch_operands = 0 : i64, tpu.core_type = #tpu.core_type<tc>, window_params = [{transform_indices = @transform_0, window_bounds = array<i64: 1, 8, 32>}, {pipeline_mode = #tpu.pipeline_mode<synchronous>, transform_indices = @transform_1, window_bounds = array<i64: 1, 32>}, {pipeline_mode = #tpu.pipeline_mode<synchronous>, transform_indices = @transform_2, window_bounds = array<i64: 1, 32>}, {pipeline_mode = #tpu.pipeline_mode<synchronous>, transform_indices = @transform_3, window_bounds = array<i64: 4, 32, 8>}, {pipeline_mode = #tpu.pipeline_mode<synchronous>, transform_indices = @transform_4, window_bounds = array<i64: 4, 1, 8>}, {pipeline_mode = #tpu.pipeline_mode<synchronous>, transform_indices = @transform_5, window_bounds = array<i64: 4, 32, 8>}, {pipeline_mode = #tpu.pipeline_mode<synchronous>, transform_indices = @transform_6, window_bounds = array<i64: 4, 1, 8>}, {pipeline_mode = #tpu.pipeline_mode<synchronous>, transform_indices = @transform_7, window_bounds = array<i64: 4, 32, 8>}, {pipeline_mode = #tpu.pipeline_mode<synchronous>, transform_indices = @transform_8, window_bounds = array<i64: 4, 1, 8>}, {pipeline_mode = #tpu.pipeline_mode<synchronous>, transform_indices = @transform_9, window_bounds = array<i64: 4, 8, 32>}, {pipeline_mode = #tpu.pipeline_mode<synchronous>, transform_indices = @transform_10, window_bounds = array<i64: 1, 32>}, {transform_indices = @transform_11, window_bounds = array<i64: 1, 8, 32>}]} {
    %c0 = arith.constant 0 : index
    %c0_0 = arith.constant 0 : index
    %c0_1 = arith.constant 0 : index
    %0 = vector.load %arg1[%c0, %c0_0, %c0_1] : memref<1x8x32xf32, #tpu.memory_space<vmem>>, vector<1x8x32xf32>
    %1 = vector.shape_cast %0 : vector<1x8x32xf32> to vector<8x32xf32>
    %c0_2 = arith.constant 0 : index
    %c0_3 = arith.constant 0 : index
    %2 = vector.load %arg2[%c0_2, %c0_3] : memref<1x32xf32, #tpu.memory_space<vmem>>, vector<1x32xf32>
    %c0_4 = arith.constant 0 : index
    %c0_5 = arith.constant 0 : index
    %3 = vector.load %arg3[%c0_4, %c0_5] : memref<1x32xf32, #tpu.memory_space<vmem>>, vector<1x32xf32>
    %cst = arith.constant dense<0.000000e+00> : vector<8xf32>
    %4 = vector.multi_reduction <add>, %1, %cst [1] : vector<8x32xf32> to vector<8xf32>
    %5 = vector.shape_cast %4 : vector<8xf32> to vector<8x1xf32>
    %cst_6 = arith.constant 3.200000e+01 : f32
    %6 = vector.broadcast %cst_6 : f32 to vector<8x1xf32>
    %7 = arith.divf %5, %6 : vector<8x1xf32>
    %8 = vector.broadcast %7 : vector<8x1xf32> to vector<8x32xf32>
    %9 = arith.subf %1, %8 : vector<8x32xf32>
    %10 = arith.mulf %9, %9 : vector<8x32xf32>
    %cst_7 = arith.constant dense<0.000000e+00> : vector<8xf32>
    %11 = vector.multi_reduction <add>, %10, %cst_7 [1] : vector<8x32xf32> to vector<8xf32>
    %12 = vector.shape_cast %11 : vector<8xf32> to vector<8x1xf32>
    %cst_8 = arith.constant 3.200000e+01 : f32
    %13 = vector.broadcast %cst_8 : f32 to vector<8x1xf32>
    %14 = arith.divf %12, %13 : vector<8x1xf32>
    %15 = vector.broadcast %7 : vector<8x1xf32> to vector<8x32xf32>
    %16 = arith.subf %1, %15 : vector<8x32xf32>
    %cst_9 = arith.constant 9.99999974E-6 : f32
    %17 = vector.broadcast %cst_9 : f32 to vector<8x1xf32>
    %18 = arith.addf %14, %17 : vector<8x1xf32>
    %19 = math.rsqrt %18 : vector<8x1xf32>
    %20 = vector.broadcast %19 : vector<8x1xf32> to vector<8x32xf32>
    %21 = arith.mulf %16, %20 : vector<8x32xf32>
    %22 = vector.broadcast %2 : vector<1x32xf32> to vector<8x32xf32>
    %23 = arith.mulf %21, %22 : vector<8x32xf32>
    %24 = vector.broadcast %3 : vector<1x32xf32> to vector<8x32xf32>
    %25 = arith.addf %23, %24 : vector<8x32xf32>
    %cst_10 = arith.constant 0.000000e+00 : f32
    %26 = vector.broadcast %cst_10 : f32 to vector<8x32xf32>
    %c0_11 = arith.constant 0 : index
    %c0_12 = arith.constant 0 : index
    %c0_13 = arith.constant 0 : index
    %27 = vector.load %arg4[%c0_11, %c0_12, %c0_13] : memref<4x32x8xf32, #tpu.memory_space<vmem>>, vector<1x32x8xf32>
    %28 = vector.shape_cast %27 : vector<1x32x8xf32> to vector<32x8xf32>
    %cst_14 = arith.constant dense<0.000000e+00> : vector<8x8xf32>
    %29 = tpu.matmul %25, %28, %cst_14 {dimension_numbers = #tpu.dot_dimension_numbers<[1], [0], [0], [1], [0, 0, 1, 1], [], []>} : vector<8x32xf32>, vector<32x8xf32>, vector<8x8xf32> -> vector<8x8xf32>
    %c0_15 = arith.constant 0 : index
    %c0_16 = arith.constant 0 : index
    %c0_17 = arith.constant 0 : index
    %30 = vector.load %arg5[%c0_15, %c0_16, %c0_17] : memref<4x1x8xf32, #tpu.memory_space<vmem>>, vector<1x1x8xf32>
    %31 = vector.shape_cast %30 : vector<1x1x8xf32> to vector<1x8xf32>
    %32 = vector.broadcast %31 : vector<1x8xf32> to vector<8x8xf32>
    %33 = arith.addf %29, %32 : vector<8x8xf32>
    %c0_18 = arith.constant 0 : index
    %c0_19 = arith.constant 0 : index
    %c0_20 = arith.constant 0 : index
    %34 = vector.load %arg6[%c0_18, %c0_19, %c0_20] : memref<4x32x8xf32, #tpu.memory_space<vmem>>, vector<1x32x8xf32>
    %35 = vector.shape_cast %34 : vector<1x32x8xf32> to vector<32x8xf32>
    %cst_21 = arith.constant dense<0.000000e+00> : vector<8x8xf32>
    %36 = tpu.matmul %25, %35, %cst_21 {dimension_numbers = #tpu.dot_dimension_numbers<[1], [0], [0], [1], [0, 0, 1, 1], [], []>} : vector<8x32xf32>, vector<32x8xf32>, vector<8x8xf32> -> vector<8x8xf32>
    %c0_22 = arith.constant 0 : index
    %c0_23 = arith.constant 0 : index
    %c0_24 = arith.constant 0 : index
    %37 = vector.load %arg7[%c0_22, %c0_23, %c0_24] : memref<4x1x8xf32, #tpu.memory_space<vmem>>, vector<1x1x8xf32>
    %38 = vector.shape_cast %37 : vector<1x1x8xf32> to vector<1x8xf32>
    %39 = vector.broadcast %38 : vector<1x8xf32> to vector<8x8xf32>
    %40 = arith.addf %36, %39 : vector<8x8xf32>
    %c0_25 = arith.constant 0 : index
    %c0_26 = arith.constant 0 : index
    %c0_27 = arith.constant 0 : index
    %41 = vector.load %arg8[%c0_25, %c0_26, %c0_27] : memref<4x32x8xf32, #tpu.memory_space<vmem>>, vector<1x32x8xf32>
    %42 = vector.shape_cast %41 : vector<1x32x8xf32> to vector<32x8xf32>
    %cst_28 = arith.constant dense<0.000000e+00> : vector<8x8xf32>
    %43 = tpu.matmul %25, %42, %cst_28 {dimension_numbers = #tpu.dot_dimension_numbers<[1], [0], [0], [1], [0, 0, 1, 1], [], []>} : vector<8x32xf32>, vector<32x8xf32>, vector<8x8xf32> -> vector<8x8xf32>
    %c0_29 = arith.constant 0 : index
    %c0_30 = arith.constant 0 : index
    %c0_31 = arith.constant 0 : index
    %44 = vector.load %arg9[%c0_29, %c0_30, %c0_31] : memref<4x1x8xf32, #tpu.memory_space<vmem>>, vector<1x1x8xf32>
    %45 = vector.shape_cast %44 : vector<1x1x8xf32> to vector<1x8xf32>
    %46 = vector.broadcast %45 : vector<1x8xf32> to vector<8x8xf32>
    %47 = arith.addf %43, %46 : vector<8x8xf32>
    %cst_32 = arith.constant dense<0.000000e+00> : vector<8x8xf32>
    %48 = tpu.matmul %33, %40, %cst_32 {dimension_numbers = #tpu.dot_dimension_numbers<[1], [1], [0], [0], [0, 0, 1, 0], [], []>} : vector<8x8xf32>, vector<8x8xf32>, vector<8x8xf32> -> vector<8x8xf32>
    %cst_33 = arith.constant 0.353553385 : f32
    %49 = vector.broadcast %cst_33 : f32 to vector<8x8xf32>
    %50 = arith.mulf %48, %49 : vector<8x8xf32>
    %cst_34 = arith.constant dense<0xFF800000> : vector<8xf32>
    %51 = vector.multi_reduction <maximumf>, %50, %cst_34 [1] : vector<8x8xf32> to vector<8xf32>
    %52 = vector.shape_cast %51 : vector<8xf32> to vector<8x1xf32>
    %53 = vector.broadcast %52 : vector<8x1xf32> to vector<8x8xf32>
    %54 = arith.subf %50, %53 : vector<8x8xf32>
    %55 = math.exp %54 : vector<8x8xf32>
    %cst_35 = arith.constant dense<0.000000e+00> : vector<8xf32>
    %56 = vector.multi_reduction <add>, %55, %cst_35 [1] : vector<8x8xf32> to vector<8xf32>
    %57 = vector.shape_cast %56 : vector<8xf32> to vector<8x1xf32>
    %58 = tpu.reciprocal %57 {approx = true} : vector<8x1xf32> -> vector<8x1xf32>
    %59 = vector.broadcast %58 : vector<8x1xf32> to vector<8x8xf32>
    %60 = arith.mulf %55, %59 : vector<8x8xf32>
    %cst_36 = arith.constant dense<0.000000e+00> : vector<8x8xf32>
    %61 = tpu.matmul %60, %47, %cst_36 {dimension_numbers = #tpu.dot_dimension_numbers<[1], [0], [0], [1], [0, 0, 1, 1], [], []>} : vector<8x8xf32>, vector<8x8xf32>, vector<8x8xf32> -> vector<8x8xf32>
    %c0_37 = arith.constant 0 : index
    %c0_38 = arith.constant 0 : index
    %c0_39 = arith.constant 0 : index
    %62 = vector.load %arg10[%c0_37, %c0_38, %c0_39] : memref<4x8x32xf32, #tpu.memory_space<vmem>>, vector<1x8x32xf32>
    %63 = vector.shape_cast %62 : vector<1x8x32xf32> to vector<8x32xf32>
    %cst_40 = arith.constant dense<0.000000e+00> : vector<8x32xf32>
    %64 = tpu.matmul %61, %63, %cst_40 {dimension_numbers = #tpu.dot_dimension_numbers<[1], [0], [0], [1], [0, 0, 1, 1], [], []>} : vector<8x8xf32>, vector<8x32xf32>, vector<8x32xf32> -> vector<8x32xf32>
    %65 = arith.addf %26, %64 : vector<8x32xf32>
    %c1 = arith.constant 1 : index
    %c0_41 = arith.constant 0 : index
    %c0_42 = arith.constant 0 : index
    %66 = vector.load %arg4[%c1, %c0_41, %c0_42] : memref<4x32x8xf32, #tpu.memory_space<vmem>>, vector<1x32x8xf32>
    %67 = vector.shape_cast %66 : vector<1x32x8xf32> to vector<32x8xf32>
    %cst_43 = arith.constant dense<0.000000e+00> : vector<8x8xf32>
    %68 = tpu.matmul %25, %67, %cst_43 {dimension_numbers = #tpu.dot_dimension_numbers<[1], [0], [0], [1], [0, 0, 1, 1], [], []>} : vector<8x32xf32>, vector<32x8xf32>, vector<8x8xf32> -> vector<8x8xf32>
    %c1_44 = arith.constant 1 : index
    %c0_45 = arith.constant 0 : index
    %c0_46 = arith.constant 0 : index
    %69 = vector.load %arg5[%c1_44, %c0_45, %c0_46] : memref<4x1x8xf32, #tpu.memory_space<vmem>>, vector<1x1x8xf32>
    %70 = vector.shape_cast %69 : vector<1x1x8xf32> to vector<1x8xf32>
    %71 = vector.broadcast %70 : vector<1x8xf32> to vector<8x8xf32>
    %72 = arith.addf %68, %71 : vector<8x8xf32>
    %c1_47 = arith.constant 1 : index
    %c0_48 = arith.constant 0 : index
    %c0_49 = arith.constant 0 : index
    %73 = vector.load %arg6[%c1_47, %c0_48, %c0_49] : memref<4x32x8xf32, #tpu.memory_space<vmem>>, vector<1x32x8xf32>
    %74 = vector.shape_cast %73 : vector<1x32x8xf32> to vector<32x8xf32>
    %cst_50 = arith.constant dense<0.000000e+00> : vector<8x8xf32>
    %75 = tpu.matmul %25, %74, %cst_50 {dimension_numbers = #tpu.dot_dimension_numbers<[1], [0], [0], [1], [0, 0, 1, 1], [], []>} : vector<8x32xf32>, vector<32x8xf32>, vector<8x8xf32> -> vector<8x8xf32>
    %c1_51 = arith.constant 1 : index
    %c0_52 = arith.constant 0 : index
    %c0_53 = arith.constant 0 : index
    %76 = vector.load %arg7[%c1_51, %c0_52, %c0_53] : memref<4x1x8xf32, #tpu.memory_space<vmem>>, vector<1x1x8xf32>
    %77 = vector.shape_cast %76 : vector<1x1x8xf32> to vector<1x8xf32>
    %78 = vector.broadcast %77 : vector<1x8xf32> to vector<8x8xf32>
    %79 = arith.addf %75, %78 : vector<8x8xf32>
    %c1_54 = arith.constant 1 : index
    %c0_55 = arith.constant 0 : index
    %c0_56 = arith.constant 0 : index
    %80 = vector.load %arg8[%c1_54, %c0_55, %c0_56] : memref<4x32x8xf32, #tpu.memory_space<vmem>>, vector<1x32x8xf32>
    %81 = vector.shape_cast %80 : vector<1x32x8xf32> to vector<32x8xf32>
    %cst_57 = arith.constant dense<0.000000e+00> : vector<8x8xf32>
    %82 = tpu.matmul %25, %81, %cst_57 {dimension_numbers = #tpu.dot_dimension_numbers<[1], [0], [0], [1], [0, 0, 1, 1], [], []>} : vector<8x32xf32>, vector<32x8xf32>, vector<8x8xf32> -> vector<8x8xf32>
    %c1_58 = arith.constant 1 : index
    %c0_59 = arith.constant 0 : index
    %c0_60 = arith.constant 0 : index
    %83 = vector.load %arg9[%c1_58, %c0_59, %c0_60] : memref<4x1x8xf32, #tpu.memory_space<vmem>>, vector<1x1x8xf32>
    %84 = vector.shape_cast %83 : vector<1x1x8xf32> to vector<1x8xf32>
    %85 = vector.broadcast %84 : vector<1x8xf32> to vector<8x8xf32>
    %86 = arith.addf %82, %85 : vector<8x8xf32>
    %cst_61 = arith.constant dense<0.000000e+00> : vector<8x8xf32>
    %87 = tpu.matmul %72, %79, %cst_61 {dimension_numbers = #tpu.dot_dimension_numbers<[1], [1], [0], [0], [0, 0, 1, 0], [], []>} : vector<8x8xf32>, vector<8x8xf32>, vector<8x8xf32> -> vector<8x8xf32>
    %cst_62 = arith.constant 0.353553385 : f32
    %88 = vector.broadcast %cst_62 : f32 to vector<8x8xf32>
    %89 = arith.mulf %87, %88 : vector<8x8xf32>
    %cst_63 = arith.constant dense<0xFF800000> : vector<8xf32>
    %90 = vector.multi_reduction <maximumf>, %89, %cst_63 [1] : vector<8x8xf32> to vector<8xf32>
    %91 = vector.shape_cast %90 : vector<8xf32> to vector<8x1xf32>
    %92 = vector.broadcast %91 : vector<8x1xf32> to vector<8x8xf32>
    %93 = arith.subf %89, %92 : vector<8x8xf32>
    %94 = math.exp %93 : vector<8x8xf32>
    %cst_64 = arith.constant dense<0.000000e+00> : vector<8xf32>
    %95 = vector.multi_reduction <add>, %94, %cst_64 [1] : vector<8x8xf32> to vector<8xf32>
    %96 = vector.shape_cast %95 : vector<8xf32> to vector<8x1xf32>
    %97 = tpu.reciprocal %96 {approx = true} : vector<8x1xf32> -> vector<8x1xf32>
    %98 = vector.broadcast %97 : vector<8x1xf32> to vector<8x8xf32>
    %99 = arith.mulf %94, %98 : vector<8x8xf32>
    %cst_65 = arith.constant dense<0.000000e+00> : vector<8x8xf32>
    %100 = tpu.matmul %99, %86, %cst_65 {dimension_numbers = #tpu.dot_dimension_numbers<[1], [0], [0], [1], [0, 0, 1, 1], [], []>} : vector<8x8xf32>, vector<8x8xf32>, vector<8x8xf32> -> vector<8x8xf32>
    %c1_66 = arith.constant 1 : index
    %c0_67 = arith.constant 0 : index
    %c0_68 = arith.constant 0 : index
    %101 = vector.load %arg10[%c1_66, %c0_67, %c0_68] : memref<4x8x32xf32, #tpu.memory_space<vmem>>, vector<1x8x32xf32>
    %102 = vector.shape_cast %101 : vector<1x8x32xf32> to vector<8x32xf32>
    %cst_69 = arith.constant dense<0.000000e+00> : vector<8x32xf32>
    %103 = tpu.matmul %100, %102, %cst_69 {dimension_numbers = #tpu.dot_dimension_numbers<[1], [0], [0], [1], [0, 0, 1, 1], [], []>} : vector<8x8xf32>, vector<8x32xf32>, vector<8x32xf32> -> vector<8x32xf32>
    %104 = arith.addf %65, %103 : vector<8x32xf32>
    %c2 = arith.constant 2 : index
    %c0_70 = arith.constant 0 : index
    %c0_71 = arith.constant 0 : index
    %105 = vector.load %arg4[%c2, %c0_70, %c0_71] : memref<4x32x8xf32, #tpu.memory_space<vmem>>, vector<1x32x8xf32>
    %106 = vector.shape_cast %105 : vector<1x32x8xf32> to vector<32x8xf32>
    %cst_72 = arith.constant dense<0.000000e+00> : vector<8x8xf32>
    %107 = tpu.matmul %25, %106, %cst_72 {dimension_numbers = #tpu.dot_dimension_numbers<[1], [0], [0], [1], [0, 0, 1, 1], [], []>} : vector<8x32xf32>, vector<32x8xf32>, vector<8x8xf32> -> vector<8x8xf32>
    %c2_73 = arith.constant 2 : index
    %c0_74 = arith.constant 0 : index
    %c0_75 = arith.constant 0 : index
    %108 = vector.load %arg5[%c2_73, %c0_74, %c0_75] : memref<4x1x8xf32, #tpu.memory_space<vmem>>, vector<1x1x8xf32>
    %109 = vector.shape_cast %108 : vector<1x1x8xf32> to vector<1x8xf32>
    %110 = vector.broadcast %109 : vector<1x8xf32> to vector<8x8xf32>
    %111 = arith.addf %107, %110 : vector<8x8xf32>
    %c2_76 = arith.constant 2 : index
    %c0_77 = arith.constant 0 : index
    %c0_78 = arith.constant 0 : index
    %112 = vector.load %arg6[%c2_76, %c0_77, %c0_78] : memref<4x32x8xf32, #tpu.memory_space<vmem>>, vector<1x32x8xf32>
    %113 = vector.shape_cast %112 : vector<1x32x8xf32> to vector<32x8xf32>
    %cst_79 = arith.constant dense<0.000000e+00> : vector<8x8xf32>
    %114 = tpu.matmul %25, %113, %cst_79 {dimension_numbers = #tpu.dot_dimension_numbers<[1], [0], [0], [1], [0, 0, 1, 1], [], []>} : vector<8x32xf32>, vector<32x8xf32>, vector<8x8xf32> -> vector<8x8xf32>
    %c2_80 = arith.constant 2 : index
    %c0_81 = arith.constant 0 : index
    %c0_82 = arith.constant 0 : index
    %115 = vector.load %arg7[%c2_80, %c0_81, %c0_82] : memref<4x1x8xf32, #tpu.memory_space<vmem>>, vector<1x1x8xf32>
    %116 = vector.shape_cast %115 : vector<1x1x8xf32> to vector<1x8xf32>
    %117 = vector.broadcast %116 : vector<1x8xf32> to vector<8x8xf32>
    %118 = arith.addf %114, %117 : vector<8x8xf32>
    %c2_83 = arith.constant 2 : index
    %c0_84 = arith.constant 0 : index
    %c0_85 = arith.constant 0 : index
    %119 = vector.load %arg8[%c2_83, %c0_84, %c0_85] : memref<4x32x8xf32, #tpu.memory_space<vmem>>, vector<1x32x8xf32>
    %120 = vector.shape_cast %119 : vector<1x32x8xf32> to vector<32x8xf32>
    %cst_86 = arith.constant dense<0.000000e+00> : vector<8x8xf32>
    %121 = tpu.matmul %25, %120, %cst_86 {dimension_numbers = #tpu.dot_dimension_numbers<[1], [0], [0], [1], [0, 0, 1, 1], [], []>} : vector<8x32xf32>, vector<32x8xf32>, vector<8x8xf32> -> vector<8x8xf32>
    %c2_87 = arith.constant 2 : index
    %c0_88 = arith.constant 0 : index
    %c0_89 = arith.constant 0 : index
    %122 = vector.load %arg9[%c2_87, %c0_88, %c0_89] : memref<4x1x8xf32, #tpu.memory_space<vmem>>, vector<1x1x8xf32>
    %123 = vector.shape_cast %122 : vector<1x1x8xf32> to vector<1x8xf32>
    %124 = vector.broadcast %123 : vector<1x8xf32> to vector<8x8xf32>
    %125 = arith.addf %121, %124 : vector<8x8xf32>
    %cst_90 = arith.constant dense<0.000000e+00> : vector<8x8xf32>
    %126 = tpu.matmul %111, %118, %cst_90 {dimension_numbers = #tpu.dot_dimension_numbers<[1], [1], [0], [0], [0, 0, 1, 0], [], []>} : vector<8x8xf32>, vector<8x8xf32>, vector<8x8xf32> -> vector<8x8xf32>
    %cst_91 = arith.constant 0.353553385 : f32
    %127 = vector.broadcast %cst_91 : f32 to vector<8x8xf32>
    %128 = arith.mulf %126, %127 : vector<8x8xf32>
    %cst_92 = arith.constant dense<0xFF800000> : vector<8xf32>
    %129 = vector.multi_reduction <maximumf>, %128, %cst_92 [1] : vector<8x8xf32> to vector<8xf32>
    %130 = vector.shape_cast %129 : vector<8xf32> to vector<8x1xf32>
    %131 = vector.broadcast %130 : vector<8x1xf32> to vector<8x8xf32>
    %132 = arith.subf %128, %131 : vector<8x8xf32>
    %133 = math.exp %132 : vector<8x8xf32>
    %cst_93 = arith.constant dense<0.000000e+00> : vector<8xf32>
    %134 = vector.multi_reduction <add>, %133, %cst_93 [1] : vector<8x8xf32> to vector<8xf32>
    %135 = vector.shape_cast %134 : vector<8xf32> to vector<8x1xf32>
    %136 = tpu.reciprocal %135 {approx = true} : vector<8x1xf32> -> vector<8x1xf32>
    %137 = vector.broadcast %136 : vector<8x1xf32> to vector<8x8xf32>
    %138 = arith.mulf %133, %137 : vector<8x8xf32>
    %cst_94 = arith.constant dense<0.000000e+00> : vector<8x8xf32>
    %139 = tpu.matmul %138, %125, %cst_94 {dimension_numbers = #tpu.dot_dimension_numbers<[1], [0], [0], [1], [0, 0, 1, 1], [], []>} : vector<8x8xf32>, vector<8x8xf32>, vector<8x8xf32> -> vector<8x8xf32>
    %c2_95 = arith.constant 2 : index
    %c0_96 = arith.constant 0 : index
    %c0_97 = arith.constant 0 : index
    %140 = vector.load %arg10[%c2_95, %c0_96, %c0_97] : memref<4x8x32xf32, #tpu.memory_space<vmem>>, vector<1x8x32xf32>
    %141 = vector.shape_cast %140 : vector<1x8x32xf32> to vector<8x32xf32>
    %cst_98 = arith.constant dense<0.000000e+00> : vector<8x32xf32>
    %142 = tpu.matmul %139, %141, %cst_98 {dimension_numbers = #tpu.dot_dimension_numbers<[1], [0], [0], [1], [0, 0, 1, 1], [], []>} : vector<8x8xf32>, vector<8x32xf32>, vector<8x32xf32> -> vector<8x32xf32>
    %143 = arith.addf %104, %142 : vector<8x32xf32>
    %c3 = arith.constant 3 : index
    %c0_99 = arith.constant 0 : index
    %c0_100 = arith.constant 0 : index
    %144 = vector.load %arg4[%c3, %c0_99, %c0_100] : memref<4x32x8xf32, #tpu.memory_space<vmem>>, vector<1x32x8xf32>
    %145 = vector.shape_cast %144 : vector<1x32x8xf32> to vector<32x8xf32>
    %cst_101 = arith.constant dense<0.000000e+00> : vector<8x8xf32>
    %146 = tpu.matmul %25, %145, %cst_101 {dimension_numbers = #tpu.dot_dimension_numbers<[1], [0], [0], [1], [0, 0, 1, 1], [], []>} : vector<8x32xf32>, vector<32x8xf32>, vector<8x8xf32> -> vector<8x8xf32>
    %c3_102 = arith.constant 3 : index
    %c0_103 = arith.constant 0 : index
    %c0_104 = arith.constant 0 : index
    %147 = vector.load %arg5[%c3_102, %c0_103, %c0_104] : memref<4x1x8xf32, #tpu.memory_space<vmem>>, vector<1x1x8xf32>
    %148 = vector.shape_cast %147 : vector<1x1x8xf32> to vector<1x8xf32>
    %149 = vector.broadcast %148 : vector<1x8xf32> to vector<8x8xf32>
    %150 = arith.addf %146, %149 : vector<8x8xf32>
    %c3_105 = arith.constant 3 : index
    %c0_106 = arith.constant 0 : index
    %c0_107 = arith.constant 0 : index
    %151 = vector.load %arg6[%c3_105, %c0_106, %c0_107] : memref<4x32x8xf32, #tpu.memory_space<vmem>>, vector<1x32x8xf32>
    %152 = vector.shape_cast %151 : vector<1x32x8xf32> to vector<32x8xf32>
    %cst_108 = arith.constant dense<0.000000e+00> : vector<8x8xf32>
    %153 = tpu.matmul %25, %152, %cst_108 {dimension_numbers = #tpu.dot_dimension_numbers<[1], [0], [0], [1], [0, 0, 1, 1], [], []>} : vector<8x32xf32>, vector<32x8xf32>, vector<8x8xf32> -> vector<8x8xf32>
    %c3_109 = arith.constant 3 : index
    %c0_110 = arith.constant 0 : index
    %c0_111 = arith.constant 0 : index
    %154 = vector.load %arg7[%c3_109, %c0_110, %c0_111] : memref<4x1x8xf32, #tpu.memory_space<vmem>>, vector<1x1x8xf32>
    %155 = vector.shape_cast %154 : vector<1x1x8xf32> to vector<1x8xf32>
    %156 = vector.broadcast %155 : vector<1x8xf32> to vector<8x8xf32>
    %157 = arith.addf %153, %156 : vector<8x8xf32>
    %c3_112 = arith.constant 3 : index
    %c0_113 = arith.constant 0 : index
    %c0_114 = arith.constant 0 : index
    %158 = vector.load %arg8[%c3_112, %c0_113, %c0_114] : memref<4x32x8xf32, #tpu.memory_space<vmem>>, vector<1x32x8xf32>
    %159 = vector.shape_cast %158 : vector<1x32x8xf32> to vector<32x8xf32>
    %cst_115 = arith.constant dense<0.000000e+00> : vector<8x8xf32>
    %160 = tpu.matmul %25, %159, %cst_115 {dimension_numbers = #tpu.dot_dimension_numbers<[1], [0], [0], [1], [0, 0, 1, 1], [], []>} : vector<8x32xf32>, vector<32x8xf32>, vector<8x8xf32> -> vector<8x8xf32>
    %c3_116 = arith.constant 3 : index
    %c0_117 = arith.constant 0 : index
    %c0_118 = arith.constant 0 : index
    %161 = vector.load %arg9[%c3_116, %c0_117, %c0_118] : memref<4x1x8xf32, #tpu.memory_space<vmem>>, vector<1x1x8xf32>
    %162 = vector.shape_cast %161 : vector<1x1x8xf32> to vector<1x8xf32>
    %163 = vector.broadcast %162 : vector<1x8xf32> to vector<8x8xf32>
    %164 = arith.addf %160, %163 : vector<8x8xf32>
    %cst_119 = arith.constant dense<0.000000e+00> : vector<8x8xf32>
    %165 = tpu.matmul %150, %157, %cst_119 {dimension_numbers = #tpu.dot_dimension_numbers<[1], [1], [0], [0], [0, 0, 1, 0], [], []>} : vector<8x8xf32>, vector<8x8xf32>, vector<8x8xf32> -> vector<8x8xf32>
    %cst_120 = arith.constant 0.353553385 : f32
    %166 = vector.broadcast %cst_120 : f32 to vector<8x8xf32>
    %167 = arith.mulf %165, %166 : vector<8x8xf32>
    %cst_121 = arith.constant dense<0xFF800000> : vector<8xf32>
    %168 = vector.multi_reduction <maximumf>, %167, %cst_121 [1] : vector<8x8xf32> to vector<8xf32>
    %169 = vector.shape_cast %168 : vector<8xf32> to vector<8x1xf32>
    %170 = vector.broadcast %169 : vector<8x1xf32> to vector<8x8xf32>
    %171 = arith.subf %167, %170 : vector<8x8xf32>
    %172 = math.exp %171 : vector<8x8xf32>
    %cst_122 = arith.constant dense<0.000000e+00> : vector<8xf32>
    %173 = vector.multi_reduction <add>, %172, %cst_122 [1] : vector<8x8xf32> to vector<8xf32>
    %174 = vector.shape_cast %173 : vector<8xf32> to vector<8x1xf32>
    %175 = tpu.reciprocal %174 {approx = true} : vector<8x1xf32> -> vector<8x1xf32>
    %176 = vector.broadcast %175 : vector<8x1xf32> to vector<8x8xf32>
    %177 = arith.mulf %172, %176 : vector<8x8xf32>
    %cst_123 = arith.constant dense<0.000000e+00> : vector<8x8xf32>
    %178 = tpu.matmul %177, %164, %cst_123 {dimension_numbers = #tpu.dot_dimension_numbers<[1], [0], [0], [1], [0, 0, 1, 1], [], []>} : vector<8x8xf32>, vector<8x8xf32>, vector<8x8xf32> -> vector<8x8xf32>
    %c3_124 = arith.constant 3 : index
    %c0_125 = arith.constant 0 : index
    %c0_126 = arith.constant 0 : index
    %179 = vector.load %arg10[%c3_124, %c0_125, %c0_126] : memref<4x8x32xf32, #tpu.memory_space<vmem>>, vector<1x8x32xf32>
    %180 = vector.shape_cast %179 : vector<1x8x32xf32> to vector<8x32xf32>
    %cst_127 = arith.constant dense<0.000000e+00> : vector<8x32xf32>
    %181 = tpu.matmul %178, %180, %cst_127 {dimension_numbers = #tpu.dot_dimension_numbers<[1], [0], [0], [1], [0, 0, 1, 1], [], []>} : vector<8x8xf32>, vector<8x32xf32>, vector<8x32xf32> -> vector<8x32xf32>
    %182 = arith.addf %143, %181 : vector<8x32xf32>
    %183 = arith.addf %1, %182 : vector<8x32xf32>
    %c0_128 = arith.constant 0 : index
    %c0_129 = arith.constant 0 : index
    %184 = vector.load %arg11[%c0_128, %c0_129] : memref<1x32xf32, #tpu.memory_space<vmem>>, vector<1x32xf32>
    %185 = vector.broadcast %184 : vector<1x32xf32> to vector<8x32xf32>
    %186 = arith.addf %183, %185 : vector<8x32xf32>
    %c0_130 = arith.constant 0 : index
    %c0_131 = arith.constant 0 : index
    %c0_132 = arith.constant 0 : index
    %187 = vector.load %arg12[%c0_130, %c0_131, %c0_132] : memref<1x8x32xf32, #tpu.memory_space<vmem>>, vector<1x8x32xf32>
    %188 = vector.shape_cast %187 : vector<1x8x32xf32> to vector<8x32xf32>
    %189 = vector.shape_cast %186 : vector<8x32xf32> to vector<1x8x32xf32>
    tpu.vector_store %arg12[%c0_130, %c0_131, %c0_132], %189 {strides = array<i32>} : memref<1x8x32xf32, #tpu.memory_space<vmem>>, vector<1x8x32xf32>,
    return
  }
  func.func @transform_0(%arg0: i32) -> (i32, i32, i32) {
    %c0_i32 = arith.constant 0 : i32
    %c0_i32_0 = arith.constant 0 : i32
    %c0_i32_1 = arith.constant 0 : i32
    return %arg0, %c0_i32, %c0_i32_0 : i32, i32, i32
  }
  func.func @transform_1(%arg0: i32) -> (i32, i32) {
    %c0_i32 = arith.constant 0 : i32
    %c0_i32_0 = arith.constant 0 : i32
    %c0_i32_1 = arith.constant 0 : i32
    return %c0_i32, %c0_i32_0 : i32, i32
  }
  func.func @transform_2(%arg0: i32) -> (i32, i32) {
    %c0_i32 = arith.constant 0 : i32
    %c0_i32_0 = arith.constant 0 : i32
    %c0_i32_1 = arith.constant 0 : i32
    return %c0_i32, %c0_i32_0 : i32, i32
  }
  func.func @transform_3(%arg0: i32) -> (i32, i32, i32) {
    %c0_i32 = arith.constant 0 : i32
    %c0_i32_0 = arith.constant 0 : i32
    %c0_i32_1 = arith.constant 0 : i32
    %c0_i32_2 = arith.constant 0 : i32
    return %c0_i32, %c0_i32_0, %c0_i32_1 : i32, i32, i32
  }
  func.func @transform_4(%arg0: i32) -> (i32, i32, i32) {
    %c0_i32 = arith.constant 0 : i32
    %c0_i32_0 = arith.constant 0 : i32
    %c0_i32_1 = arith.constant 0 : i32
    %c0_i32_2 = arith.constant 0 : i32
    return %c0_i32, %c0_i32_0, %c0_i32_1 : i32, i32, i32
  }
  func.func @transform_5(%arg0: i32) -> (i32, i32, i32) {
    %c0_i32 = arith.constant 0 : i32
    %c0_i32_0 = arith.constant 0 : i32
    %c0_i32_1 = arith.constant 0 : i32
    %c0_i32_2 = arith.constant 0 : i32
    return %c0_i32, %c0_i32_0, %c0_i32_1 : i32, i32, i32
  }
  func.func @transform_6(%arg0: i32) -> (i32, i32, i32) {
    %c0_i32 = arith.constant 0 : i32
    %c0_i32_0 = arith.constant 0 : i32
    %c0_i32_1 = arith.constant 0 : i32
    %c0_i32_2 = arith.constant 0 : i32
    return %c0_i32, %c0_i32_0, %c0_i32_1 : i32, i32, i32
  }
  func.func @transform_7(%arg0: i32) -> (i32, i32, i32) {
    %c0_i32 = arith.constant 0 : i32
    %c0_i32_0 = arith.constant 0 : i32
    %c0_i32_1 = arith.constant 0 : i32
    %c0_i32_2 = arith.constant 0 : i32
    return %c0_i32, %c0_i32_0, %c0_i32_1 : i32, i32, i32
  }
  func.func @transform_8(%arg0: i32) -> (i32, i32, i32) {
    %c0_i32 = arith.constant 0 : i32
    %c0_i32_0 = arith.constant 0 : i32
    %c0_i32_1 = arith.constant 0 : i32
    %c0_i32_2 = arith.constant 0 : i32
    return %c0_i32, %c0_i32_0, %c0_i32_1 : i32, i32, i32
  }
  func.func @transform_9(%arg0: i32) -> (i32, i32, i32) {
    %c0_i32 = arith.constant 0 : i32
    %c0_i32_0 = arith.constant 0 : i32
    %c0_i32_1 = arith.constant 0 : i32
    %c0_i32_2 = arith.constant 0 : i32
    return %c0_i32, %c0_i32_0, %c0_i32_1 : i32, i32, i32
  }
  func.func @transform_10(%arg0: i32) -> (i32, i32) {
    %c0_i32 = arith.constant 0 : i32
    %c0_i32_0 = arith.constant 0 : i32
    %c0_i32_1 = arith.constant 0 : i32
    return %c0_i32, %c0_i32_0 : i32, i32
  }
  func.func @transform_11(%arg0: i32) -> (i32, i32, i32) {
    %c0_i32 = arith.constant 0 : i32
    %c0_i32_0 = arith.constant 0 : i32
    %c0_i32_1 = arith.constant 0 : i32
    return %arg0, %c0_i32, %c0_i32_0 : i32, i32, i32
  }
}

module attributes {stable_mosaic.version = 11 : i64} {
  func.func @_attn_block_kernel(%arg0: i32, %arg1: memref<1x8x32xf32, #tpu.memory_space<vmem>>, %arg2: memref<1x8x32xf32, #tpu.memory_space<vmem>>, %arg3: memref<1x32xf32, #tpu.memory_space<vmem>>, %arg4: memref<1x32xf32, #tpu.memory_space<vmem>>, %arg5: memref<4x32x8xf32, #tpu.memory_space<vmem>>, %arg6: memref<4x1x8xf32, #tpu.memory_space<vmem>>, %arg7: memref<4x32x8xf32, #tpu.memory_space<vmem>>, %arg8: memref<4x1x8xf32, #tpu.memory_space<vmem>>, %arg9: memref<4x32x8xf32, #tpu.memory_space<vmem>>, %arg10: memref<4x1x8xf32, #tpu.memory_space<vmem>>, %arg11: memref<4x8x32xf32, #tpu.memory_space<vmem>>, %arg12: memref<1x32xf32, #tpu.memory_space<vmem>>, %arg13: memref<1x8x32xf32, #tpu.memory_space<vmem>>) attributes {dimension_semantics = [#tpu.dimension_semantics<parallel>], iteration_bounds = array<i64: 6>, scalar_prefetch = 0 : i64, scratch_operands = 0 : i64, tpu.core_type = #tpu.core_type<tc>, window_params = [{transform_indices = @transform_0, window_bounds = array<i64: 1, 8, 32>}, {transform_indices = @transform_1, window_bounds = array<i64: 1, 8, 32>}, {pipeline_mode = #tpu.pipeline_mode<synchronous>, transform_indices = @transform_2, window_bounds = array<i64: 1, 32>}, {pipeline_mode = #tpu.pipeline_mode<synchronous>, transform_indices = @transform_3, window_bounds = array<i64: 1, 32>}, {pipeline_mode = #tpu.pipeline_mode<synchronous>, transform_indices = @transform_4, window_bounds = array<i64: 4, 32, 8>}, {pipeline_mode = #tpu.pipeline_mode<synchronous>, transform_indices = @transform_5, window_bounds = array<i64: 4, 1, 8>}, {pipeline_mode = #tpu.pipeline_mode<synchronous>, transform_indices = @transform_6, window_bounds = array<i64: 4, 32, 8>}, {pipeline_mode = #tpu.pipeline_mode<synchronous>, transform_indices = @transform_7, window_bounds = array<i64: 4, 1, 8>}, {pipeline_mode = #tpu.pipeline_mode<synchronous>, transform_indices = @transform_8, window_bounds = array<i64: 4, 32, 8>}, {pipeline_mode = #tpu.pipeline_mode<synchronous>, transform_indices = @transform_9, window_bounds = array<i64: 4, 1, 8>}, {pipeline_mode = #tpu.pipeline_mode<synchronous>, transform_indices = @transform_10, window_bounds = array<i64: 4, 8, 32>}, {pipeline_mode = #tpu.pipeline_mode<synchronous>, transform_indices = @transform_11, window_bounds = array<i64: 1, 32>}, {transform_indices = @transform_12, window_bounds = array<i64: 1, 8, 32>}]} {
    %c0 = arith.constant 0 : index
    %c0_0 = arith.constant 0 : index
    %c0_1 = arith.constant 0 : index
    %0 = vector.load %arg1[%c0, %c0_0, %c0_1] : memref<1x8x32xf32, #tpu.memory_space<vmem>>, vector<1x8x32xf32>
    %1 = vector.shape_cast %0 : vector<1x8x32xf32> to vector<8x32xf32>
    %c0_2 = arith.constant 0 : index
    %c0_3 = arith.constant 0 : index
    %2 = vector.load %arg3[%c0_2, %c0_3] : memref<1x32xf32, #tpu.memory_space<vmem>>, vector<1x32xf32>
    %c0_4 = arith.constant 0 : index
    %c0_5 = arith.constant 0 : index
    %3 = vector.load %arg4[%c0_4, %c0_5] : memref<1x32xf32, #tpu.memory_space<vmem>>, vector<1x32xf32>
    %cst = arith.constant dense<0.000000e+00> : vector<8xf32>
    %4 = vector.multi_reduction <add>, %1, %cst [1] : vector<8x32xf32> to vector<8xf32>
    %5 = vector.shape_cast %4 : vector<8xf32> to vector<8x1xf32>
    %cst_6 = arith.constant 3.200000e+01 : f32
    %6 = vector.broadcast %cst_6 : f32 to vector<8x1xf32>
    %7 = arith.divf %5, %6 : vector<8x1xf32>
    %8 = vector.broadcast %7 : vector<8x1xf32> to vector<8x32xf32>
    %9 = arith.subf %1, %8 : vector<8x32xf32>
    %10 = arith.mulf %9, %9 : vector<8x32xf32>
    %cst_7 = arith.constant dense<0.000000e+00> : vector<8xf32>
    %11 = vector.multi_reduction <add>, %10, %cst_7 [1] : vector<8x32xf32> to vector<8xf32>
    %12 = vector.shape_cast %11 : vector<8xf32> to vector<8x1xf32>
    %cst_8 = arith.constant 3.200000e+01 : f32
    %13 = vector.broadcast %cst_8 : f32 to vector<8x1xf32>
    %14 = arith.divf %12, %13 : vector<8x1xf32>
    %15 = vector.broadcast %7 : vector<8x1xf32> to vector<8x32xf32>
    %16 = arith.subf %1, %15 : vector<8x32xf32>
    %cst_9 = arith.constant 9.99999974E-6 : f32
    %17 = vector.broadcast %cst_9 : f32 to vector<8x1xf32>
    %18 = arith.addf %14, %17 : vector<8x1xf32>
    %19 = math.rsqrt %18 : vector<8x1xf32>
    %20 = vector.broadcast %19 : vector<8x1xf32> to vector<8x32xf32>
    %21 = arith.mulf %16, %20 : vector<8x32xf32>
    %22 = vector.broadcast %2 : vector<1x32xf32> to vector<8x32xf32>
    %23 = arith.mulf %21, %22 : vector<8x32xf32>
    %24 = vector.broadcast %3 : vector<1x32xf32> to vector<8x32xf32>
    %25 = arith.addf %23, %24 : vector<8x32xf32>
    %c0_10 = arith.constant 0 : index
    %c0_11 = arith.constant 0 : index
    %c0_12 = arith.constant 0 : index
    %26 = vector.load %arg2[%c0_10, %c0_11, %c0_12] : memref<1x8x32xf32, #tpu.memory_space<vmem>>, vector<1x8x32xf32>
    %27 = vector.shape_cast %26 : vector<1x8x32xf32> to vector<8x32xf32>
    %cst_13 = arith.constant 0.000000e+00 : f32
    %28 = vector.broadcast %cst_13 : f32 to vector<8x32xf32>
    %c0_14 = arith.constant 0 : index
    %c0_15 = arith.constant 0 : index
    %c0_16 = arith.constant 0 : index
    %29 = vector.load %arg5[%c0_14, %c0_15, %c0_16] : memref<4x32x8xf32, #tpu.memory_space<vmem>>, vector<1x32x8xf32>
    %30 = vector.shape_cast %29 : vector<1x32x8xf32> to vector<32x8xf32>
    %cst_17 = arith.constant dense<0.000000e+00> : vector<8x8xf32>
    %31 = tpu.matmul %25, %30, %cst_17 {dimension_numbers = #tpu.dot_dimension_numbers<[1], [0], [0], [1], [0, 0, 1, 1], [], []>} : vector<8x32xf32>, vector<32x8xf32>, vector<8x8xf32> -> vector<8x8xf32>
    %c0_18 = arith.constant 0 : index
    %c0_19 = arith.constant 0 : index
    %c0_20 = arith.constant 0 : index
    %32 = vector.load %arg6[%c0_18, %c0_19, %c0_20] : memref<4x1x8xf32, #tpu.memory_space<vmem>>, vector<1x1x8xf32>
    %33 = vector.shape_cast %32 : vector<1x1x8xf32> to vector<1x8xf32>
    %34 = vector.broadcast %33 : vector<1x8xf32> to vector<8x8xf32>
    %35 = arith.addf %31, %34 : vector<8x8xf32>
    %c0_21 = arith.constant 0 : index
    %c0_22 = arith.constant 0 : index
    %c0_23 = arith.constant 0 : index
    %36 = vector.load %arg7[%c0_21, %c0_22, %c0_23] : memref<4x32x8xf32, #tpu.memory_space<vmem>>, vector<1x32x8xf32>
    %37 = vector.shape_cast %36 : vector<1x32x8xf32> to vector<32x8xf32>
    %cst_24 = arith.constant dense<0.000000e+00> : vector<8x8xf32>
    %38 = tpu.matmul %27, %37, %cst_24 {dimension_numbers = #tpu.dot_dimension_numbers<[1], [0], [0], [1], [0, 0, 1, 1], [], []>} : vector<8x32xf32>, vector<32x8xf32>, vector<8x8xf32> -> vector<8x8xf32>
    %c0_25 = arith.constant 0 : index
    %c0_26 = arith.constant 0 : index
    %c0_27 = arith.constant 0 : index
    %39 = vector.load %arg8[%c0_25, %c0_26, %c0_27] : memref<4x1x8xf32, #tpu.memory_space<vmem>>, vector<1x1x8xf32>
    %40 = vector.shape_cast %39 : vector<1x1x8xf32> to vector<1x8xf32>
    %41 = vector.broadcast %40 : vector<1x8xf32> to vector<8x8xf32>
    %42 = arith.addf %38, %41 : vector<8x8xf32>
    %c0_28 = arith.constant 0 : index
    %c0_29 = arith.constant 0 : index
    %c0_30 = arith.constant 0 : index
    %43 = vector.load %arg9[%c0_28, %c0_29, %c0_30] : memref<4x32x8xf32, #tpu.memory_space<vmem>>, vector<1x32x8xf32>
    %44 = vector.shape_cast %43 : vector<1x32x8xf32> to vector<32x8xf32>
    %cst_31 = arith.constant dense<0.000000e+00> : vector<8x8xf32>
    %45 = tpu.matmul %27, %44, %cst_31 {dimension_numbers = #tpu.dot_dimension_numbers<[1], [0], [0], [1], [0, 0, 1, 1], [], []>} : vector<8x32xf32>, vector<32x8xf32>, vector<8x8xf32> -> vector<8x8xf32>
    %c0_32 = arith.constant 0 : index
    %c0_33 = arith.constant 0 : index
    %c0_34 = arith.constant 0 : index
    %46 = vector.load %arg10[%c0_32, %c0_33, %c0_34] : memref<4x1x8xf32, #tpu.memory_space<vmem>>, vector<1x1x8xf32>
    %47 = vector.shape_cast %46 : vector<1x1x8xf32> to vector<1x8xf32>
    %48 = vector.broadcast %47 : vector<1x8xf32> to vector<8x8xf32>
    %49 = arith.addf %45, %48 : vector<8x8xf32>
    %cst_35 = arith.constant dense<0.000000e+00> : vector<8x8xf32>
    %50 = tpu.matmul %35, %42, %cst_35 {dimension_numbers = #tpu.dot_dimension_numbers<[1], [1], [0], [0], [0, 0, 1, 0], [], []>} : vector<8x8xf32>, vector<8x8xf32>, vector<8x8xf32> -> vector<8x8xf32>
    %cst_36 = arith.constant 0.353553385 : f32
    %51 = vector.broadcast %cst_36 : f32 to vector<8x8xf32>
    %52 = arith.mulf %50, %51 : vector<8x8xf32>
    %cst_37 = arith.constant dense<0xFF800000> : vector<8xf32>
    %53 = vector.multi_reduction <maximumf>, %52, %cst_37 [1] : vector<8x8xf32> to vector<8xf32>
    %54 = vector.shape_cast %53 : vector<8xf32> to vector<8x1xf32>
    %55 = vector.broadcast %54 : vector<8x1xf32> to vector<8x8xf32>
    %56 = arith.subf %52, %55 : vector<8x8xf32>
    %57 = math.exp %56 : vector<8x8xf32>
    %cst_38 = arith.constant dense<0.000000e+00> : vector<8xf32>
    %58 = vector.multi_reduction <add>, %57, %cst_38 [1] : vector<8x8xf32> to vector<8xf32>
    %59 = vector.shape_cast %58 : vector<8xf32> to vector<8x1xf32>
    %60 = tpu.reciprocal %59 {approx = true} : vector<8x1xf32> -> vector<8x1xf32>
    %61 = vector.broadcast %60 : vector<8x1xf32> to vector<8x8xf32>
    %62 = arith.mulf %57, %61 : vector<8x8xf32>
    %cst_39 = arith.constant dense<0.000000e+00> : vector<8x8xf32>
    %63 = tpu.matmul %62, %49, %cst_39 {dimension_numbers = #tpu.dot_dimension_numbers<[1], [0], [0], [1], [0, 0, 1, 1], [], []>} : vector<8x8xf32>, vector<8x8xf32>, vector<8x8xf32> -> vector<8x8xf32>
    %c0_40 = arith.constant 0 : index
    %c0_41 = arith.constant 0 : index
    %c0_42 = arith.constant 0 : index
    %64 = vector.load %arg11[%c0_40, %c0_41, %c0_42] : memref<4x8x32xf32, #tpu.memory_space<vmem>>, vector<1x8x32xf32>
    %65 = vector.shape_cast %64 : vector<1x8x32xf32> to vector<8x32xf32>
    %cst_43 = arith.constant dense<0.000000e+00> : vector<8x32xf32>
    %66 = tpu.matmul %63, %65, %cst_43 {dimension_numbers = #tpu.dot_dimension_numbers<[1], [0], [0], [1], [0, 0, 1, 1], [], []>} : vector<8x8xf32>, vector<8x32xf32>, vector<8x32xf32> -> vector<8x32xf32>
    %67 = arith.addf %28, %66 : vector<8x32xf32>
    %c1 = arith.constant 1 : index
    %c0_44 = arith.constant 0 : index
    %c0_45 = arith.constant 0 : index
    %68 = vector.load %arg5[%c1, %c0_44, %c0_45] : memref<4x32x8xf32, #tpu.memory_space<vmem>>, vector<1x32x8xf32>
    %69 = vector.shape_cast %68 : vector<1x32x8xf32> to vector<32x8xf32>
    %cst_46 = arith.constant dense<0.000000e+00> : vector<8x8xf32>
    %70 = tpu.matmul %25, %69, %cst_46 {dimension_numbers = #tpu.dot_dimension_numbers<[1], [0], [0], [1], [0, 0, 1, 1], [], []>} : vector<8x32xf32>, vector<32x8xf32>, vector<8x8xf32> -> vector<8x8xf32>
    %c1_47 = arith.constant 1 : index
    %c0_48 = arith.constant 0 : index
    %c0_49 = arith.constant 0 : index
    %71 = vector.load %arg6[%c1_47, %c0_48, %c0_49] : memref<4x1x8xf32, #tpu.memory_space<vmem>>, vector<1x1x8xf32>
    %72 = vector.shape_cast %71 : vector<1x1x8xf32> to vector<1x8xf32>
    %73 = vector.broadcast %72 : vector<1x8xf32> to vector<8x8xf32>
    %74 = arith.addf %70, %73 : vector<8x8xf32>
    %c1_50 = arith.constant 1 : index
    %c0_51 = arith.constant 0 : index
    %c0_52 = arith.constant 0 : index
    %75 = vector.load %arg7[%c1_50, %c0_51, %c0_52] : memref<4x32x8xf32, #tpu.memory_space<vmem>>, vector<1x32x8xf32>
    %76 = vector.shape_cast %75 : vector<1x32x8xf32> to vector<32x8xf32>
    %cst_53 = arith.constant dense<0.000000e+00> : vector<8x8xf32>
    %77 = tpu.matmul %27, %76, %cst_53 {dimension_numbers = #tpu.dot_dimension_numbers<[1], [0], [0], [1], [0, 0, 1, 1], [], []>} : vector<8x32xf32>, vector<32x8xf32>, vector<8x8xf32> -> vector<8x8xf32>
    %c1_54 = arith.constant 1 : index
    %c0_55 = arith.constant 0 : index
    %c0_56 = arith.constant 0 : index
    %78 = vector.load %arg8[%c1_54, %c0_55, %c0_56] : memref<4x1x8xf32, #tpu.memory_space<vmem>>, vector<1x1x8xf32>
    %79 = vector.shape_cast %78 : vector<1x1x8xf32> to vector<1x8xf32>
    %80 = vector.broadcast %79 : vector<1x8xf32> to vector<8x8xf32>
    %81 = arith.addf %77, %80 : vector<8x8xf32>
    %c1_57 = arith.constant 1 : index
    %c0_58 = arith.constant 0 : index
    %c0_59 = arith.constant 0 : index
    %82 = vector.load %arg9[%c1_57, %c0_58, %c0_59] : memref<4x32x8xf32, #tpu.memory_space<vmem>>, vector<1x32x8xf32>
    %83 = vector.shape_cast %82 : vector<1x32x8xf32> to vector<32x8xf32>
    %cst_60 = arith.constant dense<0.000000e+00> : vector<8x8xf32>
    %84 = tpu.matmul %27, %83, %cst_60 {dimension_numbers = #tpu.dot_dimension_numbers<[1], [0], [0], [1], [0, 0, 1, 1], [], []>} : vector<8x32xf32>, vector<32x8xf32>, vector<8x8xf32> -> vector<8x8xf32>
    %c1_61 = arith.constant 1 : index
    %c0_62 = arith.constant 0 : index
    %c0_63 = arith.constant 0 : index
    %85 = vector.load %arg10[%c1_61, %c0_62, %c0_63] : memref<4x1x8xf32, #tpu.memory_space<vmem>>, vector<1x1x8xf32>
    %86 = vector.shape_cast %85 : vector<1x1x8xf32> to vector<1x8xf32>
    %87 = vector.broadcast %86 : vector<1x8xf32> to vector<8x8xf32>
    %88 = arith.addf %84, %87 : vector<8x8xf32>
    %cst_64 = arith.constant dense<0.000000e+00> : vector<8x8xf32>
    %89 = tpu.matmul %74, %81, %cst_64 {dimension_numbers = #tpu.dot_dimension_numbers<[1], [1], [0], [0], [0, 0, 1, 0], [], []>} : vector<8x8xf32>, vector<8x8xf32>, vector<8x8xf32> -> vector<8x8xf32>
    %cst_65 = arith.constant 0.353553385 : f32
    %90 = vector.broadcast %cst_65 : f32 to vector<8x8xf32>
    %91 = arith.mulf %89, %90 : vector<8x8xf32>
    %cst_66 = arith.constant dense<0xFF800000> : vector<8xf32>
    %92 = vector.multi_reduction <maximumf>, %91, %cst_66 [1] : vector<8x8xf32> to vector<8xf32>
    %93 = vector.shape_cast %92 : vector<8xf32> to vector<8x1xf32>
    %94 = vector.broadcast %93 : vector<8x1xf32> to vector<8x8xf32>
    %95 = arith.subf %91, %94 : vector<8x8xf32>
    %96 = math.exp %95 : vector<8x8xf32>
    %cst_67 = arith.constant dense<0.000000e+00> : vector<8xf32>
    %97 = vector.multi_reduction <add>, %96, %cst_67 [1] : vector<8x8xf32> to vector<8xf32>
    %98 = vector.shape_cast %97 : vector<8xf32> to vector<8x1xf32>
    %99 = tpu.reciprocal %98 {approx = true} : vector<8x1xf32> -> vector<8x1xf32>
    %100 = vector.broadcast %99 : vector<8x1xf32> to vector<8x8xf32>
    %101 = arith.mulf %96, %100 : vector<8x8xf32>
    %cst_68 = arith.constant dense<0.000000e+00> : vector<8x8xf32>
    %102 = tpu.matmul %101, %88, %cst_68 {dimension_numbers = #tpu.dot_dimension_numbers<[1], [0], [0], [1], [0, 0, 1, 1], [], []>} : vector<8x8xf32>, vector<8x8xf32>, vector<8x8xf32> -> vector<8x8xf32>
    %c1_69 = arith.constant 1 : index
    %c0_70 = arith.constant 0 : index
    %c0_71 = arith.constant 0 : index
    %103 = vector.load %arg11[%c1_69, %c0_70, %c0_71] : memref<4x8x32xf32, #tpu.memory_space<vmem>>, vector<1x8x32xf32>
    %104 = vector.shape_cast %103 : vector<1x8x32xf32> to vector<8x32xf32>
    %cst_72 = arith.constant dense<0.000000e+00> : vector<8x32xf32>
    %105 = tpu.matmul %102, %104, %cst_72 {dimension_numbers = #tpu.dot_dimension_numbers<[1], [0], [0], [1], [0, 0, 1, 1], [], []>} : vector<8x8xf32>, vector<8x32xf32>, vector<8x32xf32> -> vector<8x32xf32>
    %106 = arith.addf %67, %105 : vector<8x32xf32>
    %c2 = arith.constant 2 : index
    %c0_73 = arith.constant 0 : index
    %c0_74 = arith.constant 0 : index
    %107 = vector.load %arg5[%c2, %c0_73, %c0_74] : memref<4x32x8xf32, #tpu.memory_space<vmem>>, vector<1x32x8xf32>
    %108 = vector.shape_cast %107 : vector<1x32x8xf32> to vector<32x8xf32>
    %cst_75 = arith.constant dense<0.000000e+00> : vector<8x8xf32>
    %109 = tpu.matmul %25, %108, %cst_75 {dimension_numbers = #tpu.dot_dimension_numbers<[1], [0], [0], [1], [0, 0, 1, 1], [], []>} : vector<8x32xf32>, vector<32x8xf32>, vector<8x8xf32> -> vector<8x8xf32>
    %c2_76 = arith.constant 2 : index
    %c0_77 = arith.constant 0 : index
    %c0_78 = arith.constant 0 : index
    %110 = vector.load %arg6[%c2_76, %c0_77, %c0_78] : memref<4x1x8xf32, #tpu.memory_space<vmem>>, vector<1x1x8xf32>
    %111 = vector.shape_cast %110 : vector<1x1x8xf32> to vector<1x8xf32>
    %112 = vector.broadcast %111 : vector<1x8xf32> to vector<8x8xf32>
    %113 = arith.addf %109, %112 : vector<8x8xf32>
    %c2_79 = arith.constant 2 : index
    %c0_80 = arith.constant 0 : index
    %c0_81 = arith.constant 0 : index
    %114 = vector.load %arg7[%c2_79, %c0_80, %c0_81] : memref<4x32x8xf32, #tpu.memory_space<vmem>>, vector<1x32x8xf32>
    %115 = vector.shape_cast %114 : vector<1x32x8xf32> to vector<32x8xf32>
    %cst_82 = arith.constant dense<0.000000e+00> : vector<8x8xf32>
    %116 = tpu.matmul %27, %115, %cst_82 {dimension_numbers = #tpu.dot_dimension_numbers<[1], [0], [0], [1], [0, 0, 1, 1], [], []>} : vector<8x32xf32>, vector<32x8xf32>, vector<8x8xf32> -> vector<8x8xf32>
    %c2_83 = arith.constant 2 : index
    %c0_84 = arith.constant 0 : index
    %c0_85 = arith.constant 0 : index
    %117 = vector.load %arg8[%c2_83, %c0_84, %c0_85] : memref<4x1x8xf32, #tpu.memory_space<vmem>>, vector<1x1x8xf32>
    %118 = vector.shape_cast %117 : vector<1x1x8xf32> to vector<1x8xf32>
    %119 = vector.broadcast %118 : vector<1x8xf32> to vector<8x8xf32>
    %120 = arith.addf %116, %119 : vector<8x8xf32>
    %c2_86 = arith.constant 2 : index
    %c0_87 = arith.constant 0 : index
    %c0_88 = arith.constant 0 : index
    %121 = vector.load %arg9[%c2_86, %c0_87, %c0_88] : memref<4x32x8xf32, #tpu.memory_space<vmem>>, vector<1x32x8xf32>
    %122 = vector.shape_cast %121 : vector<1x32x8xf32> to vector<32x8xf32>
    %cst_89 = arith.constant dense<0.000000e+00> : vector<8x8xf32>
    %123 = tpu.matmul %27, %122, %cst_89 {dimension_numbers = #tpu.dot_dimension_numbers<[1], [0], [0], [1], [0, 0, 1, 1], [], []>} : vector<8x32xf32>, vector<32x8xf32>, vector<8x8xf32> -> vector<8x8xf32>
    %c2_90 = arith.constant 2 : index
    %c0_91 = arith.constant 0 : index
    %c0_92 = arith.constant 0 : index
    %124 = vector.load %arg10[%c2_90, %c0_91, %c0_92] : memref<4x1x8xf32, #tpu.memory_space<vmem>>, vector<1x1x8xf32>
    %125 = vector.shape_cast %124 : vector<1x1x8xf32> to vector<1x8xf32>
    %126 = vector.broadcast %125 : vector<1x8xf32> to vector<8x8xf32>
    %127 = arith.addf %123, %126 : vector<8x8xf32>
    %cst_93 = arith.constant dense<0.000000e+00> : vector<8x8xf32>
    %128 = tpu.matmul %113, %120, %cst_93 {dimension_numbers = #tpu.dot_dimension_numbers<[1], [1], [0], [0], [0, 0, 1, 0], [], []>} : vector<8x8xf32>, vector<8x8xf32>, vector<8x8xf32> -> vector<8x8xf32>
    %cst_94 = arith.constant 0.353553385 : f32
    %129 = vector.broadcast %cst_94 : f32 to vector<8x8xf32>
    %130 = arith.mulf %128, %129 : vector<8x8xf32>
    %cst_95 = arith.constant dense<0xFF800000> : vector<8xf32>
    %131 = vector.multi_reduction <maximumf>, %130, %cst_95 [1] : vector<8x8xf32> to vector<8xf32>
    %132 = vector.shape_cast %131 : vector<8xf32> to vector<8x1xf32>
    %133 = vector.broadcast %132 : vector<8x1xf32> to vector<8x8xf32>
    %134 = arith.subf %130, %133 : vector<8x8xf32>
    %135 = math.exp %134 : vector<8x8xf32>
    %cst_96 = arith.constant dense<0.000000e+00> : vector<8xf32>
    %136 = vector.multi_reduction <add>, %135, %cst_96 [1] : vector<8x8xf32> to vector<8xf32>
    %137 = vector.shape_cast %136 : vector<8xf32> to vector<8x1xf32>
    %138 = tpu.reciprocal %137 {approx = true} : vector<8x1xf32> -> vector<8x1xf32>
    %139 = vector.broadcast %138 : vector<8x1xf32> to vector<8x8xf32>
    %140 = arith.mulf %135, %139 : vector<8x8xf32>
    %cst_97 = arith.constant dense<0.000000e+00> : vector<8x8xf32>
    %141 = tpu.matmul %140, %127, %cst_97 {dimension_numbers = #tpu.dot_dimension_numbers<[1], [0], [0], [1], [0, 0, 1, 1], [], []>} : vector<8x8xf32>, vector<8x8xf32>, vector<8x8xf32> -> vector<8x8xf32>
    %c2_98 = arith.constant 2 : index
    %c0_99 = arith.constant 0 : index
    %c0_100 = arith.constant 0 : index
    %142 = vector.load %arg11[%c2_98, %c0_99, %c0_100] : memref<4x8x32xf32, #tpu.memory_space<vmem>>, vector<1x8x32xf32>
    %143 = vector.shape_cast %142 : vector<1x8x32xf32> to vector<8x32xf32>
    %cst_101 = arith.constant dense<0.000000e+00> : vector<8x32xf32>
    %144 = tpu.matmul %141, %143, %cst_101 {dimension_numbers = #tpu.dot_dimension_numbers<[1], [0], [0], [1], [0, 0, 1, 1], [], []>} : vector<8x8xf32>, vector<8x32xf32>, vector<8x32xf32> -> vector<8x32xf32>
    %145 = arith.addf %106, %144 : vector<8x32xf32>
    %c3 = arith.constant 3 : index
    %c0_102 = arith.constant 0 : index
    %c0_103 = arith.constant 0 : index
    %146 = vector.load %arg5[%c3, %c0_102, %c0_103] : memref<4x32x8xf32, #tpu.memory_space<vmem>>, vector<1x32x8xf32>
    %147 = vector.shape_cast %146 : vector<1x32x8xf32> to vector<32x8xf32>
    %cst_104 = arith.constant dense<0.000000e+00> : vector<8x8xf32>
    %148 = tpu.matmul %25, %147, %cst_104 {dimension_numbers = #tpu.dot_dimension_numbers<[1], [0], [0], [1], [0, 0, 1, 1], [], []>} : vector<8x32xf32>, vector<32x8xf32>, vector<8x8xf32> -> vector<8x8xf32>
    %c3_105 = arith.constant 3 : index
    %c0_106 = arith.constant 0 : index
    %c0_107 = arith.constant 0 : index
    %149 = vector.load %arg6[%c3_105, %c0_106, %c0_107] : memref<4x1x8xf32, #tpu.memory_space<vmem>>, vector<1x1x8xf32>
    %150 = vector.shape_cast %149 : vector<1x1x8xf32> to vector<1x8xf32>
    %151 = vector.broadcast %150 : vector<1x8xf32> to vector<8x8xf32>
    %152 = arith.addf %148, %151 : vector<8x8xf32>
    %c3_108 = arith.constant 3 : index
    %c0_109 = arith.constant 0 : index
    %c0_110 = arith.constant 0 : index
    %153 = vector.load %arg7[%c3_108, %c0_109, %c0_110] : memref<4x32x8xf32, #tpu.memory_space<vmem>>, vector<1x32x8xf32>
    %154 = vector.shape_cast %153 : vector<1x32x8xf32> to vector<32x8xf32>
    %cst_111 = arith.constant dense<0.000000e+00> : vector<8x8xf32>
    %155 = tpu.matmul %27, %154, %cst_111 {dimension_numbers = #tpu.dot_dimension_numbers<[1], [0], [0], [1], [0, 0, 1, 1], [], []>} : vector<8x32xf32>, vector<32x8xf32>, vector<8x8xf32> -> vector<8x8xf32>
    %c3_112 = arith.constant 3 : index
    %c0_113 = arith.constant 0 : index
    %c0_114 = arith.constant 0 : index
    %156 = vector.load %arg8[%c3_112, %c0_113, %c0_114] : memref<4x1x8xf32, #tpu.memory_space<vmem>>, vector<1x1x8xf32>
    %157 = vector.shape_cast %156 : vector<1x1x8xf32> to vector<1x8xf32>
    %158 = vector.broadcast %157 : vector<1x8xf32> to vector<8x8xf32>
    %159 = arith.addf %155, %158 : vector<8x8xf32>
    %c3_115 = arith.constant 3 : index
    %c0_116 = arith.constant 0 : index
    %c0_117 = arith.constant 0 : index
    %160 = vector.load %arg9[%c3_115, %c0_116, %c0_117] : memref<4x32x8xf32, #tpu.memory_space<vmem>>, vector<1x32x8xf32>
    %161 = vector.shape_cast %160 : vector<1x32x8xf32> to vector<32x8xf32>
    %cst_118 = arith.constant dense<0.000000e+00> : vector<8x8xf32>
    %162 = tpu.matmul %27, %161, %cst_118 {dimension_numbers = #tpu.dot_dimension_numbers<[1], [0], [0], [1], [0, 0, 1, 1], [], []>} : vector<8x32xf32>, vector<32x8xf32>, vector<8x8xf32> -> vector<8x8xf32>
    %c3_119 = arith.constant 3 : index
    %c0_120 = arith.constant 0 : index
    %c0_121 = arith.constant 0 : index
    %163 = vector.load %arg10[%c3_119, %c0_120, %c0_121] : memref<4x1x8xf32, #tpu.memory_space<vmem>>, vector<1x1x8xf32>
    %164 = vector.shape_cast %163 : vector<1x1x8xf32> to vector<1x8xf32>
    %165 = vector.broadcast %164 : vector<1x8xf32> to vector<8x8xf32>
    %166 = arith.addf %162, %165 : vector<8x8xf32>
    %cst_122 = arith.constant dense<0.000000e+00> : vector<8x8xf32>
    %167 = tpu.matmul %152, %159, %cst_122 {dimension_numbers = #tpu.dot_dimension_numbers<[1], [1], [0], [0], [0, 0, 1, 0], [], []>} : vector<8x8xf32>, vector<8x8xf32>, vector<8x8xf32> -> vector<8x8xf32>
    %cst_123 = arith.constant 0.353553385 : f32
    %168 = vector.broadcast %cst_123 : f32 to vector<8x8xf32>
    %169 = arith.mulf %167, %168 : vector<8x8xf32>
    %cst_124 = arith.constant dense<0xFF800000> : vector<8xf32>
    %170 = vector.multi_reduction <maximumf>, %169, %cst_124 [1] : vector<8x8xf32> to vector<8xf32>
    %171 = vector.shape_cast %170 : vector<8xf32> to vector<8x1xf32>
    %172 = vector.broadcast %171 : vector<8x1xf32> to vector<8x8xf32>
    %173 = arith.subf %169, %172 : vector<8x8xf32>
    %174 = math.exp %173 : vector<8x8xf32>
    %cst_125 = arith.constant dense<0.000000e+00> : vector<8xf32>
    %175 = vector.multi_reduction <add>, %174, %cst_125 [1] : vector<8x8xf32> to vector<8xf32>
    %176 = vector.shape_cast %175 : vector<8xf32> to vector<8x1xf32>
    %177 = tpu.reciprocal %176 {approx = true} : vector<8x1xf32> -> vector<8x1xf32>
    %178 = vector.broadcast %177 : vector<8x1xf32> to vector<8x8xf32>
    %179 = arith.mulf %174, %178 : vector<8x8xf32>
    %cst_126 = arith.constant dense<0.000000e+00> : vector<8x8xf32>
    %180 = tpu.matmul %179, %166, %cst_126 {dimension_numbers = #tpu.dot_dimension_numbers<[1], [0], [0], [1], [0, 0, 1, 1], [], []>} : vector<8x8xf32>, vector<8x8xf32>, vector<8x8xf32> -> vector<8x8xf32>
    %c3_127 = arith.constant 3 : index
    %c0_128 = arith.constant 0 : index
    %c0_129 = arith.constant 0 : index
    %181 = vector.load %arg11[%c3_127, %c0_128, %c0_129] : memref<4x8x32xf32, #tpu.memory_space<vmem>>, vector<1x8x32xf32>
    %182 = vector.shape_cast %181 : vector<1x8x32xf32> to vector<8x32xf32>
    %cst_130 = arith.constant dense<0.000000e+00> : vector<8x32xf32>
    %183 = tpu.matmul %180, %182, %cst_130 {dimension_numbers = #tpu.dot_dimension_numbers<[1], [0], [0], [1], [0, 0, 1, 1], [], []>} : vector<8x8xf32>, vector<8x32xf32>, vector<8x32xf32> -> vector<8x32xf32>
    %184 = arith.addf %145, %183 : vector<8x32xf32>
    %185 = arith.addf %1, %184 : vector<8x32xf32>
    %c0_131 = arith.constant 0 : index
    %c0_132 = arith.constant 0 : index
    %186 = vector.load %arg12[%c0_131, %c0_132] : memref<1x32xf32, #tpu.memory_space<vmem>>, vector<1x32xf32>
    %187 = vector.broadcast %186 : vector<1x32xf32> to vector<8x32xf32>
    %188 = arith.addf %185, %187 : vector<8x32xf32>
    %c0_133 = arith.constant 0 : index
    %c0_134 = arith.constant 0 : index
    %c0_135 = arith.constant 0 : index
    %189 = vector.load %arg13[%c0_133, %c0_134, %c0_135] : memref<1x8x32xf32, #tpu.memory_space<vmem>>, vector<1x8x32xf32>
    %190 = vector.shape_cast %189 : vector<1x8x32xf32> to vector<8x32xf32>
    %191 = vector.shape_cast %188 : vector<8x32xf32> to vector<1x8x32xf32>
    tpu.vector_store %arg13[%c0_133, %c0_134, %c0_135], %191 {strides = array<i32>} : memref<1x8x32xf32, #tpu.memory_space<vmem>>, vector<1x8x32xf32>,
    return
  }
  func.func @transform_0(%arg0: i32) -> (i32, i32, i32) {
    %c0_i32 = arith.constant 0 : i32
    %c0_i32_0 = arith.constant 0 : i32
    %c0_i32_1 = arith.constant 0 : i32
    return %arg0, %c0_i32, %c0_i32_0 : i32, i32, i32
  }
  func.func @transform_1(%arg0: i32) -> (i32, i32, i32) {
    %c0_i32 = arith.constant 0 : i32
    %c0_i32_0 = arith.constant 0 : i32
    %c0_i32_1 = arith.constant 0 : i32
    return %arg0, %c0_i32, %c0_i32_0 : i32, i32, i32
  }
  func.func @transform_2(%arg0: i32) -> (i32, i32) {
    %c0_i32 = arith.constant 0 : i32
    %c0_i32_0 = arith.constant 0 : i32
    %c0_i32_1 = arith.constant 0 : i32
    return %c0_i32, %c0_i32_0 : i32, i32
  }
  func.func @transform_3(%arg0: i32) -> (i32, i32) {
    %c0_i32 = arith.constant 0 : i32
    %c0_i32_0 = arith.constant 0 : i32
    %c0_i32_1 = arith.constant 0 : i32
    return %c0_i32, %c0_i32_0 : i32, i32
  }
  func.func @transform_4(%arg0: i32) -> (i32, i32, i32) {
    %c0_i32 = arith.constant 0 : i32
    %c0_i32_0 = arith.constant 0 : i32
    %c0_i32_1 = arith.constant 0 : i32
    %c0_i32_2 = arith.constant 0 : i32
    return %c0_i32, %c0_i32_0, %c0_i32_1 : i32, i32, i32
  }
  func.func @transform_5(%arg0: i32) -> (i32, i32, i32) {
    %c0_i32 = arith.constant 0 : i32
    %c0_i32_0 = arith.constant 0 : i32
    %c0_i32_1 = arith.constant 0 : i32
    %c0_i32_2 = arith.constant 0 : i32
    return %c0_i32, %c0_i32_0, %c0_i32_1 : i32, i32, i32
  }
  func.func @transform_6(%arg0: i32) -> (i32, i32, i32) {
    %c0_i32 = arith.constant 0 : i32
    %c0_i32_0 = arith.constant 0 : i32
    %c0_i32_1 = arith.constant 0 : i32
    %c0_i32_2 = arith.constant 0 : i32
    return %c0_i32, %c0_i32_0, %c0_i32_1 : i32, i32, i32
  }
  func.func @transform_7(%arg0: i32) -> (i32, i32, i32) {
    %c0_i32 = arith.constant 0 : i32
    %c0_i32_0 = arith.constant 0 : i32
    %c0_i32_1 = arith.constant 0 : i32
    %c0_i32_2 = arith.constant 0 : i32
    return %c0_i32, %c0_i32_0, %c0_i32_1 : i32, i32, i32
  }
  func.func @transform_8(%arg0: i32) -> (i32, i32, i32) {
    %c0_i32 = arith.constant 0 : i32
    %c0_i32_0 = arith.constant 0 : i32
    %c0_i32_1 = arith.constant 0 : i32
    %c0_i32_2 = arith.constant 0 : i32
    return %c0_i32, %c0_i32_0, %c0_i32_1 : i32, i32, i32
  }
  func.func @transform_9(%arg0: i32) -> (i32, i32, i32) {
    %c0_i32 = arith.constant 0 : i32
    %c0_i32_0 = arith.constant 0 : i32
    %c0_i32_1 = arith.constant 0 : i32
    %c0_i32_2 = arith.constant 0 : i32
    return %c0_i32, %c0_i32_0, %c0_i32_1 : i32, i32, i32
  }
  func.func @transform_10(%arg0: i32) -> (i32, i32, i32) {
    %c0_i32 = arith.constant 0 : i32
    %c0_i32_0 = arith.constant 0 : i32
    %c0_i32_1 = arith.constant 0 : i32
    %c0_i32_2 = arith.constant 0 : i32
    return %c0_i32, %c0_i32_0, %c0_i32_1 : i32, i32, i32
  }
  func.func @transform_11(%arg0: i32) -> (i32, i32) {
    %c0_i32 = arith.constant 0 : i32
    %c0_i32_0 = arith.constant 0 : i32
    %c0_i32_1 = arith.constant 0 : i32
    return %c0_i32, %c0_i32_0 : i32, i32
  }
  func.func @transform_12(%arg0: i32) -> (i32, i32, i32) {
    %c0_i32 = arith.constant 0 : i32
    %c0_i32_0 = arith.constant 0 : i32
    %c0_i32_1 = arith.constant 0 : i32
    return %arg0, %c0_i32, %c0_i32_0 : i32, i32, i32
  }
}

module attributes {stable_mosaic.version = 11 : i64} {
  func.func @_ffn_block_kernel(%arg0: i32, %arg1: memref<1x8x32xf32, #tpu.memory_space<vmem>>, %arg2: memref<1x32xf32, #tpu.memory_space<vmem>>, %arg3: memref<1x32xf32, #tpu.memory_space<vmem>>, %arg4: memref<32x64xf32, #tpu.memory_space<vmem>>, %arg5: memref<1x64xf32, #tpu.memory_space<vmem>>, %arg6: memref<64x32xf32, #tpu.memory_space<vmem>>, %arg7: memref<1x32xf32, #tpu.memory_space<vmem>>, %arg8: memref<1x8x32xf32, #tpu.memory_space<vmem>>) attributes {dimension_semantics = [#tpu.dimension_semantics<parallel>], iteration_bounds = array<i64: 6>, scalar_prefetch = 0 : i64, scratch_operands = 0 : i64, tpu.core_type = #tpu.core_type<tc>, window_params = [{transform_indices = @transform_0, window_bounds = array<i64: 1, 8, 32>}, {pipeline_mode = #tpu.pipeline_mode<synchronous>, transform_indices = @transform_1, window_bounds = array<i64: 1, 32>}, {pipeline_mode = #tpu.pipeline_mode<synchronous>, transform_indices = @transform_2, window_bounds = array<i64: 1, 32>}, {pipeline_mode = #tpu.pipeline_mode<synchronous>, transform_indices = @transform_3, window_bounds = array<i64: 32, 64>}, {pipeline_mode = #tpu.pipeline_mode<synchronous>, transform_indices = @transform_4, window_bounds = array<i64: 1, 64>}, {pipeline_mode = #tpu.pipeline_mode<synchronous>, transform_indices = @transform_5, window_bounds = array<i64: 64, 32>}, {pipeline_mode = #tpu.pipeline_mode<synchronous>, transform_indices = @transform_6, window_bounds = array<i64: 1, 32>}, {transform_indices = @transform_7, window_bounds = array<i64: 1, 8, 32>}]} {
    %c0 = arith.constant 0 : index
    %c0_0 = arith.constant 0 : index
    %c0_1 = arith.constant 0 : index
    %0 = vector.load %arg1[%c0, %c0_0, %c0_1] : memref<1x8x32xf32, #tpu.memory_space<vmem>>, vector<1x8x32xf32>
    %1 = vector.shape_cast %0 : vector<1x8x32xf32> to vector<8x32xf32>
    %c0_2 = arith.constant 0 : index
    %c0_3 = arith.constant 0 : index
    %2 = vector.load %arg2[%c0_2, %c0_3] : memref<1x32xf32, #tpu.memory_space<vmem>>, vector<1x32xf32>
    %c0_4 = arith.constant 0 : index
    %c0_5 = arith.constant 0 : index
    %3 = vector.load %arg3[%c0_4, %c0_5] : memref<1x32xf32, #tpu.memory_space<vmem>>, vector<1x32xf32>
    %cst = arith.constant dense<0.000000e+00> : vector<8xf32>
    %4 = vector.multi_reduction <add>, %1, %cst [1] : vector<8x32xf32> to vector<8xf32>
    %5 = vector.shape_cast %4 : vector<8xf32> to vector<8x1xf32>
    %cst_6 = arith.constant 3.200000e+01 : f32
    %6 = vector.broadcast %cst_6 : f32 to vector<8x1xf32>
    %7 = arith.divf %5, %6 : vector<8x1xf32>
    %8 = vector.broadcast %7 : vector<8x1xf32> to vector<8x32xf32>
    %9 = arith.subf %1, %8 : vector<8x32xf32>
    %10 = arith.mulf %9, %9 : vector<8x32xf32>
    %cst_7 = arith.constant dense<0.000000e+00> : vector<8xf32>
    %11 = vector.multi_reduction <add>, %10, %cst_7 [1] : vector<8x32xf32> to vector<8xf32>
    %12 = vector.shape_cast %11 : vector<8xf32> to vector<8x1xf32>
    %cst_8 = arith.constant 3.200000e+01 : f32
    %13 = vector.broadcast %cst_8 : f32 to vector<8x1xf32>
    %14 = arith.divf %12, %13 : vector<8x1xf32>
    %15 = vector.broadcast %7 : vector<8x1xf32> to vector<8x32xf32>
    %16 = arith.subf %1, %15 : vector<8x32xf32>
    %cst_9 = arith.constant 9.99999974E-6 : f32
    %17 = vector.broadcast %cst_9 : f32 to vector<8x1xf32>
    %18 = arith.addf %14, %17 : vector<8x1xf32>
    %19 = math.rsqrt %18 : vector<8x1xf32>
    %20 = vector.broadcast %19 : vector<8x1xf32> to vector<8x32xf32>
    %21 = arith.mulf %16, %20 : vector<8x32xf32>
    %22 = vector.broadcast %2 : vector<1x32xf32> to vector<8x32xf32>
    %23 = arith.mulf %21, %22 : vector<8x32xf32>
    %24 = vector.broadcast %3 : vector<1x32xf32> to vector<8x32xf32>
    %25 = arith.addf %23, %24 : vector<8x32xf32>
    %c0_10 = arith.constant 0 : index
    %c0_11 = arith.constant 0 : index
    %26 = vector.load %arg4[%c0_10, %c0_11] : memref<32x64xf32, #tpu.memory_space<vmem>>, vector<32x64xf32>
    %cst_12 = arith.constant dense<0.000000e+00> : vector<8x64xf32>
    %27 = tpu.matmul %25, %26, %cst_12 {dimension_numbers = #tpu.dot_dimension_numbers<[1], [0], [0], [1], [0, 0, 1, 1], [], []>} : vector<8x32xf32>, vector<32x64xf32>, vector<8x64xf32> -> vector<8x64xf32>
    %c0_13 = arith.constant 0 : index
    %c0_14 = arith.constant 0 : index
    %28 = vector.load %arg5[%c0_13, %c0_14] : memref<1x64xf32, #tpu.memory_space<vmem>>, vector<1x64xf32>
    %29 = vector.broadcast %28 : vector<1x64xf32> to vector<8x64xf32>
    %30 = arith.addf %27, %29 : vector<8x64xf32>
    %cst_15 = arith.constant 0.000000e+00 : f32
    %31 = vector.broadcast %cst_15 : f32 to vector<8x64xf32>
    %32 = arith.maximumf %30, %31 : vector<8x64xf32>
    %c0_16 = arith.constant 0 : index
    %c0_17 = arith.constant 0 : index
    %33 = vector.load %arg6[%c0_16, %c0_17] : memref<64x32xf32, #tpu.memory_space<vmem>>, vector<64x32xf32>
    %cst_18 = arith.constant dense<0.000000e+00> : vector<8x32xf32>
    %34 = tpu.matmul %32, %33, %cst_18 {dimension_numbers = #tpu.dot_dimension_numbers<[1], [0], [0], [1], [0, 0, 1, 1], [], []>} : vector<8x64xf32>, vector<64x32xf32>, vector<8x32xf32> -> vector<8x32xf32>
    %35 = arith.addf %1, %34 : vector<8x32xf32>
    %c0_19 = arith.constant 0 : index
    %c0_20 = arith.constant 0 : index
    %36 = vector.load %arg7[%c0_19, %c0_20] : memref<1x32xf32, #tpu.memory_space<vmem>>, vector<1x32xf32>
    %37 = vector.broadcast %36 : vector<1x32xf32> to vector<8x32xf32>
    %38 = arith.addf %35, %37 : vector<8x32xf32>
    %c0_21 = arith.constant 0 : index
    %c0_22 = arith.constant 0 : index
    %c0_23 = arith.constant 0 : index
    %39 = vector.load %arg8[%c0_21, %c0_22, %c0_23] : memref<1x8x32xf32, #tpu.memory_space<vmem>>, vector<1x8x32xf32>
    %40 = vector.shape_cast %39 : vector<1x8x32xf32> to vector<8x32xf32>
    %41 = vector.shape_cast %38 : vector<8x32xf32> to vector<1x8x32xf32>
    tpu.vector_store %arg8[%c0_21, %c0_22, %c0_23], %41 {strides = array<i32>} : memref<1x8x32xf32, #tpu.memory_space<vmem>>, vector<1x8x32xf32>,
    return
  }
  func.func @transform_0(%arg0: i32) -> (i32, i32, i32) {
    %c0_i32 = arith.constant 0 : i32
    %c0_i32_0 = arith.constant 0 : i32
    %c0_i32_1 = arith.constant 0 : i32
    return %arg0, %c0_i32, %c0_i32_0 : i32, i32, i32
  }
  func.func @transform_1(%arg0: i32) -> (i32, i32) {
    %c0_i32 = arith.constant 0 : i32
    %c0_i32_0 = arith.constant 0 : i32
    %c0_i32_1 = arith.constant 0 : i32
    return %c0_i32, %c0_i32_0 : i32, i32
  }
  func.func @transform_2(%arg0: i32) -> (i32, i32) {
    %c0_i32 = arith.constant 0 : i32
    %c0_i32_0 = arith.constant 0 : i32
    %c0_i32_1 = arith.constant 0 : i32
    return %c0_i32, %c0_i32_0 : i32, i32
  }
  func.func @transform_3(%arg0: i32) -> (i32, i32) {
    %c0_i32 = arith.constant 0 : i32
    %c0_i32_0 = arith.constant 0 : i32
    %c0_i32_1 = arith.constant 0 : i32
    return %c0_i32, %c0_i32_0 : i32, i32
  }
  func.func @transform_4(%arg0: i32) -> (i32, i32) {
    %c0_i32 = arith.constant 0 : i32
    %c0_i32_0 = arith.constant 0 : i32
    %c0_i32_1 = arith.constant 0 : i32
    return %c0_i32, %c0_i32_0 : i32, i32
  }
  func.func @transform_5(%arg0: i32) -> (i32, i32) {
    %c0_i32 = arith.constant 0 : i32
    %c0_i32_0 = arith.constant 0 : i32
    %c0_i32_1 = arith.constant 0 : i32
    return %c0_i32, %c0_i32_0 : i32, i32
  }
  func.func @transform_6(%arg0: i32) -> (i32, i32) {
    %c0_i32 = arith.constant 0 : i32
    %c0_i32_0 = arith.constant 0 : i32
    %c0_i32_1 = arith.constant 0 : i32
    return %c0_i32, %c0_i32_0 : i32, i32
  }
  func.func @transform_7(%arg0: i32) -> (i32, i32, i32) {
    %c0_i32 = arith.constant 0 : i32
    %c0_i32_0 = arith.constant 0 : i32
    %c0_i32_1 = arith.constant 0 : i32
    return %arg0, %c0_i32, %c0_i32_0 : i32, i32, i32
  }
}

module attributes {stable_mosaic.version = 11 : i64} {
  func.func @_ffn_block_kernel(%arg0: i32, %arg1: memref<1x8x32xf32, #tpu.memory_space<vmem>>, %arg2: memref<1x32xf32, #tpu.memory_space<vmem>>, %arg3: memref<1x32xf32, #tpu.memory_space<vmem>>, %arg4: memref<32x64xf32, #tpu.memory_space<vmem>>, %arg5: memref<1x64xf32, #tpu.memory_space<vmem>>, %arg6: memref<64x32xf32, #tpu.memory_space<vmem>>, %arg7: memref<1x32xf32, #tpu.memory_space<vmem>>, %arg8: memref<1x32xf32, #tpu.memory_space<vmem>>, %arg9: memref<1x32xf32, #tpu.memory_space<vmem>>, %arg10: memref<1x8x32xf32, #tpu.memory_space<vmem>>) attributes {dimension_semantics = [#tpu.dimension_semantics<parallel>], iteration_bounds = array<i64: 6>, scalar_prefetch = 0 : i64, scratch_operands = 0 : i64, tpu.core_type = #tpu.core_type<tc>, window_params = [{transform_indices = @transform_0, window_bounds = array<i64: 1, 8, 32>}, {pipeline_mode = #tpu.pipeline_mode<synchronous>, transform_indices = @transform_1, window_bounds = array<i64: 1, 32>}, {pipeline_mode = #tpu.pipeline_mode<synchronous>, transform_indices = @transform_2, window_bounds = array<i64: 1, 32>}, {pipeline_mode = #tpu.pipeline_mode<synchronous>, transform_indices = @transform_3, window_bounds = array<i64: 32, 64>}, {pipeline_mode = #tpu.pipeline_mode<synchronous>, transform_indices = @transform_4, window_bounds = array<i64: 1, 64>}, {pipeline_mode = #tpu.pipeline_mode<synchronous>, transform_indices = @transform_5, window_bounds = array<i64: 64, 32>}, {pipeline_mode = #tpu.pipeline_mode<synchronous>, transform_indices = @transform_6, window_bounds = array<i64: 1, 32>}, {pipeline_mode = #tpu.pipeline_mode<synchronous>, transform_indices = @transform_7, window_bounds = array<i64: 1, 32>}, {pipeline_mode = #tpu.pipeline_mode<synchronous>, transform_indices = @transform_8, window_bounds = array<i64: 1, 32>}, {transform_indices = @transform_9, window_bounds = array<i64: 1, 8, 32>}]} {
    %c0 = arith.constant 0 : index
    %c0_0 = arith.constant 0 : index
    %c0_1 = arith.constant 0 : index
    %0 = vector.load %arg1[%c0, %c0_0, %c0_1] : memref<1x8x32xf32, #tpu.memory_space<vmem>>, vector<1x8x32xf32>
    %1 = vector.shape_cast %0 : vector<1x8x32xf32> to vector<8x32xf32>
    %c0_2 = arith.constant 0 : index
    %c0_3 = arith.constant 0 : index
    %2 = vector.load %arg2[%c0_2, %c0_3] : memref<1x32xf32, #tpu.memory_space<vmem>>, vector<1x32xf32>
    %c0_4 = arith.constant 0 : index
    %c0_5 = arith.constant 0 : index
    %3 = vector.load %arg3[%c0_4, %c0_5] : memref<1x32xf32, #tpu.memory_space<vmem>>, vector<1x32xf32>
    %cst = arith.constant dense<0.000000e+00> : vector<8xf32>
    %4 = vector.multi_reduction <add>, %1, %cst [1] : vector<8x32xf32> to vector<8xf32>
    %5 = vector.shape_cast %4 : vector<8xf32> to vector<8x1xf32>
    %cst_6 = arith.constant 3.200000e+01 : f32
    %6 = vector.broadcast %cst_6 : f32 to vector<8x1xf32>
    %7 = arith.divf %5, %6 : vector<8x1xf32>
    %8 = vector.broadcast %7 : vector<8x1xf32> to vector<8x32xf32>
    %9 = arith.subf %1, %8 : vector<8x32xf32>
    %10 = arith.mulf %9, %9 : vector<8x32xf32>
    %cst_7 = arith.constant dense<0.000000e+00> : vector<8xf32>
    %11 = vector.multi_reduction <add>, %10, %cst_7 [1] : vector<8x32xf32> to vector<8xf32>
    %12 = vector.shape_cast %11 : vector<8xf32> to vector<8x1xf32>
    %cst_8 = arith.constant 3.200000e+01 : f32
    %13 = vector.broadcast %cst_8 : f32 to vector<8x1xf32>
    %14 = arith.divf %12, %13 : vector<8x1xf32>
    %15 = vector.broadcast %7 : vector<8x1xf32> to vector<8x32xf32>
    %16 = arith.subf %1, %15 : vector<8x32xf32>
    %cst_9 = arith.constant 9.99999974E-6 : f32
    %17 = vector.broadcast %cst_9 : f32 to vector<8x1xf32>
    %18 = arith.addf %14, %17 : vector<8x1xf32>
    %19 = math.rsqrt %18 : vector<8x1xf32>
    %20 = vector.broadcast %19 : vector<8x1xf32> to vector<8x32xf32>
    %21 = arith.mulf %16, %20 : vector<8x32xf32>
    %22 = vector.broadcast %2 : vector<1x32xf32> to vector<8x32xf32>
    %23 = arith.mulf %21, %22 : vector<8x32xf32>
    %24 = vector.broadcast %3 : vector<1x32xf32> to vector<8x32xf32>
    %25 = arith.addf %23, %24 : vector<8x32xf32>
    %c0_10 = arith.constant 0 : index
    %c0_11 = arith.constant 0 : index
    %26 = vector.load %arg4[%c0_10, %c0_11] : memref<32x64xf32, #tpu.memory_space<vmem>>, vector<32x64xf32>
    %cst_12 = arith.constant dense<0.000000e+00> : vector<8x64xf32>
    %27 = tpu.matmul %25, %26, %cst_12 {dimension_numbers = #tpu.dot_dimension_numbers<[1], [0], [0], [1], [0, 0, 1, 1], [], []>} : vector<8x32xf32>, vector<32x64xf32>, vector<8x64xf32> -> vector<8x64xf32>
    %c0_13 = arith.constant 0 : index
    %c0_14 = arith.constant 0 : index
    %28 = vector.load %arg5[%c0_13, %c0_14] : memref<1x64xf32, #tpu.memory_space<vmem>>, vector<1x64xf32>
    %29 = vector.broadcast %28 : vector<1x64xf32> to vector<8x64xf32>
    %30 = arith.addf %27, %29 : vector<8x64xf32>
    %cst_15 = arith.constant 0.000000e+00 : f32
    %31 = vector.broadcast %cst_15 : f32 to vector<8x64xf32>
    %32 = arith.maximumf %30, %31 : vector<8x64xf32>
    %c0_16 = arith.constant 0 : index
    %c0_17 = arith.constant 0 : index
    %33 = vector.load %arg6[%c0_16, %c0_17] : memref<64x32xf32, #tpu.memory_space<vmem>>, vector<64x32xf32>
    %cst_18 = arith.constant dense<0.000000e+00> : vector<8x32xf32>
    %34 = tpu.matmul %32, %33, %cst_18 {dimension_numbers = #tpu.dot_dimension_numbers<[1], [0], [0], [1], [0, 0, 1, 1], [], []>} : vector<8x64xf32>, vector<64x32xf32>, vector<8x32xf32> -> vector<8x32xf32>
    %35 = arith.addf %1, %34 : vector<8x32xf32>
    %c0_19 = arith.constant 0 : index
    %c0_20 = arith.constant 0 : index
    %36 = vector.load %arg7[%c0_19, %c0_20] : memref<1x32xf32, #tpu.memory_space<vmem>>, vector<1x32xf32>
    %37 = vector.broadcast %36 : vector<1x32xf32> to vector<8x32xf32>
    %38 = arith.addf %35, %37 : vector<8x32xf32>
    %c0_21 = arith.constant 0 : index
    %c0_22 = arith.constant 0 : index
    %39 = vector.load %arg8[%c0_21, %c0_22] : memref<1x32xf32, #tpu.memory_space<vmem>>, vector<1x32xf32>
    %c0_23 = arith.constant 0 : index
    %c0_24 = arith.constant 0 : index
    %40 = vector.load %arg9[%c0_23, %c0_24] : memref<1x32xf32, #tpu.memory_space<vmem>>, vector<1x32xf32>
    %cst_25 = arith.constant dense<0.000000e+00> : vector<8xf32>
    %41 = vector.multi_reduction <add>, %38, %cst_25 [1] : vector<8x32xf32> to vector<8xf32>
    %42 = vector.shape_cast %41 : vector<8xf32> to vector<8x1xf32>
    %cst_26 = arith.constant 3.200000e+01 : f32
    %43 = vector.broadcast %cst_26 : f32 to vector<8x1xf32>
    %44 = arith.divf %42, %43 : vector<8x1xf32>
    %45 = vector.broadcast %44 : vector<8x1xf32> to vector<8x32xf32>
    %46 = arith.subf %38, %45 : vector<8x32xf32>
    %47 = arith.mulf %46, %46 : vector<8x32xf32>
    %cst_27 = arith.constant dense<0.000000e+00> : vector<8xf32>
    %48 = vector.multi_reduction <add>, %47, %cst_27 [1] : vector<8x32xf32> to vector<8xf32>
    %49 = vector.shape_cast %48 : vector<8xf32> to vector<8x1xf32>
    %cst_28 = arith.constant 3.200000e+01 : f32
    %50 = vector.broadcast %cst_28 : f32 to vector<8x1xf32>
    %51 = arith.divf %49, %50 : vector<8x1xf32>
    %52 = vector.broadcast %44 : vector<8x1xf32> to vector<8x32xf32>
    %53 = arith.subf %38, %52 : vector<8x32xf32>
    %cst_29 = arith.constant 9.99999974E-6 : f32
    %54 = vector.broadcast %cst_29 : f32 to vector<8x1xf32>
    %55 = arith.addf %51, %54 : vector<8x1xf32>
    %56 = math.rsqrt %55 : vector<8x1xf32>
    %57 = vector.broadcast %56 : vector<8x1xf32> to vector<8x32xf32>
    %58 = arith.mulf %53, %57 : vector<8x32xf32>
    %59 = vector.broadcast %39 : vector<1x32xf32> to vector<8x32xf32>
    %60 = arith.mulf %58, %59 : vector<8x32xf32>
    %61 = vector.broadcast %40 : vector<1x32xf32> to vector<8x32xf32>
    %62 = arith.addf %60, %61 : vector<8x32xf32>
    %c0_30 = arith.constant 0 : index
    %c0_31 = arith.constant 0 : index
    %c0_32 = arith.constant 0 : index
    %63 = vector.load %arg10[%c0_30, %c0_31, %c0_32] : memref<1x8x32xf32, #tpu.memory_space<vmem>>, vector<1x8x32xf32>
    %64 = vector.shape_cast %63 : vector<1x8x32xf32> to vector<8x32xf32>
    %65 = vector.shape_cast %62 : vector<8x32xf32> to vector<1x8x32xf32>
    tpu.vector_store %arg10[%c0_30, %c0_31, %c0_32], %65 {strides = array<i32>} : memref<1x8x32xf32, #tpu.memory_space<vmem>>, vector<1x8x32xf32>,
    return
  }
  func.func @transform_0(%arg0: i32) -> (i32, i32, i32) {
    %c0_i32 = arith.constant 0 : i32
    %c0_i32_0 = arith.constant 0 : i32
    %c0_i32_1 = arith.constant 0 : i32
    return %arg0, %c0_i32, %c0_i32_0 : i32, i32, i32
  }
  func.func @transform_1(%arg0: i32) -> (i32, i32) {
    %c0_i32 = arith.constant 0 : i32
    %c0_i32_0 = arith.constant 0 : i32
    %c0_i32_1 = arith.constant 0 : i32
    return %c0_i32, %c0_i32_0 : i32, i32
  }
  func.func @transform_2(%arg0: i32) -> (i32, i32) {
    %c0_i32 = arith.constant 0 : i32
    %c0_i32_0 = arith.constant 0 : i32
    %c0_i32_1 = arith.constant 0 : i32
    return %c0_i32, %c0_i32_0 : i32, i32
  }
  func.func @transform_3(%arg0: i32) -> (i32, i32) {
    %c0_i32 = arith.constant 0 : i32
    %c0_i32_0 = arith.constant 0 : i32
    %c0_i32_1 = arith.constant 0 : i32
    return %c0_i32, %c0_i32_0 : i32, i32
  }
  func.func @transform_4(%arg0: i32) -> (i32, i32) {
    %c0_i32 = arith.constant 0 : i32
    %c0_i32_0 = arith.constant 0 : i32
    %c0_i32_1 = arith.constant 0 : i32
    return %c0_i32, %c0_i32_0 : i32, i32
  }
  func.func @transform_5(%arg0: i32) -> (i32, i32) {
    %c0_i32 = arith.constant 0 : i32
    %c0_i32_0 = arith.constant 0 : i32
    %c0_i32_1 = arith.constant 0 : i32
    return %c0_i32, %c0_i32_0 : i32, i32
  }
  func.func @transform_6(%arg0: i32) -> (i32, i32) {
    %c0_i32 = arith.constant 0 : i32
    %c0_i32_0 = arith.constant 0 : i32
    %c0_i32_1 = arith.constant 0 : i32
    return %c0_i32, %c0_i32_0 : i32, i32
  }
  func.func @transform_7(%arg0: i32) -> (i32, i32) {
    %c0_i32 = arith.constant 0 : i32
    %c0_i32_0 = arith.constant 0 : i32
    %c0_i32_1 = arith.constant 0 : i32
    return %c0_i32, %c0_i32_0 : i32, i32
  }
  func.func @transform_8(%arg0: i32) -> (i32, i32) {
    %c0_i32 = arith.constant 0 : i32
    %c0_i32_0 = arith.constant 0 : i32
    %c0_i32_1 = arith.constant 0 : i32
    return %c0_i32, %c0_i32_0 : i32, i32
  }
  func.func @transform_9(%arg0: i32) -> (i32, i32, i32) {
    %c0_i32 = arith.constant 0 : i32
    %c0_i32_0 = arith.constant 0 : i32
    %c0_i32_1 = arith.constant 0 : i32
    return %arg0, %c0_i32, %c0_i32_0 : i32, i32, i32
  }
}

</mosaic_0001>

<bundles_post_ra>
// kernel: decoder_forward.8
= control target key start
LH: loop header
LB: loop body
LE: loop exit
PB: predicated region body
PF: predicated region fallthrough
CT: control target
= control target key end

     0   :  { %s677_s24 = smov 0   ;;  %s758_s0 = inlined_call_operand.vmem [shape: f32[6,8,32], index: 0, kind: input, shape index: {}]   ;;  %s759_s1 = inlined_call_operand.vmem [shape: f32[1,32], index: 1, kind: input, shape index: {}]   ;;  %s760_s2 = inlined_call_operand.vmem [shape: f32[1,32], index: 2, kind: input, shape index: {}]   ;;  %s761_s3 = inlined_call_operand.vmem [shape: f32[32,64], index: 3, kind: input, shape index: {}]   ;;  %s762_s4 = inlined_call_operand.vmem [shape: f32[1,64], index: 4, kind: input, shape index: {}]   ;;  %s763_s5 = inlined_call_operand.vmem [shape: f32[64,32], index: 5, kind: input, shape index: {}]   ;;  %s764_s6 = inlined_call_operand.vmem [shape: f32[1,32], index: 6, kind: input, shape index: {}]   ;;  %s765_s7 = inlined_call_operand.vmem [shape: f32[6,8,32], index: 7, kind: output, shape index: {}]  }
   0x1 LB: > { %s536_s25 = sadd.s32 4294967295, %s632_s24   ;;  %p540_p0 = scmp.ge.s32.totalorder %s632_s24, 1  ;;  %s632_s24 = sphi %s677_s24, %s17_s24  }
   0x2   : > { %p236_p1 = scmp.lt.s32.totalorder %s632_s24, 7 }
   0x4   : > { %p237_p2 = pnand %p540_p0, %p236_p1 }
   0x5   : > { %p266_p3 = scmp.lt.s32.totalorder (!%p237_p2), %s536_s25, 5  ;;  %vm277_vm0 = vcmask (!%p237_p2), 261120   ;;  %v306_v7 = vld [vmem:[%s761_s3] sm:$0xff] (!%p237_p2)  ;;  %v307_v8 = vld [vmem:[%s761_s3 + $0x8] sm:$0xff] (!%p237_p2)  ;;  %v308_v9 = vld [vmem:[%s761_s3 + $0x10] sm:$0xff] (!%p237_p2)  ;;  %v634_v10 = vmov (!%p237_p2), 0.0|0.0  }
   0x6   : > { %240 = sbr.rel (%p237_p2) target bundleno = 763 (0x2fb), region = 48  ;;  %595 = vmatprep.subr.bf16.mxu0 (!%p237_p2), %v634_v10  ;;  %v596_v11 = vpack.c.bf16 (!%p237_p2), %v307_v8, %v306_v7  ;;  %v309_v12 = vld [vmem:[%s761_s3 + $0x18] sm:$0xff] (!%p237_p2)  ;;  %vm635_vm1 = vmmov (!%p237_p2), 0   ;;  %v636_v13 = vmov (!%p237_p2), 0.0   ;;  %601 = vmatprep.subr.bf16.mxu1 (!%p237_p2), %v634_v10  ;;  %v391_v15 = vld [vmem:[%s763_s5] sm:$0xff] (!%p237_p2)  ;;  %v392_v16 = vld [vmem:[%s763_s5 + $0x8] sm:$0xff] (!%p237_p2) }
   0x7   : > { %573 = vmatprep.mubr.msk.f32.mxu0 (!%p237_p2), %vm635_vm1, %v636_v13  ;;  %592 = vmatprep.mubr.msk.f32.mxu1 (!%p237_p2), %vm635_vm1, %v636_v13  ;;  %v599_v14 = vpack.c.bf16 (!%p237_p2), %v309_v12, %v308_v9  ;;  %v393_v17 = vld [vmem:[%s763_s5 + $0x10] sm:$0xff] (!%p237_p2)  ;;  %v602_v18 = vpack.c.bf16 (!%p237_p2), %v392_v16, %v391_v15  ;;  %v394_v19 = vld [vmem:[%s763_s5 + $0x18] sm:$0xff] (!%p237_p2)  ;;  %v395_v21 = vld [vmem:[%s763_s5 + $0x20] sm:$0xff] (!%p237_p2)  ;;  %vm399_vm2 = vcmask (!%p237_p2), 523264  }
   0x8   : > { %597 = vmatpush3.bf16.msra.mxu0 (!%p237_p2), %v596_v11  ;;  %v605_v20 = vpack.c.bf16 (!%p237_p2), %v394_v19, %v393_v17  ;;  %v396_v22 = vld [vmem:[%s763_s5 + $0x28] sm:$0xff] (!%p237_p2)  ;;  %v543_v28 = vld [vmem:[%s759_s1] ss:$0 sm:$0xff] (!%p237_p2)  ;;  %v397_v33 = vld [vmem:[%s763_s5 + $0x30] sm:$0xff] (!%p237_p2) }
   0x9   : > { %598 = vmatprep.subr.bf16.mxu0 (!%p237_p2), %v634_v10  ;;  %603 = vmatpush3.bf16.msra.mxu1 (!%p237_p2), %v602_v18  ;;  %v608_v23 = vpack.c.bf16 (!%p237_p2), %v396_v22, %v395_v21  ;;  %v544_v30 = vld [vmem:[%s760_s2] ss:$0 sm:$0xff] (!%p237_p2)  ;;  %v398_v34 = vld [vmem:[%s763_s5 + $0x38] sm:$0xff] (!%p237_p2) }
   0xa   : > { %604 = vmatprep.subr.bf16.mxu1 (!%p237_p2), %v634_v10  ;;  %v611_v35 = vpack.c.bf16 (!%p237_p2), %v398_v34, %v397_v33  ;;  %v545_v36 = vld [vmem:[%s762_s4] ss:$0 sm:$0xff] (!%p237_p2) }
   0xb   : > { %v548_v42 = vld [vmem:[%s764_s6] ss:$0 sm:$0xff] (!%p237_p2) }
   0xc   : > { %600 = vmatpush3.bf16.msra.mxu0 (!%p237_p2), %v599_v14 }
   0xd   : > { %s767_s25 = smov (!%p266_p3, %s536_s25), 5  ;;  %606 = vmatpush3.bf16.msra.mxu1 %v605_v20 }
   0xe   : > { %s541_s26 = sshll.u32 %s767_s25, 3  ;;  %607 = vmatprep.subr.bf16.mxu1 %v634_v10 }
   0xf   : > { %s269_s29 = scalar_lea.vmem %s758_s0, %s541_s26  ;;  %s273_s21 = scalar_lea.vmem %s765_s7, %s541_s26 }
  0x10   : > { %v693_v0 = vld [vmem:[%s269_s29] sm:$0xff] }
  0x11   : > { %v278_v1 = vsel %vm277_vm0, %v693_v0, 0.0  ;;  %609 = vmatpush3.bf16.msra.mxu1 %v608_v23 }
  0x12   : > { %279 = vadd.xlane.f32.xlu0 %v278_v1  ;;  %610 = vmatprep.subr.bf16.mxu1 %v634_v10 }
  0x15   : > { %612 = vmatpush3.bf16.msra.mxu1 %v611_v35 }
  0x9f   : > { %v280_v2 = vpop.xlane.xlu0 %279 }
  0xa0   : > { %v282_v3 = vmul.f32 0.03125, %v280_v2 }
  0xa2   : > { %v283_v4 = vsub.f32 %v693_v0, %v282_v3 }
  0xa4   : > { %v284_v5 = vmul.f32 %v283_v4, %v283_v4 }
  0xa6   : > { %v285_v6 = vsel %vm277_vm0, %v284_v5, 0.0 }
  0xa7   : > { %286 = vadd.xlane.f32.xlu0 %v285_v6 }
 0x134   : > { %v287_v24 = vpop.xlane.xlu0 %286 }
 0x135   : > { %v288_v25 = vmul.f32 0.03125, %v287_v24 }
 0x137   : > { %v289_v26 = vadd.f32 1e-05, %v288_v25 }
 0x139   : > { %624 = vrsqrt.f32 %v289_v26 }
 0x143   : > { %v625_v27 = vpop.eup %624 }
 0x144   : > { %v291_v29 = vmul.f32 %v625_v27, %v283_v4 }
 0x146   : > { %v298_v31 = vmul.f32 %v543_v28, %v291_v29 }
 0x148   : > { %v305_v32 = vadd.f32 %v544_v30, %v298_v31 }
 0x14a   : > { %574 = vmatmul.mubr.msk.f32.vlgmr.msra.gmra.mrb[0].mxu0 %vm277_vm0, %v305_v32 }
 0x21d   : > { %v386_v37 = vpop.f32.mrb[0].mxu0 }
 0x21e   : > { %v387_v38 = vadd.f32 %v545_v36, %v386_v37  ;;  %v575_v39 = vpop.f32.mrb[1].mxu0 }
 0x220   : > { %v390_v40 = vmax.f32 %v387_v38, 0.0 }
 0x222   : > { %593 = vmatmul.mubr.msk.f32.vlgmr.msra.gmra.mrb[0].mxu1 %vm399_vm2, %v390_v40 }
 0x2f5   : > { %v469_v41 = vpop.f32.mrb[0].mxu1 }
 0x2f6   : > { %v473_v43 = vadd.f32 %v469_v41, %v693_v0  ;;  %v594_v44 = vpop.f32.mrb[1].mxu1 }
 0x2f8   : > { %v481_v45 = vadd.f32 %v548_v42, %v473_v43 }
 0x2fa   : > { %482 = vst.msk [vmem:[%s273_s21] sm:$0xff] %vm277_vm0, %v481_v45 }
 0x2fb PF: > { %s17_s24 = sadd.s32 1, %s632_s24  }
 0x2fc   : > { %p14_p4 = scmp.ge.s32.totalorder %s17_s24, 8  }
 0x2fe   :  { %16 = sbr.rel (!%p14_p4) target bundleno = 1 (0x1), region = 78 }

// kernel: decoder_forward.11
= control target key start
LH: loop header
LB: loop body
LE: loop exit
PB: predicated region body
PF: predicated region fallthrough
CT: control target
= control target key end

     0   :  { %14 = vsyncpa [#allocation3], 0  ;;  %s1048_s0 = inlined_call_operand.vmem [shape: f32[6,8,32], index: 0, kind: input, shape index: {}]   ;;  %s1049_s1 = inlined_call_operand.vmem [shape: f32[1,32], index: 1, kind: input, shape index: {}]   ;;  %s1050_s2 = inlined_call_operand.vmem [shape: f32[1,32], index: 2, kind: input, shape index: {}]   ;;  %s1051_s3 = inlined_call_operand.vmem [shape: f32[32,64], index: 3, kind: input, shape index: {}]   ;;  %s1052_s4 = inlined_call_operand.vmem [shape: f32[1,64], index: 4, kind: input, shape index: {}]   ;;  %s1053_s5 = inlined_call_operand.vmem [shape: f32[64,32], index: 5, kind: input, shape index: {}]   ;;  %s1054_s6 = inlined_call_operand.vmem [shape: f32[1,32], index: 6, kind: input, shape index: {}]   ;;  %s1055_s7 = inlined_call_operand.vmem [shape: f32[1,32], index: 7, kind: input, shape index: {}]   ;;  %s1056_s8 = inlined_call_operand.vmem [shape: f32[1,32], index: 8, kind: input, shape index: {}]   ;;  %s1057_s9 = inlined_call_operand.hbm [shape: f32[6,8,32], index: 9, kind: output, shape index: {}]  }
   0x1   :  { %16 = vsyncpa [#allocation3 + $0x1], 0  ;;  %s883_s30 = smov 0   ;;  %s885_s10 = smov 0  }
   0x2   :  { %s887_s11 = smov 0   ;;  %s889_s12 = smov 0  }
   0x3 LB: > { %s904_s13 = sadd.s32 4294967295, %s827_s12   ;;  %s639_s14 = sadd.s32 4294967294, %s827_s12   ;;  %s827_s12 = sphi %s889_s12, %s1063_s12   ;;  %s823_s11 = sphi %s887_s11, %s1062_s11   ;;  %s819_s10 = sphi %s885_s10, %s1061_s10   ;;  %s815_s30 = sphi %s883_s30, %s1060_s30  }
   0x4   : > { %s908_s15 = sadd.s32 1, %s827_s12   ;;  %s223_s16 = sadd.s32 1, %s823_s11 }
   0x5   : > { %s220_s17 = ssub.s32 %s827_s12, %s908_s15  ;;  %p233_p0 = scmp.ne.s32.totalorder %s823_s11, %s819_s10 }
   0x6   : > { %p221_p1 = scmp.eq.s32.totalorder %s220_s17, 0  ;;  %p234_p2 = scmp.eq.s32.totalorder %s904_s13, 5 }
   0x7   : > { %p239_p3 = scmp.ne.s32.totalorder %s819_s10, %s815_s30  ;;  %p240_p4 = scmp.eq.s32.totalorder %s639_s14, 5 }
   0x8   : > { %s919_s18 = scalar_select %p221_p1, %s823_s11, %s223_s16  }
   0x9   : > { %p921_p5 = por %p234_p2, %p233_p0  ;;  %p925_p6 = por %p240_p4, %p239_p3 }
   0xa   : > { %p642_p7 = scmp.ge.s32.totalorder %s827_s12, 1  ;;  %p289_p8 = scmp.lt.s32.totalorder %s827_s12, 7 }
   0xc   : > { %p290_p9 = pnand %p642_p7, %p289_p8 }
   0xd   : > { %p324_p10 = scmp.lt.s32.totalorder (!%p290_p9), %s904_s13, 5  ;;  %vm331_vm0 = vcmask (!%p290_p9), 261120   ;;  %v360_v7 = vld [vmem:[%s1051_s3] sm:$0xff] (!%p290_p9)  ;;  %v361_v8 = vld [vmem:[%s1051_s3 + $0x8] sm:$0xff] (!%p290_p9)  ;;  %v362_v9 = vld [vmem:[%s1051_s3 + $0x10] sm:$0xff] (!%p290_p9)  ;;  %v829_v10 = vmov (!%p290_p9), 0.0|0.0  }
   0xe   : > { %293 = sbr.rel (%p290_p9) target bundleno = 1098 (0x44a), region = 56  ;;  %701 = vmatprep.subr.bf16.mxu0 (!%p290_p9), %v829_v10  ;;  %v702_v11 = vpack.c.bf16 (!%p290_p9), %v361_v8, %v360_v7  ;;  %v363_v12 = vld [vmem:[%s1051_s3 + $0x18] sm:$0xff] (!%p290_p9)  ;;  %vm830_vm1 = vmmov (!%p290_p9), 0   ;;  %v831_v13 = vmov (!%p290_p9), 0.0   ;;  %707 = vmatprep.subr.bf16.mxu1 (!%p290_p9), %v829_v10  ;;  %v445_v15 = vld [vmem:[%s1053_s5] sm:$0xff] (!%p290_p9)  ;;  %v446_v16 = vld [vmem:[%s1053_s5 + $0x8] sm:$0xff] (!%p290_p9) }
   0xf   : > { %679 = vmatprep.mubr.msk.f32.mxu0 (!%p290_p9), %vm830_vm1, %v831_v13  ;;  %698 = vmatprep.mubr.msk.f32.mxu1 (!%p290_p9), %vm830_vm1, %v831_v13  ;;  %v705_v14 = vpack.c.bf16 (!%p290_p9), %v363_v12, %v362_v9  ;;  %v447_v17 = vld [vmem:[%s1053_s5 + $0x10] sm:$0xff] (!%p290_p9)  ;;  %v708_v18 = vpack.c.bf16 (!%p290_p9), %v446_v16, %v445_v15  ;;  %v448_v19 = vld [vmem:[%s1053_s5 + $0x18] sm:$0xff] (!%p290_p9)  ;;  %v449_v21 = vld [vmem:[%s1053_s5 + $0x20] sm:$0xff] (!%p290_p9)  ;;  %vm453_vm2 = vcmask (!%p290_p9), 523264   ;;  %s654_s28 = sshll.u32 (!%p290_p9), %s904_s13, 7 }
  0x10   : > { %703 = vmatpush3.bf16.msra.mxu0 (!%p290_p9), %v702_v11  ;;  %v711_v20 = vpack.c.bf16 (!%p290_p9), %v448_v19, %v447_v17  ;;  %v450_v22 = vld [vmem:[%s1053_s5 + $0x28] sm:$0xff] (!%p290_p9)  ;;  %v645_v28 = vld [vmem:[%s1049_s1] ss:$0 sm:$0xff] (!%p290_p9)  ;;  %v451_v33 = vld [vmem:[%s1053_s5 + $0x30] sm:$0xff] (!%p290_p9) }
  0x11   : > { %704 = vmatprep.subr.bf16.mxu0 (!%p290_p9), %v829_v10  ;;  %709 = vmatpush3.bf16.msra.mxu1 (!%p290_p9), %v708_v18  ;;  %v714_v23 = vpack.c.bf16 (!%p290_p9), %v450_v22, %v449_v21  ;;  %v646_v30 = vld [vmem:[%s1050_s2] ss:$0 sm:$0xff] (!%p290_p9)  ;;  %v452_v34 = vld [vmem:[%s1053_s5 + $0x38] sm:$0xff] (!%p290_p9) }
  0x12   : > { %710 = vmatprep.subr.bf16.mxu1 (!%p290_p9), %v829_v10  ;;  %v717_v35 = vpack.c.bf16 (!%p290_p9), %v452_v34, %v451_v33  ;;  %v647_v36 = vld [vmem:[%s1052_s4] ss:$0 sm:$0xff] (!%p290_p9) }
  0x13   : > { %v650_v42 = vld [vmem:[%s1054_s6] ss:$0 sm:$0xff] (!%p290_p9) }
  0x14   : > { %706 = vmatpush3.bf16.msra.mxu0 (!%p290_p9), %v705_v14  ;;  %v651_v56 = vld [vmem:[%s1055_s7] ss:$0 sm:$0xff] (!%p290_p9) }
  0x15   : > { %s325_s21 = scalar_select %p324_p10, %s904_s13, 5  ;;  %712 = vmatpush3.bf16.msra.mxu1 %v711_v20  ;;  %v652_v58 = vld [vmem:[%s1056_s8] ss:$0 sm:$0xff] }
  0x16   : > { %713 = vmatprep.subr.bf16.mxu1 %v829_v10  ;;  %s832_s13 = smov [#allocation2]  }
  0x17   : > { %s644_s22 = sshll.u32 %s325_s21, 3  ;;  %s1005_s21 = scalar_lea.hbm %s1057_s9, %s654_s28 }
  0x18   : > { %s327_s25 = scalar_lea.vmem %s1048_s0, %s644_s22  ;;  %s321_s22 = sand.u32 1, %s819_s10  }
  0x19   : > { %v936_v0 = vld [vmem:[%s327_s25] sm:$0xff]  ;;  %715 = vmatpush3.bf16.msra.mxu1 %v714_v23  ;;  %s643_s23 = sshll.u32 %s321_s22, 3  ;;  %s567_s24 = scalar_lea.sflag [#allocation3], %s321_s22 }
  0x1a   : > { %v332_v1 = vsel %vm331_vm0, %v936_v0, 0.0  ;;  %716 = vmatprep.subr.bf16.mxu1 %v829_v10  ;;  %s323_s29 = scalar_lea.vmem [#allocation2], %s643_s23  ;;  %s769_s23 = sshll.u32 %s832_s13, 4  ;;  %s770_s23 = int_to_ptr.vmem [resolvable:$false] %s769_s23 }
  0x1b   : > { %333 = vadd.xlane.f32.xlu0 %v332_v1  ;;  %s580_s14 = sshll.u32 %s323_s29, 4  ;;  %s771_s26 = scalar_lea.vmem %s770_s23, 256  ;;  %s1007_s14 = int_to_ptr.vmem [resolvable:$true] %s580_s14 }
  0x1c   : > { %s765_s25 = scalar_lea.vmem %s1007_s14, 128  ;;  %p772_p0 = scmp.lt.s32.totalorder %s1007_s14, %s770_s23 }
  0x1d   : > { %718 = vmatpush3.bf16.msra.mxu1 %v717_v35  ;;  %p766_p11 = scmp.ne.s32.totalorder %s1007_s14, %s765_s25  ;;  %p773_p1 = scmp.lt.s32.totalorder %s771_s26, %s765_s25 }
  0x1f   : > { %p767_p12 = pnand %p766_p11, %p921_p5  ;;  %p774_p2 = por %p773_p1, %p772_p0 }
  0x21   : > { %p768_p13 = pneg %p767_p12 }
  0x23   : > { %p775_p3 = pnand %p774_p2, %p768_p13 }
  0xa8   : > { %v334_v2 = vpop.xlane.xlu0 %333 }
  0xa9   : > { %v336_v3 = vmul.f32 0.03125, %v334_v2 }
  0xab   : > { %v337_v4 = vsub.f32 %v936_v0, %v336_v3 }
  0xad   : > { %v338_v5 = vmul.f32 %v337_v4, %v337_v4 }
  0xaf   : > { %v339_v6 = vsel %vm331_vm0, %v338_v5, 0.0 }
  0xb0   : > { %340 = vadd.xlane.f32.xlu0 %v339_v6 }
 0x13d   : > { %v341_v24 = vpop.xlane.xlu0 %340 }
 0x13e   : > { %v342_v25 = vmul.f32 0.03125, %v341_v24 }
 0x140   : > { %v343_v26 = vadd.f32 1e-05, %v342_v25 }
 0x142   : > { %761 = vrsqrt.f32 %v343_v26 }
 0x14c   : > { %v762_v27 = vpop.eup %761 }
 0x14d   : > { %v345_v29 = vmul.f32 %v762_v27, %v337_v4 }
 0x14f   : > { %v352_v31 = vmul.f32 %v645_v28, %v345_v29 }
 0x151   : > { %v359_v32 = vadd.f32 %v646_v30, %v352_v31 }
 0x153   : > { %680 = vmatmul.mubr.msk.f32.vlgmr.msra.gmra.mrb[0].mxu0 %vm331_vm0, %v359_v32 }
 0x226   : > { %v440_v37 = vpop.f32.mrb[0].mxu0 }
 0x227   : > { %v441_v38 = vadd.f32 %v647_v36, %v440_v37  ;;  %v681_v39 = vpop.f32.mrb[1].mxu0 }
 0x229   : > { %v444_v40 = vmax.f32 %v441_v38, 0.0 }
 0x22b   : > { %699 = vmatmul.mubr.msk.f32.vlgmr.msra.gmra.mrb[0].mxu1 %vm453_vm2, %v444_v40 }
 0x2fe   : > { %v523_v41 = vpop.f32.mrb[0].mxu1 }
 0x2ff   : > { %v527_v43 = vadd.f32 %v523_v41, %v936_v0  ;;  %v700_v44 = vpop.f32.mrb[1].mxu1 }
 0x301   : > { %v535_v45 = vadd.f32 %v650_v42, %v527_v43 }
 0x303   : > { %v538_v46 = vsel %vm331_vm0, %v535_v45, 0.0 }
 0x304   : > { %539 = vadd.xlane.f32.xlu1 %v538_v46 }
 0x391   : > { %v540_v47 = vpop.xlane.xlu1 %539 }
 0x392   : > { %v541_v48 = vmul.f32 0.03125, %v540_v47 }
 0x394   : > { %v542_v49 = vsub.f32 %v535_v45, %v541_v48 }
 0x396   : > { %v543_v50 = vmul.f32 %v542_v49, %v542_v49 }
 0x398   : > { %v544_v51 = vsel %vm331_vm0, %v543_v50, 0.0 }
 0x399   : > { %545 = vadd.xlane.f32.xlu1 %v544_v51 }
 0x426   : > { %v546_v52 = vpop.xlane.xlu1 %545 }
 0x427   : > { %v547_v53 = vmul.f32 0.03125, %v546_v52 }
 0x429   : > { %v548_v54 = vadd.f32 1e-05, %v547_v53 }
 0x42b   : > { %763 = vrsqrt.f32 %v548_v54 }
 0x435   : > { %v764_v55 = vpop.eup %763 }
 0x436   : > { %v550_v57 = vmul.f32 %v764_v55, %v542_v49 }
 0x438   : > { %v557_v59 = vmul.f32 %v651_v56, %v550_v57 }
 0x43a   : > { %v564_v60 = vadd.f32 %v652_v58, %v557_v59 }
 0x43c   : > { %565 = vst.msk [vmem:[%s323_s29] sm:$0xff] %vm331_vm0, %v564_v60 }
 0x43d   : > { %778 = shalt.err (!%p775_p3)
}
 0x43e   : > { %s779_s22 = scalar_lea.hbm %s1005_s21, 128  ;;  %s783_s29 = scalar_lea.hbm %s1057_s9, 768 }
 0x43f   : > { %p780_p4 = scmp.ne.s32.totalorder %s1005_s21, %s779_s22  ;;  %p784_p9 = scmp.lt.u32.totalorder %s1005_s21, %s1057_s9 }
 0x440   : > { %p785_p10 = scmp.lt.u32.totalorder %s783_s29, %s779_s22  ;;  %p787_p12 = scmp.lt.u32.totalorder %s779_s22, %s1005_s21 }
 0x441   : > { %p781_p7 = pnand %p780_p4, %p921_p5 }
 0x442   : > { %p786_p11 = por %p785_p10, %p784_p9 }
 0x443   : > { %p782_p8 = pneg %p781_p7 }
 0x444   : > { %p788_p13 = por %p787_p12, %p786_p11 }
 0x446   : > { %p789_p0 = pnand %p788_p13, %p782_p8 }
 0x448   : > { %792 = shalt.err (!%p789_p0)
}
 0x449   : > { %719 = dma.vmem_to_hbm [thread:$0]  (%p921_p5), %s1007_s14, 128, %s1005_s21, %s567_s24  }
 0x44a PF: > { %p725_p1 = scmp.ge.s32.totalorder %s827_s12, 2  ;;  %s592_s25 = sand.u32 1, %s815_s30  }
 0x44b   : > { %s593_s13 = scalar_lea.sflag [#allocation3], %s592_s25 }
 0x44c   : > { %p722_p2 = pnand %p725_p1, %p925_p6 }
 0x44e   : > { %810 = dma.done.wait (!%p722_p2), %s593_s13, 128  }
 0x44f   : > { %812 = vsyncadd (!%p722_p2), %s593_s13, 4294967168  ;;  %p19_p3 = scmp.ge.s32.totalorder %s908_s15, 8   ;;  %s1060_s30 = smov %s819_s10 }
 0x450   : > { %s1061_s10 = smov %s823_s11  ;;  %s1062_s11 = smov %s919_s18 }
 0x451   : > { %s1063_s12 = smov %s908_s15  ;;  %21 = sbr.rel (!%p19_p3) target bundleno = 3 (0x3), region = 91 }
 0x458   :  { %598 = vsyncpa [#allocation3], 1 }
 0x459   :  { %600 = vsyncpa [#allocation3 + $0x1], 1 }

// kernel: decoder_forward.6
= control target key start
LH: loop header
LB: loop body
LE: loop exit
PB: predicated region body
PF: predicated region fallthrough
CT: control target
= control target key end

     0   :  { %s2964_s17 = smov 0   ;;  %s3334_s0 = inlined_call_operand.vmem [shape: f32[6,8,32], index: 0, kind: input, shape index: {}]   ;;  %s3335_s1 = inlined_call_operand.vmem [shape: f32[1,32], index: 1, kind: input, shape index: {}]   ;;  %s3336_s2 = inlined_call_operand.vmem [shape: f32[1,32], index: 2, kind: input, shape index: {}]   ;;  %s3337_s3 = inlined_call_operand.vmem [shape: f32[4,32,8], index: 3, kind: input, shape index: {}]   ;;  %s3338_s4 = inlined_call_operand.vmem [shape: f32[4,1,8], index: 4, kind: input, shape index: {}]   ;;  %s3339_s5 = inlined_call_operand.vmem [shape: f32[4,32,8], index: 5, kind: input, shape index: {}]   ;;  %s3340_s6 = inlined_call_operand.vmem [shape: f32[4,1,8], index: 6, kind: input, shape index: {}]   ;;  %s3341_s7 = inlined_call_operand.vmem [shape: f32[4,32,8], index: 7, kind: input, shape index: {}]   ;;  %s3342_s8 = inlined_call_operand.vmem [shape: f32[4,1,8], index: 8, kind: input, shape index: {}]   ;;  %s3343_s9 = inlined_call_operand.vmem [shape: f32[4,8,32], index: 9, kind: input, shape index: {}]   ;;  %s3344_s10 = inlined_call_operand.vmem [shape: f32[1,32], index: 10, kind: input, shape index: {}]   ;;  %s3345_s11 = inlined_call_operand.vmem [shape: f32[6,8,32], index: 11, kind: output, shape index: {}]  }
   0x1 LB: > { %s2416_s18 = sadd.s32 4294967295, %s2899_s17   ;;  %p2420_p0 = scmp.ge.s32.totalorder %s2899_s17, 1  ;;  %s2899_s17 = sphi %s2964_s17, %s21_s17  }
   0x2   : > { %p336_p1 = scmp.lt.s32.totalorder %s2899_s17, 7 }
   0x4   : > { %p337_p2 = pnand %p2420_p0, %p336_p1 }
   0x5   : > { %p374_p3 = scmp.lt.s32.totalorder (!%p337_p2), %s2416_s18, 5  ;;  %vm385_vm0 = vcmask (!%p337_p2), 261120   ;;  %v414_v7 = vld [vmem:[%s3337_s3] sm:$0xff] (!%p337_p2)  ;;  %v415_v8 = vld [vmem:[%s3337_s3 + $0x8] sm:$0xff] (!%p337_p2)  ;;  %v2901_v12 = vmov (!%p337_p2), 0.0|0.0   ;;  %v416_v14 = vld [vmem:[%s3337_s3 + $0x10] sm:$0xff] (!%p337_p2) }
   0x6   : > { %340 = sbr.rel (%p337_p2) target bundleno = 4186 (0x105a), region = 64  ;;  %v2793_v9 = vpack.c.bf16 (!%p337_p2), %v415_v8, %v414_v7  ;;  %v498_v10 = vld [vmem:[%s3339_s5] sm:$0xff] (!%p337_p2)  ;;  %v499_v11 = vld [vmem:[%s3339_s5 + $0x8] sm:$0xff] (!%p337_p2)  ;;  %2792 = vmatprep.subr.bf16.mxu0 (!%p337_p2), %v2901_v12  ;;  %2798 = vmatprep.subr.bf16.mxu1 (!%p337_p2), %v2901_v12  ;;  %v417_v15 = vld [vmem:[%s3337_s3 + $0x18] sm:$0xff] (!%p337_p2)  ;;  %vm2902_vm1 = vmmov (!%p337_p2), 0   ;;  %v2903_v20 = vmov (!%p337_p2), 0.0  }
   0x7   : > { %v2799_v13 = vpack.c.bf16 (!%p337_p2), %v499_v11, %v498_v10  ;;  %v2796_v16 = vpack.c.bf16 (!%p337_p2), %v417_v15, %v416_v14  ;;  %v500_v17 = vld [vmem:[%s3339_s5 + $0x10] sm:$0xff] (!%p337_p2)  ;;  %v501_v18 = vld [vmem:[%s3339_s5 + $0x18] sm:$0xff] (!%p337_p2)  ;;  %2608 = vmatprep.mubr.msk.f32.mxu0 (!%p337_p2), %vm2902_vm1, %v2903_v20  ;;  %2619 = vmatprep.mubr.msk.f32.mxu1 (!%p337_p2), %vm2902_vm1, %v2903_v20  ;;  %v2423_v25 = vld [vmem:[%s3335_s1] ss:$0 sm:$0xff] (!%p337_p2)  ;;  %vm660_vm2 = vcmask (!%p337_p2), 64512  }
   0x8   : > { %2794 = vmatpush3.bf16.msra.mxu0 (!%p337_p2), %v2793_v9  ;;  %v2802_v19 = vpack.c.bf16 (!%p337_p2), %v501_v18, %v500_v17  ;;  %v579_v27 = vld [vmem:[%s3341_s7] sm:$0xff] (!%p337_p2)  ;;  %v580_v28 = vld [vmem:[%s3341_s7 + $0x8] sm:$0xff] (!%p337_p2)  ;;  %v581_v33 = vld [vmem:[%s3341_s7 + $0x10] sm:$0xff] (!%p337_p2) }
   0x9   : > { %2800 = vmatpush3.bf16.msra.mxu1 (!%p337_p2), %v2799_v13  ;;  %2795 = vmatprep.subr.bf16.mxu0 (!%p337_p2), %v2901_v12  ;;  %v2424_v29 = vld [vmem:[%s3336_s2] ss:$0 sm:$0xff] (!%p337_p2)  ;;  %v2805_v31 = vpack.c.bf16 (!%p337_p2), %v580_v28, %v579_v27  ;;  %v582_v34 = vld [vmem:[%s3341_s7 + $0x18] sm:$0xff] (!%p337_p2)  ;;  %v2435_v37 = vld [vmem:[%s3337_s3 + $0x28] sm:$0xff] (!%p337_p2) }
   0xa   : > { %2801 = vmatprep.subr.bf16.mxu1 (!%p337_p2), %v2901_v12  ;;  %v2808_v35 = vpack.c.bf16 (!%p337_p2), %v582_v34, %v581_v33  ;;  %v2434_v36 = vld [vmem:[%s3337_s3 + $0x20] sm:$0xff] (!%p337_p2)  ;;  %v2436_v39 = vld [vmem:[%s3337_s3 + $0x30] sm:$0xff] (!%p337_p2)  ;;  %v2437_v40 = vld [vmem:[%s3337_s3 + $0x38] sm:$0xff] (!%p337_p2) }
   0xb   : > { %v2811_v38 = vpack.c.bf16 (!%p337_p2), %v2435_v37, %v2434_v36  ;;  %v2814_v41 = vpack.c.bf16 (!%p337_p2), %v2437_v40, %v2436_v39  ;;  %v2448_v42 = vld [vmem:[%s3341_s7 + $0x20] sm:$0xff] (!%p337_p2)  ;;  %v2449_v43 = vld [vmem:[%s3341_s7 + $0x28] sm:$0xff] (!%p337_p2)  ;;  %v2450_v45 = vld [vmem:[%s3341_s7 + $0x30] sm:$0xff] (!%p337_p2) }
   0xc   : > { %2797 = vmatpush3.bf16.msra.mxu0 (!%p337_p2), %v2796_v16  ;;  %v2823_v44 = vpack.c.bf16 (!%p337_p2), %v2449_v43, %v2448_v42  ;;  %v2451_v46 = vld [vmem:[%s3341_s7 + $0x38] sm:$0xff] (!%p337_p2)  ;;  %v2427_v48 = vld [vmem:[%s3340_s6] ss:$0 sm:$0xff] (!%p337_p2)  ;;  %v2442_v13 = vld [vmem:[%s3339_s5 + $0x28] sm:$0xff] (!%p337_p2) }
   0xd   : > { %s3347_s18 = smov (!%p374_p3, %s2416_s18), 5  ;;  %2803 = vmatpush3.bf16.msra.mxu1 %v2802_v19  ;;  %2804 = vmatprep.subr.bf16.mxu0 %v2901_v12  ;;  %v2826_v47 = vpack.c.bf16 %v2451_v46, %v2450_v45  ;;  %v2425_v51 = vld [vmem:[%s3338_s4] ss:$0 sm:$0xff]  ;;  %v2443_v17 = vld [vmem:[%s3339_s5 + $0x30] sm:$0xff]  ;;  %v2444_v18 = vld [vmem:[%s3339_s5 + $0x38] sm:$0xff] }
   0xe   : > { %s2421_s19 = sshll.u32 %s3347_s18, 3  ;;  %2633 = vmatprep.subr.mxu1 %v2903_v20  ;;  %v2429_v56 = vld [vmem:[%s3342_s8] ss:$0 sm:$0xff]  ;;  %v2820_v19 = vpack.c.bf16 %v2444_v18, %v2443_v17  ;;  %v2453_v28 = vld [vmem:[%s3342_s8 + $0x1] ss:$0 sm:$0xff] }
   0xf   : > { %s377_s22 = scalar_lea.vmem %s3334_s0, %s2421_s19  ;;  %v2441_v11 = vld [vmem:[%s3339_s5 + $0x20] sm:$0xff]  ;;  %s381_s12 = scalar_lea.vmem %s3345_s11, %s2421_s19 }
  0x10   : > { %v2980_v0 = vld [vmem:[%s377_s22] sm:$0xff]  ;;  %v2817_v15 = vpack.c.bf16 %v2442_v13, %v2441_v11 }
  0x11   : > { %v386_v1 = vsel %vm385_vm0, %v2980_v0, 0.0  ;;  %v822_v45 = vld [vmem:[%s3343_s9] sm:$0xff] }
  0x12   : > { %387 = vadd.xlane.f32.xlu0 %v386_v1  ;;  %v2468_v46 = vld [vmem:[%s3339_s5 + $0x40] sm:$0xff] }
  0x13   : > { %v2466_v13 = vld [vmem:[%s3338_s4 + $0x2] ss:$0 sm:$0xff] }
  0x14   : > { %v2480_v17 = vld [vmem:[%s3342_s8 + $0x2] ss:$0 sm:$0xff] }
  0x9f   : > { %v388_v2 = vpop.xlane.xlu0 %387 }
  0xa0   : > { %v390_v3 = vmul.f32 0.03125, %v388_v2 }
  0xa2   : > { %v391_v4 = vsub.f32 %v2980_v0, %v390_v3 }
  0xa4   : > { %v392_v5 = vmul.f32 %v391_v4, %v391_v4 }
  0xa6   : > { %v393_v6 = vsel %vm385_vm0, %v392_v5, 0.0 }
  0xa7   : > { %394 = vadd.xlane.f32.xlu0 %v393_v6 }
 0x134   : > { %v395_v21 = vpop.xlane.xlu0 %394 }
 0x135   : > { %v396_v22 = vmul.f32 0.03125, %v395_v21 }
 0x137   : > { %v397_v23 = vadd.f32 1e-05, %v396_v22 }
 0x139   : > { %2875 = vrsqrt.f32 %v397_v23  ;;  %v2446_v23 = vld [vmem:[%s3340_s6 + $0x1] ss:$0 sm:$0xff] }
 0x143   : > { %v2876_v24 = vpop.eup %2875 }
 0x144   : > { %v399_v26 = vmul.f32 %v2876_v24, %v391_v4 }
 0x146   : > { %v406_v30 = vmul.f32 %v2423_v25, %v399_v26  ;;  %v2439_v25 = vld [vmem:[%s3338_s4 + $0x1] ss:$0 sm:$0xff] }
 0x148   : > { %v3032_v32 = vadd.f32 %v2424_v29, %v406_v30 }
 0x14a   : > { %2609 = vmatmul.mubr.msk.f32.vlgmr.msra.gmra.mrb[0].mxu0 %vm385_vm0, %v3032_v32  ;;  %2620 = vmatmul.mubr.msk.f32.vlgmr.msra.gmra.mrb[0].mxu1 %vm385_vm0, %v3032_v32 }
 0x14b   : > { %2806 = vmatpush3.bf16.msra.mxu0 %v2805_v31  ;;  %2630 = vmatprep.mubr.msk.f32.mxu0 %vm2902_vm1, %v2903_v20 }
 0x14c   : > { %2807 = vmatprep.subr.bf16.mxu0 %v2901_v12  ;;  %2635 = vmatprep.mubr.msk.f32.mxu1 %vm2902_vm1, %v2903_v20 }
 0x14f   : > { %2809 = vmatpush3.bf16.msra.mxu0 %v2808_v35 }
 0x150   : > { %2810 = vmatprep.subr.bf16.mxu0 %v2901_v12 }
 0x152   : > { %2631 = vmatmul.mubr.msk.f32.vlgmr.msra.gmra.mrb[2].mxu0 %vm385_vm0, %v3032_v32 }
 0x153   : > { %2812 = vmatpush3.bf16.msra.mxu0 %v2811_v38  ;;  %2651 = vmatprep.mubr.msk.f32.mxu0 %vm2902_vm1, %v2903_v20 }
 0x154   : > { %2813 = vmatprep.subr.bf16.mxu0 %v2901_v12 }
 0x157   : > { %2815 = vmatpush3.bf16.msra.mxu0 %v2814_v41  ;;  %v2458_v41 = vld [vmem:[%s3343_s9 + $0x8] sm:$0xff] }
 0x158   : > { %2822 = vmatprep.subr.bf16.mxu0 %v2901_v12 }
 0x15a   : > { %2652 = vmatmul.mubr.msk.f32.vlgmr.msra.gmra.mrb[4].mxu0 %vm385_vm0, %v3032_v32 }
 0x15b   : > { %2824 = vmatpush3.bf16.msra.mxu0 %v2823_v44  ;;  %2673 = vmatprep.mubr.msk.f32.mxu0 %vm2902_vm1, %v2903_v20 }
 0x15c   : > { %2825 = vmatprep.subr.bf16.mxu0 %v2901_v12 }
 0x15f   : > { %2827 = vmatpush3.bf16.msra.mxu0 %v2826_v47  ;;  %v2469_v47 = vld [vmem:[%s3339_s5 + $0x48] sm:$0xff] }
 0x160   : > { %2686 = vmatprep.subr.mxu0 %v2903_v20 }
 0x162   : > { %2674 = vmatmul.mubr.msk.f32.vlgmr.msra.gmra.mrb[6].mxu0 %vm385_vm0, %v3032_v32 }
 0x163   : > { %2688 = vmatprep.mubr.msk.f32.mxu0 %vm2902_vm1, %v2903_v20  ;;  %2687 = vmatpush3.msra.mxu0 %v2458_v41 }
 0x164   : > { %2828 = vmatprep.subr.bf16.mxu0 %v2901_v12 }
 0x21d   : > { %v494_v49 = vpop.f32.mrb[0].mxu0  ;;  %v575_v50 = vpop.f32.mrb[0].mxu1 }
 0x21e   : > { %v576_v52 = vadd.f32 %v2427_v48, %v575_v50  ;;  %v2610_v53 = vpop.f32.mrb[1].mxu0  ;;  %v2621_v54 = vpop.f32.mrb[1].mxu1  ;;  %v495_v55 = vadd.f32 %v2425_v51, %v494_v49  ;;  %v2835_v48 = vpack.c.bf16 %v2469_v47, %v2468_v46  ;;  %v2470_v49 = vld [vmem:[%s3339_s5 + $0x50] sm:$0xff]  ;;  %v2471_v50 = vld [vmem:[%s3339_s5 + $0x58] sm:$0xff] }
 0x21f   : > { %v2838_v51 = vpack.c.bf16 %v2471_v50, %v2470_v49  ;;  %v2462_v53 = vld [vmem:[%s3337_s3 + $0x48] sm:$0xff]  ;;  %v2504_v46 = vld [vmem:[%s3341_s7 + $0x78] sm:$0xff] }
 0x220   : > { %2634 = vmatpush3.xpose.msk.msra.mxu1 %vm660_vm2, %v576_v52  ;;  %v2461_v52 = vld [vmem:[%s3337_s3 + $0x40] sm:$0xff]  ;;  %v2495_v49 = vld [vmem:[%s3339_s5 + $0x68] sm:$0xff] }
 0x221   : > { %2638 = vmatprep.subr.mxu1 %v2903_v20  ;;  %v2829_v54 = vpack.c.bf16 %v2462_v53, %v2461_v52  ;;  %v2497_v52 = vld [vmem:[%s3339_s5 + $0x78] sm:$0xff] }
 0x223   : > { %2636 = vmatmul.mubr.msk.f32.vlgmr.msra.gmra.mrb[2].mxu1 %vm660_vm2, %v495_v55  ;;  %v2463_v55 = vld [vmem:[%s3337_s3 + $0x50] sm:$0xff] }
 0x224   : > { %2640 = vmatprep.mubr.msk.f32.mxu1 %vm2902_vm1, %v2903_v20 }
 0x225   : > { %v656_v57 = vpop.f32.mrb[2].mxu0 }
 0x226   : > { %v657_v58 = vadd.f32 %v2429_v56, %v656_v57  ;;  %v2632_v59 = vpop.f32.mrb[3].mxu0  ;;  %v2464_v56 = vld [vmem:[%s3337_s3 + $0x58] sm:$0xff] }
 0x227   : > { %v2832_v59 = vpack.c.bf16 %v2464_v56, %v2463_v55 }
 0x228   : > { %2639 = vmatpush3.msra.mxu1 %v657_v58 }
 0x229   : > { %2816 = vmatprep.subr.bf16.mxu1 %v2901_v12 }
 0x22d   : > { %v902_v60 = vpop.f32.mrb[4].mxu0 }
 0x22e   : > { %v2653_v61 = vpop.f32.mrb[5].mxu0  ;;  %v903_v29 = vadd.f32 %v2439_v25, %v902_v60  ;;  %v2475_v60 = vld [vmem:[%s3341_s7 + $0x40] sm:$0xff] }
 0x22f   : > { %v2476_v61 = vld [vmem:[%s3341_s7 + $0x48] sm:$0xff] }
 0x235   : > { %v1068_v62 = vpop.f32.mrb[6].mxu0 }
 0x236   : > { %v2675_v63 = vpop.f32.mrb[7].mxu0  ;;  %v1069_v30 = vadd.f32 %v2453_v28, %v1068_v62 }
 0x2f6   : > { %v733_v1 = vpop.f32.mrb[2].mxu1 }
 0x2f7   : > { %v737_v2 = vmul.f32 0.35355338, %v733_v1  ;;  %v2637_v3 = vpop.f32.mrb[3].mxu1  ;;  %v2841_v1 = vpack.c.bf16 %v2476_v61, %v2475_v60 }
 0x2f8   : > { %v2478_v3 = vld [vmem:[%s3341_s7 + $0x58] sm:$0xff] }
 0x2f9   : > { %v738_v4 = vsel %vm660_vm2, %v737_v2, -inf }
 0x2fa   : > { %739 = vmax.xlane.f32.xlu1 %v738_v4  ;;  %v2473_v4 = vld [vmem:[%s3340_s6 + $0x2] ss:$0 sm:$0xff] }
 0x387   : > { %v740_v5 = vpop.xlane.xlu1 %739 }
 0x388   : > { %v741_v6 = vsub.f32 %v737_v2, %v740_v5  ;;  %v2477_v2 = vld [vmem:[%s3341_s7 + $0x50] sm:$0xff] }
 0x389   : > { %v2844_v5 = vpack.c.bf16 %v2478_v3, %v2477_v2  ;;  %v2506_v3 = vld [vmem:[%s3342_s8 + $0x3] ss:$0 sm:$0xff] }
 0x38a   : > { %v742_v7 = vmul.f32 1.442695, %v741_v6 }
 0x38c   : > { %2877 = vpow2.f32 %v742_v7 }
 0x396   : > { %v2878_v8 = vpop.eup %2877 }
 0x397   : > { %v744_v9 = vsel %vm660_vm2, %v2878_v8, 0.0 }
 0x398   : > { %745 = vadd.xlane.f32.xlu1 %v744_v9 }
 0x425   : > { %v746_v10 = vpop.xlane.xlu1 %745 }
 0x426   : > { %2879 = vrcp.f32 %v746_v10 }
 0x430   : > { %v2880_v14 = vpop.eup %2879 }
 0x431   : > { %v748_v16 = vmul.f32 %v2880_v14, %v2878_v8 }
 0x433   : > { %2641 = vmatmul.mubr.msk.f32.vlgmr.msra.gmra.mrb[4].mxu1 %vm660_vm2, %v748_v16 }
 0x434   : > { %2818 = vmatpush3.bf16.msra.mxu1 %v2817_v15  ;;  %2662 = vmatprep.mubr.msk.f32.mxu1 %vm2902_vm1, %v2903_v20 }
 0x435   : > { %2819 = vmatprep.subr.bf16.mxu1 %v2901_v12 }
 0x438   : > { %2821 = vmatpush3.bf16.msra.mxu1 %v2820_v19 }
 0x439   : > { %2676 = vmatprep.subr.mxu1 %v2903_v20 }
 0x43b   : > { %2663 = vmatmul.mubr.msk.f32.vlgmr.msra.gmra.mrb[6].mxu1 %vm385_vm0, %v3032_v32 }
 0x43c   : > { %2678 = vmatprep.mubr.msk.f32.mxu1 %vm2902_vm1, %v2903_v20 }
 0x506   : > { %v818_v21 = vpop.f32.mrb[4].mxu1 }
 0x507   : > { %v2642_v22 = vpop.f32.mrb[5].mxu1 }
 0x50e   : > { %v985_v24 = vpop.f32.mrb[6].mxu1 }
 0x50f   : > { %v986_v26 = vadd.f32 %v2446_v23, %v985_v24  ;;  %v2664_v27 = vpop.f32.mrb[7].mxu1 }
 0x511   : > { %2677 = vmatpush3.xpose.msk.msra.mxu1 %vm660_vm2, %v986_v26 }
 0x512   : > { %2681 = vmatprep.subr.mxu1 %v2903_v20 }
 0x514   : > { %2679 = vmatmul.mubr.msk.f32.vlgmr.msra.gmra.mrb[8].mxu1 %vm660_vm2, %v903_v29 }
 0x515   : > { %2682 = vmatpush3.msra.mxu1 %v1069_v30  ;;  %2683 = vmatprep.mubr.msk.f32.mxu1 %vm2902_vm1, %v2903_v20 }
 0x516   : > { %2691 = vmatprep.subr.mxu1 %v2903_v20 }
 0x5e7   : > { %v1144_v31 = vpop.f32.mrb[8].mxu1 }
 0x5e8   : > { %v1148_v33 = vmul.f32 0.35355338, %v1144_v31  ;;  %v2680_v34 = vpop.f32.mrb[9].mxu1  ;;  %v2485_v31 = vld [vmem:[%s3343_s9 + $0x10] sm:$0xff] }
 0x5e9   : > { %v2487_v34 = vld [vmem:[%s3337_s3 + $0x60] sm:$0xff] }
 0x5ea   : > { %v1149_v35 = vsel %vm660_vm2, %v1148_v33, -inf }
 0x5eb   : > { %1150 = vmax.xlane.f32.xlu0 %v1149_v35  ;;  %v2488_v35 = vld [vmem:[%s3337_s3 + $0x68] sm:$0xff] }
 0x678   : > { %v1151_v36 = vpop.xlane.xlu0 %1150 }
 0x679   : > { %v1152_v37 = vsub.f32 %v1148_v33, %v1151_v36 }
 0x67b   : > { %v1153_v38 = vmul.f32 1.442695, %v1152_v37  ;;  %v2847_v37 = vpack.c.bf16 %v2488_v35, %v2487_v34 }
 0x67d   : > { %2881 = vpow2.f32 %v1153_v38 }
 0x687   : > { %v2882_v39 = vpop.eup %2881 }
 0x688   : > { %v1155_v40 = vsel %vm660_vm2, %v2882_v39, 0.0 }
 0x689   : > { %1156 = vadd.xlane.f32.xlu1 %v1155_v40  ;;  %v2490_v40 = vld [vmem:[%s3337_s3 + $0x78] sm:$0xff] }
 0x716   : > { %v1157_v42 = vpop.xlane.xlu1 %1156 }
 0x717   : > { %2883 = vrcp.f32 %v1157_v42  ;;  %v2501_v42 = vld [vmem:[%s3341_s7 + $0x60] sm:$0xff] }
 0x721   : > { %v2884_v43 = vpop.eup %2883 }
 0x722   : > { %v1159_v44 = vmul.f32 %v2884_v43, %v2882_v39  ;;  %v2489_v39 = vld [vmem:[%s3337_s3 + $0x70] sm:$0xff]  ;;  %v2502_v43 = vld [vmem:[%s3341_s7 + $0x68] sm:$0xff] }
 0x723   : > { %v2850_v41 = vpack.c.bf16 %v2490_v40, %v2489_v39 }
 0x724   : > { %2684 = vmatmul.mubr.msk.f32.vlgmr.msra.gmra.mrb[10].mxu1 %vm660_vm2, %v1159_v44  ;;  %v2859_v44 = vpack.c.bf16 %v2502_v43, %v2501_v42 }
 0x725   : > { %2692 = vmatpush3.msra.mxu1 %v822_v45  ;;  %2693 = vmatprep.mubr.msk.f32.mxu1 %vm2902_vm1, %v2903_v20  ;;  %v2503_v45 = vld [vmem:[%s3341_s7 + $0x70] sm:$0xff] }
 0x726   : > { %2834 = vmatprep.subr.bf16.mxu1 %v2901_v12  ;;  %v2862_v47 = vpack.c.bf16 %v2504_v46, %v2503_v45 }
 0x728   : > { %2694 = vmatmul.mubr.msk.f32.vlgmr.msra.gmra.mrb[12].mxu1 %vm660_vm2, %v818_v21 }
 0x729   : > { %2836 = vmatpush3.bf16.msra.mxu1 %v2835_v48  ;;  %2715 = vmatprep.mubr.msk.f32.mxu1 %vm2902_vm1, %v2903_v20  ;;  %v2494_v48 = vld [vmem:[%s3339_s5 + $0x60] sm:$0xff] }
 0x72a   : > { %2837 = vmatprep.subr.bf16.mxu1 %v2901_v12  ;;  %v2853_v50 = vpack.c.bf16 %v2495_v49, %v2494_v48 }
 0x72d   : > { %2839 = vmatpush3.bf16.msra.mxu1 %v2838_v51  ;;  %v2496_v51 = vld [vmem:[%s3339_s5 + $0x70] sm:$0xff] }
 0x72e   : > { %2729 = vmatprep.subr.mxu1 %v2903_v20  ;;  %v2856_v55 = vpack.c.bf16 %v2497_v52, %v2496_v51 }
 0x730   : > { %2716 = vmatmul.mubr.msk.f32.vlgmr.msra.gmra.mrb[14].mxu1 %vm385_vm0, %v3032_v32 }
 0x731   : > { %2731 = vmatprep.mubr.msk.f32.mxu1 %vm2902_vm1, %v2903_v20 }
 0x7f7   : > { %v1229_v57 = vpop.f32.mrb[10].mxu1 }
 0x7f8   : > { %v2685_v58 = vpop.f32.mrb[11].mxu1  ;;  %2689 = vmatmul.mubr.msk.f32.vlgmr.msra.gmra.mrb[8].mxu0 %vm660_vm2, %v1229_v57 }
 0x7f9   : > { %2830 = vmatpush3.bf16.msra.mxu0 %v2829_v54  ;;  %2704 = vmatprep.mubr.msk.f32.mxu0 %vm2902_vm1, %v2903_v20 }
 0x7fa   : > { %2831 = vmatprep.subr.bf16.mxu0 %v2901_v12 }
 0x7fb   : > { %v1377_v62 = vpop.f32.mrb[12].mxu1 }
 0x7fc   : > { %v2695_v63 = vpop.f32.mrb[13].mxu1 }
 0x7fd   : > { %2833 = vmatpush3.bf16.msra.mxu0 %v2832_v59 }
 0x7fe   : > { %2840 = vmatprep.subr.bf16.mxu0 %v2901_v12 }
 0x800   : > { %2705 = vmatmul.mubr.msk.f32.vlgmr.msra.gmra.mrb[10].mxu0 %vm385_vm0, %v3032_v32 }
 0x801   : > { %2842 = vmatpush3.bf16.msra.mxu0 %v2841_v1  ;;  %2726 = vmatprep.mubr.msk.f32.mxu0 %vm2902_vm1, %v2903_v20  ;;  %v2492_v1 = vld [vmem:[%s3338_s4 + $0x3] ss:$0 sm:$0xff] }
 0x802   : > { %2843 = vmatprep.subr.bf16.mxu0 %v2901_v12 }
 0x803   : > { %v1543_v6 = vpop.f32.mrb[14].mxu1 }
 0x804   : > { %v1544_v7 = vadd.f32 %v2473_v4, %v1543_v6  ;;  %v2717_v8 = vpop.f32.mrb[15].mxu1 }
 0x805   : > { %2845 = vmatpush3.bf16.msra.mxu0 %v2844_v5 }
 0x806   : > { %2730 = vmatpush3.xpose.msk.msra.mxu1 %vm660_vm2, %v1544_v7  ;;  %2739 = vmatprep.subr.mxu0 %v2903_v20 }
 0x807   : > { %2734 = vmatprep.subr.mxu1 %v2903_v20 }
 0x808   : > { %2727 = vmatmul.mubr.msk.f32.vlgmr.msra.gmra.mrb[12].mxu0 %vm385_vm0, %v3032_v32 }
 0x809   : > { %2741 = vmatprep.mubr.msk.f32.mxu0 %vm2902_vm1, %v2903_v20  ;;  %2740 = vmatpush3.msra.mxu0 %v2485_v31 }
 0x80a   : > { %2852 = vmatprep.subr.bf16.mxu0 %v2901_v12 }
 0x8cb   : > { %v1304_v9 = vpop.f32.mrb[8].mxu0 }
 0x8cc   : > { %v3221_v10 = vadd.f32 %v1377_v62, %v1304_v9  ;;  %v2690_v11 = vpop.f32.mrb[9].mxu0 }
 0x8d3   : > { %v1460_v14 = vpop.f32.mrb[10].mxu0 }
 0x8d4   : > { %v1461_v15 = vadd.f32 %v2466_v13, %v1460_v14  ;;  %v2706_v16 = vpop.f32.mrb[11].mxu0 }
 0x8d5   : > { %v2511_v16 = vld [vmem:[%s3343_s9 + $0x18] sm:$0xff] }
 0x8d6   : > { %2732 = vmatmul.mubr.msk.f32.vlgmr.msra.gmra.mrb[16].mxu1 %vm660_vm2, %v1461_v15 }
 0x8d7   : > { %2736 = vmatprep.mubr.msk.f32.mxu1 %vm2902_vm1, %v2903_v20 }
 0x8db   : > { %v1626_v18 = vpop.f32.mrb[12].mxu0 }
 0x8dc   : > { %v1627_v19 = vadd.f32 %v2480_v17, %v1626_v18  ;;  %v2728_v21 = vpop.f32.mrb[13].mxu0 }
 0x8de   : > { %2735 = vmatpush3.msra.mxu1 %v1627_v19 }
 0x8df   : > { %2846 = vmatprep.subr.bf16.mxu1 %v2901_v12 }
 0x9a9   : > { %v1702_v22 = vpop.f32.mrb[16].mxu1 }
 0x9aa   : > { %v1706_v23 = vmul.f32 0.35355338, %v1702_v22  ;;  %v2733_v24 = vpop.f32.mrb[17].mxu1 }
 0x9ac   : > { %v1707_v25 = vsel %vm660_vm2, %v1706_v23, -inf }
 0x9ad   : > { %1708 = vmax.xlane.f32.xlu0 %v1707_v25  ;;  %v2513_v25 = vld [vmem:[%s3344_s10] ss:$0 sm:$0xff] }
 0xa3a   : > { %v1709_v26 = vpop.xlane.xlu0 %1708 }
 0xa3b   : > { %v1710_v27 = vsub.f32 %v1706_v23, %v1709_v26 }
 0xa3d   : > { %v1711_v28 = vmul.f32 1.442695, %v1710_v27 }
 0xa3f   : > { %2885 = vpow2.f32 %v1711_v28 }
 0xa49   : > { %v2886_v29 = vpop.eup %2885 }
 0xa4a   : > { %v1713_v30 = vsel %vm660_vm2, %v2886_v29, 0.0 }
 0xa4b   : > { %1714 = vadd.xlane.f32.xlu1 %v1713_v30 }
 0xad8   : > { %v1715_v33 = vpop.xlane.xlu1 %1714 }
 0xad9   : > { %2887 = vrcp.f32 %v1715_v33 }
 0xae3   : > { %v2888_v36 = vpop.eup %2887 }
 0xae4   : > { %v1717_v38 = vmul.f32 %v2888_v36, %v2886_v29 }
 0xae6   : > { %2737 = vmatmul.mubr.msk.f32.vlgmr.msra.gmra.mrb[18].mxu1 %vm660_vm2, %v1717_v38 }
 0xae7   : > { %2848 = vmatpush3.bf16.msra.mxu1 %v2847_v37  ;;  %2752 = vmatprep.mubr.msk.f32.mxu1 %vm2902_vm1, %v2903_v20 }
 0xae8   : > { %2849 = vmatprep.subr.bf16.mxu1 %v2901_v12 }
 0xaeb   : > { %2851 = vmatpush3.bf16.msra.mxu1 %v2850_v41 }
 0xaec   : > { %2858 = vmatprep.subr.bf16.mxu1 %v2901_v12 }
 0xaee   : > { %2753 = vmatmul.mubr.msk.f32.vlgmr.msra.gmra.mrb[20].mxu1 %vm385_vm0, %v3032_v32 }
 0xaef   : > { %2860 = vmatpush3.bf16.msra.mxu1 %v2859_v44  ;;  %2774 = vmatprep.mubr.msk.f32.mxu1 %vm2902_vm1, %v2903_v20 }
 0xaf0   : > { %2861 = vmatprep.subr.bf16.mxu1 %v2901_v12 }
 0xaf3   : > { %2863 = vmatpush3.bf16.msra.mxu1 %v2862_v47 }
 0xaf4   : > { %2787 = vmatprep.subr.mxu1 %v2903_v20 }
 0xaf6   : > { %2775 = vmatmul.mubr.msk.f32.vlgmr.msra.gmra.mrb[22].mxu1 %vm385_vm0, %v3032_v32 }
 0xaf7   : > { %2789 = vmatprep.mubr.msk.f32.mxu1 %vm2902_vm1, %v2903_v20  ;;  %2788 = vmatpush3.msra.mxu1 %v2511_v16 }
 0xbb9   : > { %v1787_v53 = vpop.f32.mrb[18].mxu1 }
 0xbba   : > { %v2738_v54 = vpop.f32.mrb[19].mxu1  ;;  %2742 = vmatmul.mubr.msk.f32.vlgmr.msra.gmra.mrb[14].mxu0 %vm660_vm2, %v1787_v53 }
 0xbbb   : > { %2854 = vmatpush3.bf16.msra.mxu0 %v2853_v50  ;;  %2763 = vmatprep.mubr.msk.f32.mxu0 %vm2902_vm1, %v2903_v20 }
 0xbbc   : > { %2855 = vmatprep.subr.bf16.mxu0 %v2901_v12  ;;  %v2499_v12 = vld [vmem:[%s3340_s6 + $0x3] ss:$0 sm:$0xff] }
 0xbbf   : > { %2857 = vmatpush3.bf16.msra.mxu0 %v2856_v55 }
 0xbc0   : > { %2777 = vmatprep.subr.mxu0 %v2903_v20 }
 0xbc1   : > { %v1946_v56 = vpop.f32.mrb[20].mxu1 }
 0xbc2   : > { %v2754_v57 = vpop.f32.mrb[21].mxu1  ;;  %2764 = vmatmul.mubr.msk.f32.vlgmr.msra.gmra.mrb[16].mxu0 %vm385_vm0, %v3032_v32  ;;  %v1947_v4 = vadd.f32 %v2492_v1, %v1946_v56 }
 0xbc3   : > { %2779 = vmatprep.mubr.msk.f32.mxu0 %vm2902_vm1, %v2903_v20 }
 0xbc9   : > { %v2112_v58 = vpop.f32.mrb[22].mxu1 }
 0xbca   : > { %v2776_v59 = vpop.f32.mrb[23].mxu1  ;;  %v2113_v5 = vadd.f32 %v2506_v3, %v2112_v58 }
 0xc8d   : > { %v1862_v60 = vpop.f32.mrb[14].mxu0 }
 0xc8e   : > { %v1866_v61 = vadd.f32 %v1862_v60, %v3221_v10  ;;  %v2743_v62 = vpop.f32.mrb[15].mxu0 }
 0xc95   : > { %v2029_v63 = vpop.f32.mrb[16].mxu0 }
 0xc96   : > { %v2030_v2 = vadd.f32 %v2499_v12, %v2029_v63  ;;  %v2765_v32 = vpop.f32.mrb[17].mxu0 }
 0xc98   : > { %2778 = vmatpush3.xpose.msk.msra.mxu0 %vm660_vm2, %v2030_v2 }
 0xc99   : > { %2782 = vmatprep.subr.mxu0 %v2903_v20 }
 0xc9b   : > { %2780 = vmatmul.mubr.msk.f32.vlgmr.msra.gmra.mrb[18].mxu0 %vm660_vm2, %v1947_v4 }
 0xc9c   : > { %2783 = vmatpush3.msra.mxu0 %v2113_v5  ;;  %2784 = vmatprep.mubr.msk.f32.mxu0 %vm2902_vm1, %v2903_v20 }
 0xd6e   : > { %v2188_v6 = vpop.f32.mrb[18].mxu0 }
 0xd6f   : > { %v2192_v7 = vmul.f32 0.35355338, %v2188_v6  ;;  %v2781_v8 = vpop.f32.mrb[19].mxu0 }
 0xd71   : > { %v2193_v9 = vsel %vm660_vm2, %v2192_v7, -inf }
 0xd72   : > { %2194 = vmax.xlane.f32.xlu0 %v2193_v9 }
 0xdff   : > { %v2195_v10 = vpop.xlane.xlu0 %2194 }
 0xe00   : > { %v2196_v11 = vsub.f32 %v2192_v7, %v2195_v10 }
 0xe02   : > { %v2197_v13 = vmul.f32 1.442695, %v2196_v11 }
 0xe04   : > { %2889 = vpow2.f32 %v2197_v13 }
 0xe0e   : > { %v2890_v14 = vpop.eup %2889 }
 0xe0f   : > { %v2199_v15 = vsel %vm660_vm2, %v2890_v14, 0.0 }
 0xe10   : > { %2200 = vadd.xlane.f32.xlu1 %v2199_v15 }
 0xe9d   : > { %v2201_v20 = vpop.xlane.xlu1 %2200 }
 0xe9e   : > { %2891 = vrcp.f32 %v2201_v20 }
 0xea8   : > { %v2892_v17 = vpop.eup %2891 }
 0xea9   : > { %v2203_v18 = vmul.f32 %v2892_v17, %v2890_v14 }
 0xeab   : > { %2785 = vmatmul.mubr.msk.f32.vlgmr.msra.gmra.mrb[20].mxu0 %vm660_vm2, %v2203_v18 }
 0xf7e   : > { %v2273_v19 = vpop.f32.mrb[20].mxu0 }
 0xf7f   : > { %v2786_v21 = vpop.f32.mrb[21].mxu0  ;;  %2790 = vmatmul.mubr.msk.f32.vlgmr.msra.gmra.mrb[24].mxu1 %vm660_vm2, %v2273_v19 }
0x1052   : > { %v2348_v22 = vpop.f32.mrb[24].mxu1 }
0x1053   : > { %v2352_v23 = vadd.f32 %v2348_v22, %v1866_v61  ;;  %v2791_v24 = vpop.f32.mrb[25].mxu1 }
0x1055   : > { %v2353_v26 = vadd.f32 %v2352_v23, %v2980_v0 }
0x1057   : > { %v2361_v27 = vadd.f32 %v2513_v25, %v2353_v26 }
0x1059   : > { %2362 = vst.msk [vmem:[%s381_s12] sm:$0xff] %vm385_vm0, %v2361_v27 }
0x105a PF: > { %s21_s17 = sadd.s32 1, %s2899_s17  }
0x105b   : > { %p18_p4 = scmp.ge.s32.totalorder %s21_s17, 8  }
0x105d   :  { %20 = sbr.rel (!%p18_p4) target bundleno = 1 (0x1), region = 115 }

// kernel: decoder_forward.7
= control target key start
LH: loop header
LB: loop body
LE: loop exit
PB: predicated region body
PF: predicated region fallthrough
CT: control target
= control target key end

     0   :  { %s3030_s21 = smov 0   ;;  %s3403_s0 = inlined_call_operand.vmem [shape: f32[6,8,32], index: 0, kind: input, shape index: {}]   ;;  %s3404_s1 = inlined_call_operand.vmem [shape: f32[6,8,32], index: 1, kind: input, shape index: {}]   ;;  %s3405_s2 = inlined_call_operand.vmem [shape: f32[1,32], index: 2, kind: input, shape index: {}]   ;;  %s3406_s3 = inlined_call_operand.vmem [shape: f32[1,32], index: 3, kind: input, shape index: {}]   ;;  %s3407_s4 = inlined_call_operand.vmem [shape: f32[4,32,8], index: 4, kind: input, shape index: {}]   ;;  %s3408_s5 = inlined_call_operand.vmem [shape: f32[4,1,8], index: 5, kind: input, shape index: {}]   ;;  %s3409_s6 = inlined_call_operand.vmem [shape: f32[4,32,8], index: 6, kind: input, shape index: {}]   ;;  %s3410_s7 = inlined_call_operand.vmem [shape: f32[4,1,8], index: 7, kind: input, shape index: {}]   ;;  %s3411_s8 = inlined_call_operand.vmem [shape: f32[4,32,8], index: 8, kind: input, shape index: {}]   ;;  %s3412_s9 = inlined_call_operand.vmem [shape: f32[4,1,8], index: 9, kind: input, shape index: {}]   ;;  %s3413_s10 = inlined_call_operand.vmem [shape: f32[4,8,32], index: 10, kind: input, shape index: {}]   ;;  %s3414_s11 = inlined_call_operand.vmem [shape: f32[1,32], index: 11, kind: input, shape index: {}]   ;;  %s3415_s12 = inlined_call_operand.vmem [shape: f32[6,8,32], index: 12, kind: output, shape index: {}]  }
   0x1 LB: > { %s2476_s22 = sadd.s32 4294967295, %s2960_s21   ;;  %p2480_p0 = scmp.ge.s32.totalorder %s2960_s21, 1  ;;  %s2960_s21 = sphi %s3030_s21, %s22_s21  }
   0x2   : > { %p370_p1 = scmp.lt.s32.totalorder %s2960_s21, 7 }
   0x4   : > { %p371_p2 = pnand %p2480_p0, %p370_p1 }
   0x5   : > { %p414_p3 = scmp.lt.s32.totalorder (!%p371_p2), %s2476_s22, 5  ;;  %vm429_vm0 = vcmask (!%p371_p2), 261120   ;;  %v543_v7 = vld [vmem:[%s3409_s6] sm:$0xff] (!%p371_p2)  ;;  %v544_v8 = vld [vmem:[%s3409_s6 + $0x8] sm:$0xff] (!%p371_p2)  ;;  %v2962_v10 = vmov (!%p371_p2), 0.0|0.0   ;;  %v545_v13 = vld [vmem:[%s3409_s6 + $0x10] sm:$0xff] (!%p371_p2) }
   0x6   : > { %374 = sbr.rel (%p371_p2) target bundleno = 4183 (0x1057), region = 68  ;;  %v459_v9 = vld [vmem:[%s3407_s4] sm:$0xff] (!%p371_p2)  ;;  %2859 = vmatprep.subr.bf16.mxu1 (!%p371_p2), %v2962_v10  ;;  %v2860_v11 = vpack.c.bf16 (!%p371_p2), %v544_v8, %v543_v7  ;;  %2853 = vmatprep.subr.bf16.mxu0 (!%p371_p2), %v2962_v10  ;;  %v460_v12 = vld [vmem:[%s3407_s4 + $0x8] sm:$0xff] (!%p371_p2)  ;;  %v546_v14 = vld [vmem:[%s3409_s6 + $0x18] sm:$0xff] (!%p371_p2)  ;;  %vm2963_vm1 = vmmov (!%p371_p2), 0   ;;  %v2964_v16 = vmov (!%p371_p2), 0.0  }
   0x7   : > { %v2854_v15 = vpack.c.bf16 (!%p371_p2), %v460_v12, %v459_v9  ;;  %2680 = vmatprep.mubr.msk.f32.mxu1 (!%p371_p2), %vm2963_vm1, %v2964_v16  ;;  %v461_v17 = vld [vmem:[%s3407_s4 + $0x10] sm:$0xff] (!%p371_p2)  ;;  %v462_v18 = vld [vmem:[%s3407_s4 + $0x18] sm:$0xff] (!%p371_p2)  ;;  %2669 = vmatprep.mubr.msk.f32.mxu0 (!%p371_p2), %vm2963_vm1, %v2964_v16  ;;  %v2863_v19 = vpack.c.bf16 (!%p371_p2), %v546_v14, %v545_v13  ;;  %v2484_v26 = vld [vmem:[%s3405_s2] ss:$0 sm:$0xff] (!%p371_p2)  ;;  %vm708_vm2 = vcmask (!%p371_p2), 64512  }
   0x8   : > { %2861 = vmatpush3.bf16.msra.mxu1 (!%p371_p2), %v2860_v11  ;;  %v2857_v20 = vpack.c.bf16 (!%p371_p2), %v462_v18, %v461_v17  ;;  %v627_v28 = vld [vmem:[%s3411_s8] sm:$0xff] (!%p371_p2)  ;;  %v628_v29 = vld [vmem:[%s3411_s8 + $0x8] sm:$0xff] (!%p371_p2)  ;;  %v629_v34 = vld [vmem:[%s3411_s8 + $0x10] sm:$0xff] (!%p371_p2) }
   0x9   : > { %2855 = vmatpush3.bf16.msra.mxu0 (!%p371_p2), %v2854_v15  ;;  %2862 = vmatprep.subr.bf16.mxu1 (!%p371_p2), %v2962_v10  ;;  %v2485_v30 = vld [vmem:[%s3406_s3] ss:$0 sm:$0xff] (!%p371_p2)  ;;  %v2866_v32 = vpack.c.bf16 (!%p371_p2), %v628_v29, %v627_v28  ;;  %v630_v35 = vld [vmem:[%s3411_s8 + $0x18] sm:$0xff] (!%p371_p2)  ;;  %v2496_v38 = vld [vmem:[%s3407_s4 + $0x28] sm:$0xff] (!%p371_p2) }
   0xa   : > { %2856 = vmatprep.subr.bf16.mxu0 (!%p371_p2), %v2962_v10  ;;  %v2869_v36 = vpack.c.bf16 (!%p371_p2), %v630_v35, %v629_v34  ;;  %v2495_v37 = vld [vmem:[%s3407_s4 + $0x20] sm:$0xff] (!%p371_p2)  ;;  %v2497_v40 = vld [vmem:[%s3407_s4 + $0x30] sm:$0xff] (!%p371_p2)  ;;  %v2498_v41 = vld [vmem:[%s3407_s4 + $0x38] sm:$0xff] (!%p371_p2) }
   0xb   : > { %v2872_v39 = vpack.c.bf16 (!%p371_p2), %v2496_v38, %v2495_v37  ;;  %v2875_v42 = vpack.c.bf16 (!%p371_p2), %v2498_v41, %v2497_v40  ;;  %v2488_v44 = vld [vmem:[%s3410_s7] ss:$0 sm:$0xff] (!%p371_p2)  ;;  %v2504_v9 = vld [vmem:[%s3409_s6 + $0x30] sm:$0xff] (!%p371_p2)  ;;  %v2505_v11 = vld [vmem:[%s3409_s6 + $0x38] sm:$0xff] (!%p371_p2) }
   0xc   : > { %2864 = vmatpush3.bf16.msra.mxu1 (!%p371_p2), %v2863_v19  ;;  %v2486_v47 = vld [vmem:[%s3408_s5] ss:$0 sm:$0xff] (!%p371_p2)  ;;  %v2881_v12 = vpack.c.bf16 (!%p371_p2), %v2505_v11, %v2504_v9  ;;  %v2507_v15 = vld [vmem:[%s3410_s7 + $0x1] ss:$0 sm:$0xff] (!%p371_p2) }
   0xd   : > { %s3417_s22 = smov (!%p414_p3, %s2476_s22), 5  ;;  %2858 = vmatpush3.bf16.msra.mxu0 %v2857_v20  ;;  %2694 = vmatprep.subr.mxu1 %v2964_v16  ;;  %v2490_v51 = vld [vmem:[%s3412_s9] ss:$0 sm:$0xff]  ;;  %v2500_v18 = vld [vmem:[%s3408_s5 + $0x1] ss:$0 sm:$0xff] }
   0xe   : > { %s3038_s23 = sshll.u32 %s3417_s22, 3  ;;  %2865 = vmatprep.subr.bf16.mxu0 %v2962_v10  ;;  %v2514_v40 = vld [vmem:[%s3412_s9 + $0x1] ss:$0 sm:$0xff] }
   0xf   : > { %s417_s26 = scalar_lea.vmem %s3403_s0, %s3038_s23  ;;  %s421_s29 = scalar_lea.vmem %s3404_s1, %s3038_s23 }
  0x10   : > { %v3044_v0 = vld [vmem:[%s417_s26] sm:$0xff]  ;;  %s425_s20 = scalar_lea.vmem %s3415_s12, %s3038_s23 }
  0x11   : > { %v430_v1 = vsel %vm429_vm0, %v3044_v0, 0.0  ;;  %v3086_v21 = vld [vmem:[%s421_s29] sm:$0xff] }
  0x12   : > { %431 = vadd.xlane.f32.xlu0 %v430_v1  ;;  %2681 = vmatmul.mubr.msk.f32.vlgmr.msra.gmra.mrb[0].mxu1 %vm429_vm0, %v3086_v21 }
  0x13   : > { %2696 = vmatprep.mubr.msk.f32.mxu1 %vm2963_vm1, %v2964_v16 }
  0x9f   : > { %v432_v2 = vpop.xlane.xlu0 %431 }
  0xa0   : > { %v434_v3 = vmul.f32 0.03125, %v432_v2 }
  0xa2   : > { %v435_v4 = vsub.f32 %v3044_v0, %v434_v3 }
  0xa4   : > { %v436_v5 = vmul.f32 %v435_v4, %v435_v4 }
  0xa6   : > { %v437_v6 = vsel %vm429_vm0, %v436_v5, 0.0  ;;  %v2503_v5 = vld [vmem:[%s3409_s6 + $0x28] sm:$0xff] }
  0xa7   : > { %438 = vadd.xlane.f32.xlu0 %v437_v6 }
  0xe5   : > { %v623_v43 = vpop.f32.mrb[0].mxu1 }
  0xe6   : > { %v2682_v45 = vpop.f32.mrb[1].mxu1  ;;  %v624_v46 = vadd.f32 %v2488_v44, %v623_v43  ;;  %v2519_v43 = vld [vmem:[%s3413_s10 + $0x8] sm:$0xff] }
  0xe8   : > { %2695 = vmatpush3.xpose.msk.msra.mxu1 %vm708_vm2, %v624_v46 }
  0xe9   : > { %2699 = vmatprep.subr.mxu1 %v2964_v16 }
 0x134   : > { %v439_v22 = vpop.xlane.xlu0 %438 }
 0x135   : > { %v440_v23 = vmul.f32 0.03125, %v439_v22 }
 0x137   : > { %v441_v24 = vadd.f32 1e-05, %v440_v23  ;;  %v2509_v23 = vld [vmem:[%s3411_s8 + $0x20] sm:$0xff] }
 0x139   : > { %2936 = vrsqrt.f32 %v441_v24  ;;  %v2510_v24 = vld [vmem:[%s3411_s8 + $0x28] sm:$0xff] }
 0x143   : > { %v2937_v25 = vpop.eup %2936 }
 0x144   : > { %v443_v27 = vmul.f32 %v2937_v25, %v435_v4  ;;  %v2502_v4 = vld [vmem:[%s3409_s6 + $0x20] sm:$0xff]  ;;  %v2511_v25 = vld [vmem:[%s3411_s8 + $0x30] sm:$0xff] }
 0x145   : > { %v2878_v7 = vpack.c.bf16 %v2503_v5, %v2502_v4 }
 0x146   : > { %v450_v31 = vmul.f32 %v2484_v26, %v443_v27  ;;  %v2884_v26 = vpack.c.bf16 %v2510_v24, %v2509_v23  ;;  %v2512_v27 = vld [vmem:[%s3411_s8 + $0x38] sm:$0xff] }
 0x147   : > { %v2887_v28 = vpack.c.bf16 %v2512_v27, %v2511_v25 }
 0x148   : > { %v3106_v33 = vadd.f32 %v2485_v30, %v450_v31 }
 0x14a   : > { %2670 = vmatmul.mubr.msk.f32.vlgmr.msra.gmra.mrb[0].mxu0 %vm429_vm0, %v3106_v33 }
 0x14b   : > { %2867 = vmatpush3.bf16.msra.mxu0 %v2866_v32  ;;  %2691 = vmatprep.mubr.msk.f32.mxu0 %vm2963_vm1, %v2964_v16 }
 0x14c   : > { %2868 = vmatprep.subr.bf16.mxu0 %v2962_v10 }
 0x14f   : > { %2870 = vmatpush3.bf16.msra.mxu0 %v2869_v36 }
 0x150   : > { %2871 = vmatprep.subr.bf16.mxu0 %v2962_v10 }
 0x152   : > { %2692 = vmatmul.mubr.msk.f32.vlgmr.msra.gmra.mrb[2].mxu0 %vm429_vm0, %v3086_v21 }
 0x153   : > { %2873 = vmatpush3.bf16.msra.mxu0 %v2872_v39  ;;  %2712 = vmatprep.mubr.msk.f32.mxu0 %vm2963_vm1, %v2964_v16 }
 0x154   : > { %2874 = vmatprep.subr.bf16.mxu0 %v2962_v10 }
 0x157   : > { %2876 = vmatpush3.bf16.msra.mxu0 %v2875_v42 }
 0x158   : > { %2883 = vmatprep.subr.bf16.mxu0 %v2962_v10 }
 0x15a   : > { %2713 = vmatmul.mubr.msk.f32.vlgmr.msra.gmra.mrb[4].mxu0 %vm429_vm0, %v3106_v33 }
 0x15b   : > { %2734 = vmatprep.mubr.msk.f32.mxu0 %vm2963_vm1, %v2964_v16  ;;  %2885 = vmatpush3.bf16.msra.mxu0 %v2884_v26 }
 0x15c   : > { %2886 = vmatprep.subr.bf16.mxu0 %v2962_v10 }
 0x15f   : > { %2888 = vmatpush3.bf16.msra.mxu0 %v2887_v28 }
 0x160   : > { %2747 = vmatprep.subr.mxu0 %v2964_v16 }
 0x162   : > { %2735 = vmatmul.mubr.msk.f32.vlgmr.msra.gmra.mrb[6].mxu0 %vm429_vm0, %v3086_v21 }
 0x163   : > { %2749 = vmatprep.mubr.msk.f32.mxu0 %vm2963_vm1, %v2964_v16  ;;  %2748 = vmatpush3.msra.mxu0 %v2519_v43  ;;  %v2551_v43 = vld [vmem:[%s3407_s4 + $0x78] sm:$0xff] }
 0x164   : > { %2889 = vmatprep.subr.bf16.mxu0 %v2962_v10 }
 0x21d   : > { %v539_v48 = vpop.f32.mrb[0].mxu0 }
 0x21e   : > { %v540_v49 = vadd.f32 %v2486_v47, %v539_v48  ;;  %v2671_v50 = vpop.f32.mrb[1].mxu0  ;;  %v870_v47 = vld [vmem:[%s3413_s10] sm:$0xff] }
 0x21f   : > { %v2529_v48 = vld [vmem:[%s3409_s6 + $0x40] sm:$0xff] }
 0x220   : > { %2697 = vmatmul.mubr.msk.f32.vlgmr.msra.gmra.mrb[2].mxu1 %vm708_vm2, %v540_v49  ;;  %v2530_v49 = vld [vmem:[%s3409_s6 + $0x48] sm:$0xff] }
 0x221   : > { %2701 = vmatprep.mubr.msk.f32.mxu1 %vm2963_vm1, %v2964_v16  ;;  %v2896_v50 = vpack.c.bf16 %v2530_v49, %v2529_v48  ;;  %v2557_v48 = vld [vmem:[%s3409_s6 + $0x70] sm:$0xff] }
 0x225   : > { %v704_v52 = vpop.f32.mrb[2].mxu0 }
 0x226   : > { %v705_v53 = vadd.f32 %v2490_v51, %v704_v52  ;;  %v2693_v54 = vpop.f32.mrb[3].mxu0  ;;  %v2531_v51 = vld [vmem:[%s3409_s6 + $0x50] sm:$0xff]  ;;  %v2532_v52 = vld [vmem:[%s3409_s6 + $0x58] sm:$0xff] }
 0x227   : > { %v2522_v54 = vld [vmem:[%s3407_s4 + $0x40] sm:$0xff] }
 0x228   : > { %2700 = vmatpush3.msra.mxu1 %v705_v53  ;;  %v2899_v53 = vpack.c.bf16 %v2532_v52, %v2531_v51 }
 0x229   : > { %2877 = vmatprep.subr.bf16.mxu1 %v2962_v10 }
 0x22d   : > { %v950_v55 = vpop.f32.mrb[4].mxu0 }
 0x22e   : > { %v2714_v56 = vpop.f32.mrb[5].mxu0  ;;  %v951_v22 = vadd.f32 %v2500_v18, %v950_v55  ;;  %v2523_v55 = vld [vmem:[%s3407_s4 + $0x48] sm:$0xff]  ;;  %v2539_v18 = vld [vmem:[%s3411_s8 + $0x58] sm:$0xff] }
 0x22f   : > { %v2890_v56 = vpack.c.bf16 %v2523_v55, %v2522_v54 }
 0x235   : > { %v1116_v39 = vpop.f32.mrb[6].mxu0 }
 0x236   : > { %v2736_v41 = vpop.f32.mrb[7].mxu0  ;;  %v1117_v42 = vadd.f32 %v2514_v40, %v1116_v39 }
 0x2f3   : > { %v781_v57 = vpop.f32.mrb[2].mxu1 }
 0x2f4   : > { %v785_v58 = vmul.f32 0.35355338, %v781_v57  ;;  %v2698_v59 = vpop.f32.mrb[3].mxu1  ;;  %v2524_v57 = vld [vmem:[%s3407_s4 + $0x50] sm:$0xff] }
 0x2f6   : > { %v786_v60 = vsel %vm708_vm2, %v785_v58, -inf }
 0x2f7   : > { %787 = vmax.xlane.f32.xlu1 %v786_v60 }
 0x384   : > { %v788_v61 = vpop.xlane.xlu1 %787 }
 0x385   : > { %v789_v62 = vsub.f32 %v785_v58, %v788_v61  ;;  %v2525_v58 = vld [vmem:[%s3407_s4 + $0x58] sm:$0xff] }
 0x386   : > { %v2893_v61 = vpack.c.bf16 %v2525_v58, %v2524_v57  ;;  %v2560_v57 = vld [vmem:[%s3410_s7 + $0x3] ss:$0 sm:$0xff] }
 0x387   : > { %v790_v63 = vmul.f32 1.442695, %v789_v62 }
 0x389   : > { %2938 = vpow2.f32 %v790_v63 }
 0x393   : > { %v2939_v1 = vpop.eup %2938 }
 0x394   : > { %v792_v2 = vsel %vm708_vm2, %v2939_v1, 0.0 }
 0x395   : > { %793 = vadd.xlane.f32.xlu1 %v792_v2 }
 0x422   : > { %v794_v3 = vpop.xlane.xlu1 %793 }
 0x423   : > { %2940 = vrcp.f32 %v794_v3 }
 0x42d   : > { %v2941_v6 = vpop.eup %2940 }
 0x42e   : > { %v796_v8 = vmul.f32 %v2941_v6, %v2939_v1  ;;  %v2534_v1 = vld [vmem:[%s3410_s7 + $0x2] ss:$0 sm:$0xff] }
 0x430   : > { %2702 = vmatmul.mubr.msk.f32.vlgmr.msra.gmra.mrb[4].mxu1 %vm708_vm2, %v796_v8  ;;  %v2527_v8 = vld [vmem:[%s3408_s5 + $0x2] ss:$0 sm:$0xff] }
 0x431   : > { %2879 = vmatpush3.bf16.msra.mxu1 %v2878_v7  ;;  %2723 = vmatprep.mubr.msk.f32.mxu1 %vm2963_vm1, %v2964_v16 }
 0x432   : > { %2880 = vmatprep.subr.bf16.mxu1 %v2962_v10 }
 0x435   : > { %2882 = vmatpush3.bf16.msra.mxu1 %v2881_v12 }
 0x436   : > { %2737 = vmatprep.subr.mxu1 %v2964_v16 }
 0x438   : > { %2724 = vmatmul.mubr.msk.f32.vlgmr.msra.gmra.mrb[6].mxu1 %vm429_vm0, %v3086_v21 }
 0x439   : > { %2739 = vmatprep.mubr.msk.f32.mxu1 %vm2963_vm1, %v2964_v16 }
 0x503   : > { %v866_v13 = vpop.f32.mrb[4].mxu1 }
 0x504   : > { %v2703_v14 = vpop.f32.mrb[5].mxu1 }
 0x505   : > { %v2537_v14 = vld [vmem:[%s3411_s8 + $0x48] sm:$0xff] }
 0x50b   : > { %v1033_v17 = vpop.f32.mrb[6].mxu1 }
 0x50c   : > { %v1034_v19 = vadd.f32 %v2507_v15, %v1033_v17  ;;  %v2725_v20 = vpop.f32.mrb[7].mxu1  ;;  %v2538_v15 = vld [vmem:[%s3411_s8 + $0x50] sm:$0xff] }
 0x50e   : > { %2738 = vmatpush3.xpose.msk.msra.mxu1 %vm708_vm2, %v1034_v19  ;;  %v2905_v19 = vpack.c.bf16 %v2539_v18, %v2538_v15  ;;  %v2572_v18 = vld [vmem:[%s3413_s10 + $0x18] sm:$0xff] }
 0x50f   : > { %2742 = vmatprep.subr.mxu1 %v2964_v16 }
 0x511   : > { %2740 = vmatmul.mubr.msk.f32.vlgmr.msra.gmra.mrb[8].mxu1 %vm708_vm2, %v951_v22 }
 0x512   : > { %2744 = vmatprep.mubr.msk.f32.mxu1 %vm2963_vm1, %v2964_v16  ;;  %2743 = vmatpush3.msra.mxu1 %v1117_v42  ;;  %v2550_v42 = vld [vmem:[%s3407_s4 + $0x70] sm:$0xff] }
 0x513   : > { %2752 = vmatprep.subr.mxu1 %v2964_v16 }
 0x5e4   : > { %v1192_v29 = vpop.f32.mrb[8].mxu1 }
 0x5e5   : > { %v1196_v30 = vmul.f32 0.35355338, %v1192_v29  ;;  %v2741_v31 = vpop.f32.mrb[9].mxu1 }
 0x5e7   : > { %v1197_v32 = vsel %vm708_vm2, %v1196_v30, -inf }
 0x5e8   : > { %1198 = vmax.xlane.f32.xlu0 %v1197_v32 }
 0x675   : > { %v1199_v34 = vpop.xlane.xlu0 %1198 }
 0x676   : > { %v1200_v35 = vsub.f32 %v1196_v30, %v1199_v34  ;;  %v2541_v30 = vld [vmem:[%s3412_s9 + $0x2] ss:$0 sm:$0xff] }
 0x678   : > { %v1201_v36 = vmul.f32 1.442695, %v1200_v35  ;;  %v2546_v35 = vld [vmem:[%s3413_s10 + $0x10] sm:$0xff] }
 0x67a   : > { %2942 = vpow2.f32 %v1201_v36 }
 0x684   : > { %v2943_v37 = vpop.eup %2942 }
 0x685   : > { %v1203_v38 = vsel %vm708_vm2, %v2943_v37, 0.0 }
 0x686   : > { %1204 = vadd.xlane.f32.xlu1 %v1203_v38  ;;  %v2549_v38 = vld [vmem:[%s3407_s4 + $0x68] sm:$0xff] }
 0x713   : > { %v1205_v44 = vpop.xlane.xlu1 %1204 }
 0x714   : > { %2944 = vrcp.f32 %v1205_v44  ;;  %v2911_v44 = vpack.c.bf16 %v2551_v43, %v2550_v42 }
 0x71e   : > { %v2945_v45 = vpop.eup %2944 }
 0x71f   : > { %v1207_v46 = vmul.f32 %v2945_v45, %v2943_v37  ;;  %v2548_v37 = vld [vmem:[%s3407_s4 + $0x60] sm:$0xff] }
 0x720   : > { %v2908_v40 = vpack.c.bf16 %v2549_v38, %v2548_v37  ;;  %v2555_v45 = vld [vmem:[%s3409_s6 + $0x60] sm:$0xff] }
 0x721   : > { %2745 = vmatmul.mubr.msk.f32.vlgmr.msra.gmra.mrb[10].mxu1 %vm708_vm2, %v1207_v46  ;;  %v2556_v46 = vld [vmem:[%s3409_s6 + $0x68] sm:$0xff] }
 0x722   : > { %2753 = vmatpush3.msra.mxu1 %v870_v47  ;;  %2754 = vmatprep.mubr.msk.f32.mxu1 %vm2963_vm1, %v2964_v16  ;;  %v2914_v47 = vpack.c.bf16 %v2556_v46, %v2555_v45 }
 0x723   : > { %2895 = vmatprep.subr.bf16.mxu1 %v2962_v10 }
 0x725   : > { %2755 = vmatmul.mubr.msk.f32.vlgmr.msra.gmra.mrb[12].mxu1 %vm708_vm2, %v866_v13  ;;  %v2536_v13 = vld [vmem:[%s3411_s8 + $0x40] sm:$0xff] }
 0x726   : > { %2897 = vmatpush3.bf16.msra.mxu1 %v2896_v50  ;;  %2776 = vmatprep.mubr.msk.f32.mxu1 %vm2963_vm1, %v2964_v16  ;;  %v2902_v17 = vpack.c.bf16 %v2537_v14, %v2536_v13 }
 0x727   : > { %2898 = vmatprep.subr.bf16.mxu1 %v2962_v10 }
 0x72a   : > { %2900 = vmatpush3.bf16.msra.mxu1 %v2899_v53 }
 0x72b   : > { %2790 = vmatprep.subr.mxu1 %v2964_v16 }
 0x72d   : > { %2777 = vmatmul.mubr.msk.f32.vlgmr.msra.gmra.mrb[14].mxu1 %vm429_vm0, %v3086_v21 }
 0x72e   : > { %2792 = vmatprep.mubr.msk.f32.mxu1 %vm2963_vm1, %v2964_v16 }
 0x7f4   : > { %v1277_v59 = vpop.f32.mrb[10].mxu1 }
 0x7f5   : > { %v2746_v60 = vpop.f32.mrb[11].mxu1  ;;  %2750 = vmatmul.mubr.msk.f32.vlgmr.msra.gmra.mrb[8].mxu0 %vm708_vm2, %v1277_v59  ;;  %v2553_v59 = vld [vmem:[%s3408_s5 + $0x3] ss:$0 sm:$0xff] }
 0x7f6   : > { %2891 = vmatpush3.bf16.msra.mxu0 %v2890_v56  ;;  %2765 = vmatprep.mubr.msk.f32.mxu0 %vm2963_vm1, %v2964_v16 }
 0x7f7   : > { %2892 = vmatprep.subr.bf16.mxu0 %v2962_v10 }
 0x7f8   : > { %v1425_v62 = vpop.f32.mrb[12].mxu1 }
 0x7f9   : > { %v2756_v63 = vpop.f32.mrb[13].mxu1 }
 0x7fa   : > { %2894 = vmatpush3.bf16.msra.mxu0 %v2893_v61  ;;  %v2562_v63 = vld [vmem:[%s3411_s8 + $0x60] sm:$0xff] }
 0x7fb   : > { %2901 = vmatprep.subr.bf16.mxu0 %v2962_v10 }
 0x7fd   : > { %2766 = vmatmul.mubr.msk.f32.vlgmr.msra.gmra.mrb[10].mxu0 %vm429_vm0, %v3106_v33 }
 0x7fe   : > { %2787 = vmatprep.mubr.msk.f32.mxu0 %vm2963_vm1, %v2964_v16  ;;  %2903 = vmatpush3.bf16.msra.mxu0 %v2902_v17 }
 0x7ff   : > { %2904 = vmatprep.subr.bf16.mxu0 %v2962_v10 }
 0x800   : > { %v1591_v2 = vpop.f32.mrb[14].mxu1 }
 0x801   : > { %v1592_v3 = vadd.f32 %v2534_v1, %v1591_v2  ;;  %v2778_v4 = vpop.f32.mrb[15].mxu1  ;;  %v2563_v1 = vld [vmem:[%s3411_s8 + $0x68] sm:$0xff]  ;;  %v2564_v2 = vld [vmem:[%s3411_s8 + $0x70] sm:$0xff] }
 0x802   : > { %2906 = vmatpush3.bf16.msra.mxu0 %v2905_v19  ;;  %v2565_v4 = vld [vmem:[%s3411_s8 + $0x78] sm:$0xff] }
 0x803   : > { %2791 = vmatpush3.xpose.msk.msra.mxu1 %vm708_vm2, %v1592_v3  ;;  %2800 = vmatprep.subr.mxu0 %v2964_v16  ;;  %v2920_v3 = vpack.c.bf16 %v2563_v1, %v2562_v63 }
 0x804   : > { %2795 = vmatprep.subr.mxu1 %v2964_v16 }
 0x805   : > { %2788 = vmatmul.mubr.msk.f32.vlgmr.msra.gmra.mrb[12].mxu0 %vm429_vm0, %v3086_v21 }
 0x806   : > { %2802 = vmatprep.mubr.msk.f32.mxu0 %vm2963_vm1, %v2964_v16  ;;  %2801 = vmatpush3.msra.mxu0 %v2546_v35 }
 0x807   : > { %2913 = vmatprep.subr.bf16.mxu0 %v2962_v10 }
 0x8c8   : > { %v1352_v5 = vpop.f32.mrb[8].mxu0 }
 0x8c9   : > { %v3273_v6 = vadd.f32 %v1425_v62, %v1352_v5  ;;  %v2751_v7 = vpop.f32.mrb[9].mxu0  ;;  %v2923_v5 = vpack.c.bf16 %v2565_v4, %v2564_v2 }
 0x8d0   : > { %v1508_v9 = vpop.f32.mrb[10].mxu0 }
 0x8d1   : > { %v1509_v11 = vadd.f32 %v2527_v8, %v1508_v9  ;;  %v2767_v12 = vpop.f32.mrb[11].mxu0 }
 0x8d3   : > { %2793 = vmatmul.mubr.msk.f32.vlgmr.msra.gmra.mrb[16].mxu1 %vm708_vm2, %v1509_v11 }
 0x8d4   : > { %2797 = vmatprep.mubr.msk.f32.mxu1 %vm2963_vm1, %v2964_v16 }
 0x8d8   : > { %v1674_v31 = vpop.f32.mrb[12].mxu0 }
 0x8d9   : > { %v1675_v32 = vadd.f32 %v2541_v30, %v1674_v31  ;;  %v2789_v34 = vpop.f32.mrb[13].mxu0 }
 0x8db   : > { %2796 = vmatpush3.msra.mxu1 %v1675_v32 }
 0x8dc   : > { %2907 = vmatprep.subr.bf16.mxu1 %v2962_v10 }
 0x9a6   : > { %v1750_v20 = vpop.f32.mrb[16].mxu1 }
 0x9a7   : > { %v1754_v22 = vmul.f32 0.35355338, %v1750_v20  ;;  %v2794_v23 = vpop.f32.mrb[17].mxu1 }
 0x9a9   : > { %v1755_v24 = vsel %vm708_vm2, %v1754_v22, -inf }
 0x9aa   : > { %1756 = vmax.xlane.f32.xlu0 %v1755_v24 }
 0xa37   : > { %v1757_v25 = vpop.xlane.xlu0 %1756 }
 0xa38   : > { %v1758_v26 = vsub.f32 %v1754_v22, %v1757_v25 }
 0xa3a   : > { %v1759_v27 = vmul.f32 1.442695, %v1758_v26 }
 0xa3c   : > { %2946 = vpow2.f32 %v1759_v27 }
 0xa46   : > { %v2947_v28 = vpop.eup %2946 }
 0xa47   : > { %v1761_v29 = vsel %vm708_vm2, %v2947_v28, 0.0 }
 0xa48   : > { %1762 = vadd.xlane.f32.xlu1 %v1761_v29 }
 0xad5   : > { %v1763_v36 = vpop.xlane.xlu1 %1762 }
 0xad6   : > { %2948 = vrcp.f32 %v1763_v36 }
 0xae0   : > { %v2949_v39 = vpop.eup %2948 }
 0xae1   : > { %v1765_v41 = vmul.f32 %v2949_v39, %v2947_v28  ;;  %v2574_v28 = vld [vmem:[%s3414_s11] ss:$0 sm:$0xff] }
 0xae3   : > { %2798 = vmatmul.mubr.msk.f32.vlgmr.msra.gmra.mrb[18].mxu1 %vm708_vm2, %v1765_v41 }
 0xae4   : > { %2909 = vmatpush3.bf16.msra.mxu1 %v2908_v40  ;;  %2813 = vmatprep.mubr.msk.f32.mxu1 %vm2963_vm1, %v2964_v16 }
 0xae5   : > { %2910 = vmatprep.subr.bf16.mxu1 %v2962_v10 }
 0xae8   : > { %2912 = vmatpush3.bf16.msra.mxu1 %v2911_v44 }
 0xae9   : > { %2919 = vmatprep.subr.bf16.mxu1 %v2962_v10 }
 0xaeb   : > { %2814 = vmatmul.mubr.msk.f32.vlgmr.msra.gmra.mrb[20].mxu1 %vm429_vm0, %v3106_v33  ;;  %v2558_v33 = vld [vmem:[%s3409_s6 + $0x78] sm:$0xff] }
 0xaec   : > { %2835 = vmatprep.mubr.msk.f32.mxu1 %vm2963_vm1, %v2964_v16  ;;  %v2917_v51 = vpack.c.bf16 %v2558_v33, %v2557_v48  ;;  %2921 = vmatpush3.bf16.msra.mxu1 %v2920_v3 }
 0xaed   : > { %2922 = vmatprep.subr.bf16.mxu1 %v2962_v10 }
 0xaf0   : > { %2924 = vmatpush3.bf16.msra.mxu1 %v2923_v5 }
 0xaf1   : > { %2848 = vmatprep.subr.mxu1 %v2964_v16 }
 0xaf3   : > { %2836 = vmatmul.mubr.msk.f32.vlgmr.msra.gmra.mrb[22].mxu1 %vm429_vm0, %v3086_v21 }
 0xaf4   : > { %2850 = vmatprep.mubr.msk.f32.mxu1 %vm2963_vm1, %v2964_v16  ;;  %2849 = vmatpush3.msra.mxu1 %v2572_v18 }
 0xbb6   : > { %v1835_v49 = vpop.f32.mrb[18].mxu1 }
 0xbb7   : > { %v2799_v50 = vpop.f32.mrb[19].mxu1  ;;  %2803 = vmatmul.mubr.msk.f32.vlgmr.msra.gmra.mrb[14].mxu0 %vm708_vm2, %v1835_v49 }
 0xbb8   : > { %2915 = vmatpush3.bf16.msra.mxu0 %v2914_v47  ;;  %2824 = vmatprep.mubr.msk.f32.mxu0 %vm2963_vm1, %v2964_v16 }
 0xbb9   : > { %2916 = vmatprep.subr.bf16.mxu0 %v2962_v10 }
 0xbbc   : > { %2918 = vmatpush3.bf16.msra.mxu0 %v2917_v51 }
 0xbbd   : > { %2838 = vmatprep.subr.mxu0 %v2964_v16 }
 0xbbe   : > { %v1994_v52 = vpop.f32.mrb[20].mxu1 }
 0xbbf   : > { %v2815_v53 = vpop.f32.mrb[21].mxu1  ;;  %2825 = vmatmul.mubr.msk.f32.vlgmr.msra.gmra.mrb[16].mxu0 %vm429_vm0, %v3086_v21  ;;  %v1995_v62 = vadd.f32 %v2553_v59, %v1994_v52  ;;  %v2567_v21 = vld [vmem:[%s3412_s9 + $0x3] ss:$0 sm:$0xff] }
 0xbc0   : > { %2840 = vmatprep.mubr.msk.f32.mxu0 %vm2963_vm1, %v2964_v16 }
 0xbc6   : > { %v2160_v15 = vpop.f32.mrb[22].mxu1 }
 0xbc7   : > { %v2161_v17 = vadd.f32 %v2567_v21, %v2160_v15 }
 0xc8a   : > { %v1910_v54 = vpop.f32.mrb[14].mxu0 }
 0xc8b   : > { %v1914_v55 = vadd.f32 %v1910_v54, %v3273_v6  ;;  %v2804_v56 = vpop.f32.mrb[15].mxu0 }
 0xc92   : > { %v2077_v58 = vpop.f32.mrb[16].mxu0 }
 0xc93   : > { %v2078_v60 = vadd.f32 %v2560_v57, %v2077_v58  ;;  %v2826_v61 = vpop.f32.mrb[17].mxu0 }
 0xc95   : > { %2839 = vmatpush3.xpose.msk.msra.mxu0 %vm708_vm2, %v2078_v60 }
 0xc96   : > { %2843 = vmatprep.subr.mxu0 %v2964_v16 }
 0xc98   : > { %2841 = vmatmul.mubr.msk.f32.vlgmr.msra.gmra.mrb[18].mxu0 %vm708_vm2, %v1995_v62 }
 0xc99   : > { %2845 = vmatprep.mubr.msk.f32.mxu0 %vm2963_vm1, %v2964_v16  ;;  %v2837_v16 = vpop.f32.mrb[23].mxu1  ;;  %2844 = vmatpush3.msra.mxu0 %v2161_v17 }
 0xd6b   : > { %v2236_v6 = vpop.f32.mrb[18].mxu0 }
 0xd6c   : > { %v2240_v7 = vmul.f32 0.35355338, %v2236_v6  ;;  %v2842_v8 = vpop.f32.mrb[19].mxu0 }
 0xd6e   : > { %v2241_v9 = vsel %vm708_vm2, %v2240_v7, -inf }
 0xd6f   : > { %2242 = vmax.xlane.f32.xlu0 %v2241_v9 }
 0xdfc   : > { %v2243_v11 = vpop.xlane.xlu0 %2242 }
 0xdfd   : > { %v2244_v12 = vsub.f32 %v2240_v7, %v2243_v11 }
 0xdff   : > { %v2245_v13 = vmul.f32 1.442695, %v2244_v12 }
 0xe01   : > { %2950 = vpow2.f32 %v2245_v13 }
 0xe0b   : > { %v2951_v10 = vpop.eup %2950 }
 0xe0c   : > { %v2247_v14 = vsel %vm708_vm2, %v2951_v10, 0.0 }
 0xe0d   : > { %2248 = vadd.xlane.f32.xlu1 %v2247_v14 }
 0xe9a   : > { %v2249_v19 = vpop.xlane.xlu1 %2248 }
 0xe9b   : > { %2952 = vrcp.f32 %v2249_v19 }
 0xea5   : > { %v2953_v20 = vpop.eup %2952 }
 0xea6   : > { %v2251_v22 = vmul.f32 %v2953_v20, %v2951_v10 }
 0xea8   : > { %2846 = vmatmul.mubr.msk.f32.vlgmr.msra.gmra.mrb[20].mxu0 %vm708_vm2, %v2251_v22 }
 0xf7b   : > { %v2321_v23 = vpop.f32.mrb[20].mxu0 }
 0xf7c   : > { %v2847_v24 = vpop.f32.mrb[21].mxu0  ;;  %2851 = vmatmul.mubr.msk.f32.vlgmr.msra.gmra.mrb[24].mxu1 %vm708_vm2, %v2321_v23 }
0x104f   : > { %v2396_v25 = vpop.f32.mrb[24].mxu1 }
0x1050   : > { %v2400_v26 = vadd.f32 %v2396_v25, %v1914_v55  ;;  %v2852_v27 = vpop.f32.mrb[25].mxu1 }
0x1052   : > { %v2401_v29 = vadd.f32 %v2400_v26, %v3044_v0 }
0x1054   : > { %v2409_v30 = vadd.f32 %v2574_v28, %v2401_v29 }
0x1056   : > { %2410 = vst.msk [vmem:[%s425_s20] sm:$0xff] %vm429_vm0, %v2409_v30 }
0x1057 PF: > { %s22_s21 = sadd.s32 1, %s2960_s21  }
0x1058   : > { %p19_p4 = scmp.ge.s32.totalorder %s22_s21, 8  }
0x105a   :  { %21 = sbr.rel (!%p19_p4) target bundleno = 1 (0x1), region = 122 }

</bundles_post_ra>
